<compile_context>
chip_gen: v7x
topology: tpu7x:2x2x1
jax: 0.10.0
libtpu: 0.0.40
codegen_flags: <defaults>
</compile_context>

<pallas_src>
import jax
import jax.numpy as jnp
from jax import lax
from jax.experimental import pallas as pl
from jax.experimental.pallas import tpu as pltpu

D_IN = 100          # LSTM input size
H = 50              # hidden size
NUM_LAYERS = 2
HP = 128            # lanes per gate after padding (vreg-aligned gate slices)
DP = 128            # padded input feature dim
G = 4 * HP          # padded gate width
MAX_BLK_B = 128     # max batch rows per grid step (fills MXU row dimension)
VMEM_BUDGET = 40 << 20  # portable scratch+block budget (v7x has 64 MiB physical)


def _round_up(x, m):
    return (x + m - 1) // m * m


def _sigmoid(x):
    # tanh form: one EUP push instead of exp + reciprocal; mathematically identical.
    return 0.5 * jnp.tanh(0.5 * x) + 0.5


def _lstm_cell(gates_x, h, c, whh):
    """One LSTM step.  gates_x already holds x@W_ih + (b_ih + b_hh)."""
    gates = gates_x + jnp.dot(h.astype(whh.dtype), whh,
                              preferred_element_type=jnp.float32)
    i = _sigmoid(gates[:, 0 * HP:1 * HP])
    f = _sigmoid(gates[:, 1 * HP:2 * HP])
    g = jnp.tanh(gates[:, 2 * HP:3 * HP])
    o = _sigmoid(gates[:, 3 * HP:4 * HP])
    c_new = f * c + i * g
    h_new = o * jnp.tanh(c_new)
    return h_new, c_new


def _make_encoder_kernel(unroll):
    def encoder_kernel(x_ref,
                       wih1_ref, whh1_ref, b1_ref,
                       wih2_ref, whh2_ref, b2_ref,
                       h_out_ref, c_out_ref,
                       seq1_scr, gx_scr):
        T, B, _ = x_ref.shape
        zeros = jnp.zeros((B, HP), jnp.float32)

        # ---- layer 1: hoisted input projection (single large MXU matmul) ----
        x_flat = x_ref[...].astype(wih1_ref.dtype).reshape(T * B, DP)
        gx_scr[...] = (jnp.dot(x_flat, wih1_ref[...],
                               preferred_element_type=jnp.float32)
                       + b1_ref[...]).reshape(T, B, G)

        whh1 = whh1_ref[...]

        def step1(t, carry):
            h, c = carry
            h, c = _lstm_cell(gx_scr[t], h, c, whh1)
            seq1_scr[t] = h
            return (h, c)

        h1, c1 = lax.fori_loop(0, T, step1, (zeros, zeros), unroll=unroll)
        h_out_ref[0] = h1
        c_out_ref[0] = c1

        # Dropout(p=0.3) between layers is identity in eval mode.

        # ---- layer 2: hoisted projection of the full layer-1 hidden sequence ----
        # TODO(synk): for very large T, chunk this projection over time
        # (emit_pipeline) instead of one (T*B, G) slab to bound gx_scr.
        s_flat = seq1_scr[...].astype(wih2_ref.dtype).reshape(T * B, HP)
        gx_scr[...] = (jnp.dot(s_flat, wih2_ref[...],
                               preferred_element_type=jnp.float32)
                       + b2_ref[...]).reshape(T, B, G)

        whh2 = whh2_ref[...]

        def step2(t, carry):
            h, c = carry
            return _lstm_cell(gx_scr[t], h, c, whh2)

        h2, c2 = lax.fori_loop(0, T, step2, (zeros, zeros), unroll=unroll)
        h_out_ref[1] = h2
        c_out_ref[1] = c2

    return encoder_kernel


def _vmem_bytes(T, blk, w_itemsize):
    """Rough in-kernel footprint: double-buffered blocks + weights + scratch."""
    x_block = 2 * T * blk * DP * 4                     # input block, 2 buffers
    weights = 2 * w_itemsize * (DP * G + 3 * HP * G) + 2 * 2 * G * 4
    outputs = 2 * 2 * NUM_LAYERS * blk * HP * 4        # two outputs, 2 buffers
    scratch = T * blk * (HP + G) * 4                   # seq1_scr + gx_scr
    return x_block + weights + outputs + scratch


def _pick_batch_block(B, T, w_itemsize):
    bp8 = _round_up(B, 8)
    blk = min(MAX_BLK_B, bp8)
    # v7x megacore: the "parallel" axis only helps with >=2 blocks; split when
    # there is enough batch to split (but never below 8 sublanes).
    if bp8 > 8 and bp8 <= blk:
        blk = _round_up(bp8 // 2, 8)
    # VMEM guard so the tile stays portable (v7x 64 MiB physical, v5e 16 MiB
    # scoped default): shrink the batch block until the footprint fits.
    while blk > 8 and _vmem_bytes(T, blk, w_itemsize) > VMEM_BUDGET:
        blk = max(8, _round_up(blk // 2, 8))
    return blk


@jax.jit
def encoder_forward(x, params):
    """x: (B, T, 100) float32 (batch_first).  Returns (hidden, cell), each (2, B, 50)."""
    B, T, _ = x.shape
    w_itemsize = jnp.dtype(params["wih1"].dtype).itemsize

    blk = _pick_batch_block(B, T, w_itemsize)
    BP = _round_up(B, blk)

    # Time-major + pad (batch to block multiple, features to 128 lanes) as one
    # fused pad/transpose under jit.
    # TODO(synk): fuse this staging copy into the producer (or take batch-major
    # blocks and transpose in-kernel) to remove the extra HBM round trip.
    x_p = jnp.pad(jnp.transpose(x.astype(jnp.float32), (1, 0, 2)),
                  ((0, 0), (0, BP - B), (0, DP - D_IN)))

    # Full unroll only when the per-step vreg footprint is small; partial
    # unroll for big batch blocks to avoid spilling the 64-vreg file.
    unroll = T if (blk <= 16 and T <= 16) else 2

    grid = (BP // blk,)

    def full_spec(shape):
        return pl.BlockSpec(shape, lambda b: (0,) * len(shape))

    in_specs = [
        pl.BlockSpec((T, blk, DP), lambda b: (0, b, 0)),
        full_spec(params["wih1"].shape), full_spec(params["whh1"].shape),
        full_spec(params["b1"].shape),
        full_spec(params["wih2"].shape), full_spec(params["whh2"].shape),
        full_spec(params["b2"].shape),
    ]
    out_specs = (
        pl.BlockSpec((NUM_LAYERS, blk, HP), lambda b: (0, b, 0)),
        pl.BlockSpec((NUM_LAYERS, blk, HP), lambda b: (0, b, 0)),
    )
    out_shape = (
        jax.ShapeDtypeStruct((NUM_LAYERS, BP, HP), jnp.float32),
        jax.ShapeDtypeStruct((NUM_LAYERS, BP, HP), jnp.float32),
    )

    vmem_limit = int(min(64 << 20,
                         max(16 << 20, _vmem_bytes(T, blk, w_itemsize) + (4 << 20))))

    h_pad, c_pad = pl.pallas_call(
        _make_encoder_kernel(unroll),
        out_shape=out_shape,
        grid=grid,
        in_specs=in_specs,
        out_specs=out_specs,
        scratch_shapes=[
            pltpu.VMEM((T, blk, HP), jnp.float32),   # layer-1 hidden sequence
            pltpu.VMEM((T, blk, G), jnp.float32),    # hoisted gate projections (reused)
        ],
        compiler_params=pltpu.CompilerParams(
            dimension_semantics=("parallel",),       # batch blocks -> both v7x cores
            vmem_limit_bytes=vmem_limit),
    )(x_p,
      params["wih1"], params["whh1"], params["b1"],
      params["wih2"], params["whh2"], params["b2"])

    return h_pad[:, :B, :H], c_pad[:, :B, :H]


# ---------------- parameter init + packing into padded kernel layout ----------------
def init_params(key):
    """PyTorch-style uniform init in the natural (unpadded, pre-transposed) layout."""
    def uni(k, shape, bound):
        return jax.random.uniform(k, shape, jnp.float32, -bound, bound)

    s = 1.0 / jnp.sqrt(H)
    ks = jax.random.split(key, 8)
    return {
        "wih1": uni(ks[0], (D_IN, 4 * H), s),
        "whh1": uni(ks[1], (H, 4 * H), s),
        "b1":   uni(ks[2], (1, 4 * H), s) + uni(ks[3], (1, 4 * H), s),  # b_ih + b_hh
        "wih2": uni(ks[4], (H, 4 * H), s),
        "whh2": uni(ks[5], (H, 4 * H), s),
        "b2":   uni(ks[6], (1, 4 * H), s) + uni(ks[7], (1, 4 * H), s),
    }


def pack_params(nat, compute_dtype=jnp.float32):
    """Zero-pad each gate block from H=50 to HP=128 lanes, pad input rows, and
    emit matmul weights in `compute_dtype` (f32 for tight accuracy, bf16 for
    MXU throughput / halved weight DMA).  Biases stay f32 (not MXU operands)."""
    def pack_w(w, rows_p):
        out = jnp.zeros((rows_p, G), jnp.float32)
        r = w.shape[0]
        for g in range(4):
            out = out.at[:r, g * HP:g * HP + H].set(w[:, g * H:(g + 1) * H])
        return out.astype(compute_dtype)

    def pack_b(b):
        out = jnp.zeros((1, G), jnp.float32)
        for g in range(4):
            out = out.at[:, g * HP:g * HP + H].set(b[:, g * H:(g + 1) * H])
        return out

    return {
        "wih1": pack_w(nat["wih1"], DP),
        "whh1": pack_w(nat["whh1"], HP),
        "b1":   pack_b(nat["b1"]),
        "wih2": pack_w(nat["wih2"], HP),
        "whh2": pack_w(nat["whh2"], HP),
        "b2":   pack_b(nat["b2"]),
    }


# ---------------- pure-JAX reference (for correctness check) ----------------
def _lstm_layer_ref(x, wih, whh, b):
    B = x.shape[0]

    def step(carry, x_t):
        h, c = carry
        gates = x_t @ wih + h @ whh + b
        i = jax.nn.sigmoid(gates[:, 0 * H:1 * H])
        f = jax.nn.sigmoid(gates[:, 1 * H:2 * H])
        g = jnp.tanh(gates[:, 2 * H:3 * H])
        o = jax.nn.sigmoid(gates[:, 3 * H:4 * H])
        c = f * c + i * g
        h = o * jnp.tanh(c)
        return (h, c), h

    xs = jnp.transpose(x, (1, 0, 2))
    (h, c), hs = lax.scan(step, (jnp.zeros((B, H), jnp.float32),
                                 jnp.zeros((B, H), jnp.float32)), xs)
    return jnp.transpose(hs, (1, 0, 2)), h, c


def encoder_ref(x, nat):
    seq1, h1, c1 = _lstm_layer_ref(x, nat["wih1"], nat["whh1"], nat["b1"])
    # dropout == identity in eval mode
    _, h2, c2 = _lstm_layer_ref(seq1, nat["wih2"], nat["whh2"], nat["b2"])
    return jnp.stack([h1, h2]), jnp.stack([c1, c2])


if __name__ == "__main__":
    key = jax.random.PRNGKey(0)
    kx, kp = jax.random.split(key)
    B, T = 2, 8
    x = jax.random.normal(kx, (B, T, D_IN), jnp.float32)

    nat = init_params(kp)
    h_ref, c_ref = encoder_ref(x, nat)

    # --- f32 matmul operands: tight check against the reference ---
    params_f32 = pack_params(nat, jnp.float32)
    hidden, cell = encoder_forward(x, params_f32)
    hidden = jax.block_until_ready(hidden)
    cell = jax.block_until_ready(cell)

    assert hidden.shape == (NUM_LAYERS, B, H)
    assert cell.shape == (NUM_LAYERS, B, H)
    assert jnp.allclose(hidden, h_ref, atol=1e-4, rtol=1e-4), "hidden mismatch vs reference"
    assert jnp.allclose(cell, c_ref, atol=1e-4, rtol=1e-4), "cell mismatch vs reference"

    # --- bf16 matmul operands (f32 accumulation): MXU-native path; sanity bound
    #     only, since bf16 operand rounding accumulates over the recurrence ---
    params_bf16 = pack_params(nat, jnp.bfloat16)
    hidden_bf, cell_bf = encoder_forward(x, params_bf16)
    hidden_bf = jax.block_until_ready(hidden_bf)
    cell_bf = jax.block_until_ready(cell_bf)
    assert jnp.max(jnp.abs(hidden_bf - h_ref)) < 0.25, "bf16 hidden sanity check failed"
    assert jnp.max(jnp.abs(cell_bf - c_ref)) < 0.25, "bf16 cell sanity check failed"

    print("KERNEL_OK")
</pallas_src>

<mosaic_0001>
module attributes {stable_mosaic.version = 11 : i64} {
  func.func @encoder_kernel(%arg0: i32, %arg1: memref<8x8x128xf32, #tpu.memory_space<vmem>>, %arg2: memref<128x512xf32, #tpu.memory_space<vmem>>, %arg3: memref<128x512xf32, #tpu.memory_space<vmem>>, %arg4: memref<1x512xf32, #tpu.memory_space<vmem>>, %arg5: memref<128x512xf32, #tpu.memory_space<vmem>>, %arg6: memref<128x512xf32, #tpu.memory_space<vmem>>, %arg7: memref<1x512xf32, #tpu.memory_space<vmem>>, %arg8: memref<2x8x128xf32, #tpu.memory_space<vmem>>, %arg9: memref<2x8x128xf32, #tpu.memory_space<vmem>>, %arg10: memref<8x8x128xf32, #tpu.memory_space<vmem>>, %arg11: memref<8x8x512xf32, #tpu.memory_space<vmem>>) attributes {dimension_semantics = [#tpu.dimension_semantics<parallel>], iteration_bounds = array<i64: 1>, scalar_prefetch = 0 : i64, scratch_operands = 2 : i64, tpu.core_type = #tpu.core_type<tc>, window_params = [{transform_indices = @transform_0, window_bounds = array<i64: 8, 8, 128>}, {pipeline_mode = #tpu.pipeline_mode<synchronous>, transform_indices = @transform_1, window_bounds = array<i64: 128, 512>}, {pipeline_mode = #tpu.pipeline_mode<synchronous>, transform_indices = @transform_2, window_bounds = array<i64: 128, 512>}, {pipeline_mode = #tpu.pipeline_mode<synchronous>, transform_indices = @transform_3, window_bounds = array<i64: 1, 512>}, {pipeline_mode = #tpu.pipeline_mode<synchronous>, transform_indices = @transform_4, window_bounds = array<i64: 128, 512>}, {pipeline_mode = #tpu.pipeline_mode<synchronous>, transform_indices = @transform_5, window_bounds = array<i64: 128, 512>}, {pipeline_mode = #tpu.pipeline_mode<synchronous>, transform_indices = @transform_6, window_bounds = array<i64: 1, 512>}, {transform_indices = @transform_7, window_bounds = array<i64: 2, 8, 128>}, {transform_indices = @transform_8, window_bounds = array<i64: 2, 8, 128>}]} {
    %cst = arith.constant 0.000000e+00 : f32
    %0 = vector.broadcast %cst : f32 to vector<8x128xf32>
    %c0 = arith.constant 0 : index
    %c0_0 = arith.constant 0 : index
    %c0_1 = arith.constant 0 : index
    %1 = vector.load %arg1[%c0, %c0_0, %c0_1] : memref<8x8x128xf32, #tpu.memory_space<vmem>>, vector<8x8x128xf32>
    %2 = vector.shape_cast %1 : vector<8x8x128xf32> to vector<64x128xf32>
    %c0_2 = arith.constant 0 : index
    %c0_3 = arith.constant 0 : index
    %3 = vector.load %arg2[%c0_2, %c0_3] : memref<128x512xf32, #tpu.memory_space<vmem>>, vector<128x512xf32>
    %cst_4 = arith.constant dense<0.000000e+00> : vector<64x512xf32>
    %4 = tpu.matmul %2, %3, %cst_4 {dimension_numbers = #tpu.dot_dimension_numbers<[1], [0], [0], [1], [0, 0, 1, 1], [], []>} : vector<64x128xf32>, vector<128x512xf32>, vector<64x512xf32> -> vector<64x512xf32>
    %c0_5 = arith.constant 0 : index
    %c0_6 = arith.constant 0 : index
    %5 = vector.load %arg4[%c0_5, %c0_6] : memref<1x512xf32, #tpu.memory_space<vmem>>, vector<1x512xf32>
    %6 = vector.broadcast %5 : vector<1x512xf32> to vector<64x512xf32>
    %7 = arith.addf %4, %6 : vector<64x512xf32>
    %8 = vector.shape_cast %7 : vector<64x512xf32> to vector<8x8x512xf32>
    %c0_7 = arith.constant 0 : index
    %c0_8 = arith.constant 0 : index
    %c0_9 = arith.constant 0 : index
    %9 = vector.load %arg11[%c0_7, %c0_8, %c0_9] : memref<8x8x512xf32, #tpu.memory_space<vmem>>, vector<8x8x512xf32>
    tpu.vector_store %arg11[%c0_7, %c0_8, %c0_9], %8 {strides = array<i32>} : memref<8x8x512xf32, #tpu.memory_space<vmem>>, vector<8x8x512xf32>,
    %c0_10 = arith.constant 0 : index
    %c0_11 = arith.constant 0 : index
    %10 = vector.load %arg3[%c0_10, %c0_11] : memref<128x512xf32, #tpu.memory_space<vmem>>, vector<128x512xf32>
    %c0_i32 = arith.constant 0 : i32
    %11 = arith.index_cast %c0_i32 : i32 to index
    %c0_12 = arith.constant 0 : index
    %c0_13 = arith.constant 0 : index
    %12 = vector.load %arg11[%11, %c0_12, %c0_13] : memref<8x8x512xf32, #tpu.memory_space<vmem>>, vector<1x8x512xf32>
    %13 = vector.shape_cast %12 : vector<1x8x512xf32> to vector<8x512xf32>
    %cst_14 = arith.constant dense<0.000000e+00> : vector<8x512xf32>
    %14 = tpu.matmul %0, %10, %cst_14 {dimension_numbers = #tpu.dot_dimension_numbers<[1], [0], [0], [1], [0, 0, 1, 1], [], []>} : vector<8x128xf32>, vector<128x512xf32>, vector<8x512xf32> -> vector<8x512xf32>
    %15 = arith.addf %13, %14 : vector<8x512xf32>
    %16 = vector.extract_strided_slice %15 {offsets = [0, 0], sizes = [8, 128], strides = [1, 1]} : vector<8x512xf32> to vector<8x128xf32>
    %cst_15 = arith.constant 5.000000e-01 : f32
    %17 = vector.broadcast %cst_15 : f32 to vector<8x128xf32>
    %18 = arith.mulf %17, %16 : vector<8x128xf32>
    %19 = math.tanh %18 : vector<8x128xf32>
    %cst_16 = arith.constant 5.000000e-01 : f32
    %20 = vector.broadcast %cst_16 : f32 to vector<8x128xf32>
    %21 = arith.mulf %20, %19 : vector<8x128xf32>
    %cst_17 = arith.constant 5.000000e-01 : f32
    %22 = vector.broadcast %cst_17 : f32 to vector<8x128xf32>
    %23 = arith.addf %21, %22 : vector<8x128xf32>
    %24 = vector.extract_strided_slice %15 {offsets = [0, 128], sizes = [8, 128], strides = [1, 1]} : vector<8x512xf32> to vector<8x128xf32>
    %cst_18 = arith.constant 5.000000e-01 : f32
    %25 = vector.broadcast %cst_18 : f32 to vector<8x128xf32>
    %26 = arith.mulf %25, %24 : vector<8x128xf32>
    %27 = math.tanh %26 : vector<8x128xf32>
    %cst_19 = arith.constant 5.000000e-01 : f32
    %28 = vector.broadcast %cst_19 : f32 to vector<8x128xf32>
    %29 = arith.mulf %28, %27 : vector<8x128xf32>
    %cst_20 = arith.constant 5.000000e-01 : f32
    %30 = vector.broadcast %cst_20 : f32 to vector<8x128xf32>
    %31 = arith.addf %29, %30 : vector<8x128xf32>
    %32 = vector.extract_strided_slice %15 {offsets = [0, 256], sizes = [8, 128], strides = [1, 1]} : vector<8x512xf32> to vector<8x128xf32>
    %33 = math.tanh %32 : vector<8x128xf32>
    %34 = vector.extract_strided_slice %15 {offsets = [0, 384], sizes = [8, 128], strides = [1, 1]} : vector<8x512xf32> to vector<8x128xf32>
    %cst_21 = arith.constant 5.000000e-01 : f32
    %35 = vector.broadcast %cst_21 : f32 to vector<8x128xf32>
    %36 = arith.mulf %35, %34 : vector<8x128xf32>
    %37 = math.tanh %36 : vector<8x128xf32>
    %cst_22 = arith.constant 5.000000e-01 : f32
    %38 = vector.broadcast %cst_22 : f32 to vector<8x128xf32>
    %39 = arith.mulf %38, %37 : vector<8x128xf32>
    %cst_23 = arith.constant 5.000000e-01 : f32
    %40 = vector.broadcast %cst_23 : f32 to vector<8x128xf32>
    %41 = arith.addf %39, %40 : vector<8x128xf32>
    %42 = arith.mulf %31, %0 : vector<8x128xf32>
    %43 = arith.mulf %23, %33 : vector<8x128xf32>
    %44 = arith.addf %42, %43 : vector<8x128xf32>
    %45 = math.tanh %44 : vector<8x128xf32>
    %46 = arith.mulf %41, %45 : vector<8x128xf32>
    %47 = arith.index_cast %c0_i32 : i32 to index
    %c0_24 = arith.constant 0 : index
    %c0_25 = arith.constant 0 : index
    %48 = vector.load %arg10[%47, %c0_24, %c0_25] : memref<8x8x128xf32, #tpu.memory_space<vmem>>, vector<1x8x128xf32>
    %49 = vector.shape_cast %48 : vector<1x8x128xf32> to vector<8x128xf32>
    %50 = vector.shape_cast %46 : vector<8x128xf32> to vector<1x8x128xf32>
    tpu.vector_store %arg10[%47, %c0_24, %c0_25], %50 {strides = array<i32>} : memref<8x8x128xf32, #tpu.memory_space<vmem>>, vector<1x8x128xf32>,
    %c1_i32 = arith.constant 1 : i32
    %51 = arith.index_cast %c1_i32 : i32 to index
    %c0_26 = arith.constant 0 : index
    %c0_27 = arith.constant 0 : index
    %52 = vector.load %arg11[%51, %c0_26, %c0_27] : memref<8x8x512xf32, #tpu.memory_space<vmem>>, vector<1x8x512xf32>
    %53 = vector.shape_cast %52 : vector<1x8x512xf32> to vector<8x512xf32>
    %cst_28 = arith.constant dense<0.000000e+00> : vector<8x512xf32>
    %54 = tpu.matmul %46, %10, %cst_28 {dimension_numbers = #tpu.dot_dimension_numbers<[1], [0], [0], [1], [0, 0, 1, 1], [], []>} : vector<8x128xf32>, vector<128x512xf32>, vector<8x512xf32> -> vector<8x512xf32>
    %55 = arith.addf %53, %54 : vector<8x512xf32>
    %56 = vector.extract_strided_slice %55 {offsets = [0, 0], sizes = [8, 128], strides = [1, 1]} : vector<8x512xf32> to vector<8x128xf32>
    %cst_29 = arith.constant 5.000000e-01 : f32
    %57 = vector.broadcast %cst_29 : f32 to vector<8x128xf32>
    %58 = arith.mulf %57, %56 : vector<8x128xf32>
    %59 = math.tanh %58 : vector<8x128xf32>
    %cst_30 = arith.constant 5.000000e-01 : f32
    %60 = vector.broadcast %cst_30 : f32 to vector<8x128xf32>
    %61 = arith.mulf %60, %59 : vector<8x128xf32>
    %cst_31 = arith.constant 5.000000e-01 : f32
    %62 = vector.broadcast %cst_31 : f32 to vector<8x128xf32>
    %63 = arith.addf %61, %62 : vector<8x128xf32>
    %64 = vector.extract_strided_slice %55 {offsets = [0, 128], sizes = [8, 128], strides = [1, 1]} : vector<8x512xf32> to vector<8x128xf32>
    %cst_32 = arith.constant 5.000000e-01 : f32
    %65 = vector.broadcast %cst_32 : f32 to vector<8x128xf32>
    %66 = arith.mulf %65, %64 : vector<8x128xf32>
    %67 = math.tanh %66 : vector<8x128xf32>
    %cst_33 = arith.constant 5.000000e-01 : f32
    %68 = vector.broadcast %cst_33 : f32 to vector<8x128xf32>
    %69 = arith.mulf %68, %67 : vector<8x128xf32>
    %cst_34 = arith.constant 5.000000e-01 : f32
    %70 = vector.broadcast %cst_34 : f32 to vector<8x128xf32>
    %71 = arith.addf %69, %70 : vector<8x128xf32>
    %72 = vector.extract_strided_slice %55 {offsets = [0, 256], sizes = [8, 128], strides = [1, 1]} : vector<8x512xf32> to vector<8x128xf32>
    %73 = math.tanh %72 : vector<8x128xf32>
    %74 = vector.extract_strided_slice %55 {offsets = [0, 384], sizes = [8, 128], strides = [1, 1]} : vector<8x512xf32> to vector<8x128xf32>
    %cst_35 = arith.constant 5.000000e-01 : f32
    %75 = vector.broadcast %cst_35 : f32 to vector<8x128xf32>
    %76 = arith.mulf %75, %74 : vector<8x128xf32>
    %77 = math.tanh %76 : vector<8x128xf32>
    %cst_36 = arith.constant 5.000000e-01 : f32
    %78 = vector.broadcast %cst_36 : f32 to vector<8x128xf32>
    %79 = arith.mulf %78, %77 : vector<8x128xf32>
    %cst_37 = arith.constant 5.000000e-01 : f32
    %80 = vector.broadcast %cst_37 : f32 to vector<8x128xf32>
    %81 = arith.addf %79, %80 : vector<8x128xf32>
    %82 = arith.mulf %71, %44 : vector<8x128xf32>
    %83 = arith.mulf %63, %73 : vector<8x128xf32>
    %84 = arith.addf %82, %83 : vector<8x128xf32>
    %85 = math.tanh %84 : vector<8x128xf32>
    %86 = arith.mulf %81, %85 : vector<8x128xf32>
    %87 = arith.index_cast %c1_i32 : i32 to index
    %c0_38 = arith.constant 0 : index
    %c0_39 = arith.constant 0 : index
    %88 = vector.load %arg10[%87, %c0_38, %c0_39] : memref<8x8x128xf32, #tpu.memory_space<vmem>>, vector<1x8x128xf32>
    %89 = vector.shape_cast %88 : vector<1x8x128xf32> to vector<8x128xf32>
    %90 = vector.shape_cast %86 : vector<8x128xf32> to vector<1x8x128xf32>
    tpu.vector_store %arg10[%87, %c0_38, %c0_39], %90 {strides = array<i32>} : memref<8x8x128xf32, #tpu.memory_space<vmem>>, vector<1x8x128xf32>,
    %c2_i32 = arith.constant 2 : i32
    %91 = arith.index_cast %c2_i32 : i32 to index
    %c0_40 = arith.constant 0 : index
    %c0_41 = arith.constant 0 : index
    %92 = vector.load %arg11[%91, %c0_40, %c0_41] : memref<8x8x512xf32, #tpu.memory_space<vmem>>, vector<1x8x512xf32>
    %93 = vector.shape_cast %92 : vector<1x8x512xf32> to vector<8x512xf32>
    %cst_42 = arith.constant dense<0.000000e+00> : vector<8x512xf32>
    %94 = tpu.matmul %86, %10, %cst_42 {dimension_numbers = #tpu.dot_dimension_numbers<[1], [0], [0], [1], [0, 0, 1, 1], [], []>} : vector<8x128xf32>, vector<128x512xf32>, vector<8x512xf32> -> vector<8x512xf32>
    %95 = arith.addf %93, %94 : vector<8x512xf32>
    %96 = vector.extract_strided_slice %95 {offsets = [0, 0], sizes = [8, 128], strides = [1, 1]} : vector<8x512xf32> to vector<8x128xf32>
    %cst_43 = arith.constant 5.000000e-01 : f32
    %97 = vector.broadcast %cst_43 : f32 to vector<8x128xf32>
    %98 = arith.mulf %97, %96 : vector<8x128xf32>
    %99 = math.tanh %98 : vector<8x128xf32>
    %cst_44 = arith.constant 5.000000e-01 : f32
    %100 = vector.broadcast %cst_44 : f32 to vector<8x128xf32>
    %101 = arith.mulf %100, %99 : vector<8x128xf32>
    %cst_45 = arith.constant 5.000000e-01 : f32
    %102 = vector.broadcast %cst_45 : f32 to vector<8x128xf32>
    %103 = arith.addf %101, %102 : vector<8x128xf32>
    %104 = vector.extract_strided_slice %95 {offsets = [0, 128], sizes = [8, 128], strides = [1, 1]} : vector<8x512xf32> to vector<8x128xf32>
    %cst_46 = arith.constant 5.000000e-01 : f32
    %105 = vector.broadcast %cst_46 : f32 to vector<8x128xf32>
    %106 = arith.mulf %105, %104 : vector<8x128xf32>
    %107 = math.tanh %106 : vector<8x128xf32>
    %cst_47 = arith.constant 5.000000e-01 : f32
    %108 = vector.broadcast %cst_47 : f32 to vector<8x128xf32>
    %109 = arith.mulf %108, %107 : vector<8x128xf32>
    %cst_48 = arith.constant 5.000000e-01 : f32
    %110 = vector.broadcast %cst_48 : f32 to vector<8x128xf32>
    %111 = arith.addf %109, %110 : vector<8x128xf32>
    %112 = vector.extract_strided_slice %95 {offsets = [0, 256], sizes = [8, 128], strides = [1, 1]} : vector<8x512xf32> to vector<8x128xf32>
    %113 = math.tanh %112 : vector<8x128xf32>
    %114 = vector.extract_strided_slice %95 {offsets = [0, 384], sizes = [8, 128], strides = [1, 1]} : vector<8x512xf32> to vector<8x128xf32>
    %cst_49 = arith.constant 5.000000e-01 : f32
    %115 = vector.broadcast %cst_49 : f32 to vector<8x128xf32>
    %116 = arith.mulf %115, %114 : vector<8x128xf32>
    %117 = math.tanh %116 : vector<8x128xf32>
    %cst_50 = arith.constant 5.000000e-01 : f32
    %118 = vector.broadcast %cst_50 : f32 to vector<8x128xf32>
    %119 = arith.mulf %118, %117 : vector<8x128xf32>
    %cst_51 = arith.constant 5.000000e-01 : f32
    %120 = vector.broadcast %cst_51 : f32 to vector<8x128xf32>
    %121 = arith.addf %119, %120 : vector<8x128xf32>
    %122 = arith.mulf %111, %84 : vector<8x128xf32>
    %123 = arith.mulf %103, %113 : vector<8x128xf32>
    %124 = arith.addf %122, %123 : vector<8x128xf32>
    %125 = math.tanh %124 : vector<8x128xf32>
    %126 = arith.mulf %121, %125 : vector<8x128xf32>
    %127 = arith.index_cast %c2_i32 : i32 to index
    %c0_52 = arith.constant 0 : index
    %c0_53 = arith.constant 0 : index
    %128 = vector.load %arg10[%127, %c0_52, %c0_53] : memref<8x8x128xf32, #tpu.memory_space<vmem>>, vector<1x8x128xf32>
    %129 = vector.shape_cast %128 : vector<1x8x128xf32> to vector<8x128xf32>
    %130 = vector.shape_cast %126 : vector<8x128xf32> to vector<1x8x128xf32>
    tpu.vector_store %arg10[%127, %c0_52, %c0_53], %130 {strides = array<i32>} : memref<8x8x128xf32, #tpu.memory_space<vmem>>, vector<1x8x128xf32>,
    %c3_i32 = arith.constant 3 : i32
    %131 = arith.index_cast %c3_i32 : i32 to index
    %c0_54 = arith.constant 0 : index
    %c0_55 = arith.constant 0 : index
    %132 = vector.load %arg11[%131, %c0_54, %c0_55] : memref<8x8x512xf32, #tpu.memory_space<vmem>>, vector<1x8x512xf32>
    %133 = vector.shape_cast %132 : vector<1x8x512xf32> to vector<8x512xf32>
    %cst_56 = arith.constant dense<0.000000e+00> : vector<8x512xf32>
    %134 = tpu.matmul %126, %10, %cst_56 {dimension_numbers = #tpu.dot_dimension_numbers<[1], [0], [0], [1], [0, 0, 1, 1], [], []>} : vector<8x128xf32>, vector<128x512xf32>, vector<8x512xf32> -> vector<8x512xf32>
    %135 = arith.addf %133, %134 : vector<8x512xf32>
    %136 = vector.extract_strided_slice %135 {offsets = [0, 0], sizes = [8, 128], strides = [1, 1]} : vector<8x512xf32> to vector<8x128xf32>
    %cst_57 = arith.constant 5.000000e-01 : f32
    %137 = vector.broadcast %cst_57 : f32 to vector<8x128xf32>
    %138 = arith.mulf %137, %136 : vector<8x128xf32>
    %139 = math.tanh %138 : vector<8x128xf32>
    %cst_58 = arith.constant 5.000000e-01 : f32
    %140 = vector.broadcast %cst_58 : f32 to vector<8x128xf32>
    %141 = arith.mulf %140, %139 : vector<8x128xf32>
    %cst_59 = arith.constant 5.000000e-01 : f32
    %142 = vector.broadcast %cst_59 : f32 to vector<8x128xf32>
    %143 = arith.addf %141, %142 : vector<8x128xf32>
    %144 = vector.extract_strided_slice %135 {offsets = [0, 128], sizes = [8, 128], strides = [1, 1]} : vector<8x512xf32> to vector<8x128xf32>
    %cst_60 = arith.constant 5.000000e-01 : f32
    %145 = vector.broadcast %cst_60 : f32 to vector<8x128xf32>
    %146 = arith.mulf %145, %144 : vector<8x128xf32>
    %147 = math.tanh %146 : vector<8x128xf32>
    %cst_61 = arith.constant 5.000000e-01 : f32
    %148 = vector.broadcast %cst_61 : f32 to vector<8x128xf32>
    %149 = arith.mulf %148, %147 : vector<8x128xf32>
    %cst_62 = arith.constant 5.000000e-01 : f32
    %150 = vector.broadcast %cst_62 : f32 to vector<8x128xf32>
    %151 = arith.addf %149, %150 : vector<8x128xf32>
    %152 = vector.extract_strided_slice %135 {offsets = [0, 256], sizes = [8, 128], strides = [1, 1]} : vector<8x512xf32> to vector<8x128xf32>
    %153 = math.tanh %152 : vector<8x128xf32>
    %154 = vector.extract_strided_slice %135 {offsets = [0, 384], sizes = [8, 128], strides = [1, 1]} : vector<8x512xf32> to vector<8x128xf32>
    %cst_63 = arith.constant 5.000000e-01 : f32
    %155 = vector.broadcast %cst_63 : f32 to vector<8x128xf32>
    %156 = arith.mulf %155, %154 : vector<8x128xf32>
    %157 = math.tanh %156 : vector<8x128xf32>
    %cst_64 = arith.constant 5.000000e-01 : f32
    %158 = vector.broadcast %cst_64 : f32 to vector<8x128xf32>
    %159 = arith.mulf %158, %157 : vector<8x128xf32>
    %cst_65 = arith.constant 5.000000e-01 : f32
    %160 = vector.broadcast %cst_65 : f32 to vector<8x128xf32>
    %161 = arith.addf %159, %160 : vector<8x128xf32>
    %162 = arith.mulf %151, %124 : vector<8x128xf32>
    %163 = arith.mulf %143, %153 : vector<8x128xf32>
    %164 = arith.addf %162, %163 : vector<8x128xf32>
    %165 = math.tanh %164 : vector<8x128xf32>
    %166 = arith.mulf %161, %165 : vector<8x128xf32>
    %167 = arith.index_cast %c3_i32 : i32 to index
    %c0_66 = arith.constant 0 : index
    %c0_67 = arith.constant 0 : index
    %168 = vector.load %arg10[%167, %c0_66, %c0_67] : memref<8x8x128xf32, #tpu.memory_space<vmem>>, vector<1x8x128xf32>
    %169 = vector.shape_cast %168 : vector<1x8x128xf32> to vector<8x128xf32>
    %170 = vector.shape_cast %166 : vector<8x128xf32> to vector<1x8x128xf32>
    tpu.vector_store %arg10[%167, %c0_66, %c0_67], %170 {strides = array<i32>} : memref<8x8x128xf32, #tpu.memory_space<vmem>>, vector<1x8x128xf32>,
    %c4_i32 = arith.constant 4 : i32
    %171 = arith.index_cast %c4_i32 : i32 to index
    %c0_68 = arith.constant 0 : index
    %c0_69 = arith.constant 0 : index
    %172 = vector.load %arg11[%171, %c0_68, %c0_69] : memref<8x8x512xf32, #tpu.memory_space<vmem>>, vector<1x8x512xf32>
    %173 = vector.shape_cast %172 : vector<1x8x512xf32> to vector<8x512xf32>
    %cst_70 = arith.constant dense<0.000000e+00> : vector<8x512xf32>
    %174 = tpu.matmul %166, %10, %cst_70 {dimension_numbers = #tpu.dot_dimension_numbers<[1], [0], [0], [1], [0, 0, 1, 1], [], []>} : vector<8x128xf32>, vector<128x512xf32>, vector<8x512xf32> -> vector<8x512xf32>
    %175 = arith.addf %173, %174 : vector<8x512xf32>
    %176 = vector.extract_strided_slice %175 {offsets = [0, 0], sizes = [8, 128], strides = [1, 1]} : vector<8x512xf32> to vector<8x128xf32>
    %cst_71 = arith.constant 5.000000e-01 : f32
    %177 = vector.broadcast %cst_71 : f32 to vector<8x128xf32>
    %178 = arith.mulf %177, %176 : vector<8x128xf32>
    %179 = math.tanh %178 : vector<8x128xf32>
    %cst_72 = arith.constant 5.000000e-01 : f32
    %180 = vector.broadcast %cst_72 : f32 to vector<8x128xf32>
    %181 = arith.mulf %180, %179 : vector<8x128xf32>
    %cst_73 = arith.constant 5.000000e-01 : f32
    %182 = vector.broadcast %cst_73 : f32 to vector<8x128xf32>
    %183 = arith.addf %181, %182 : vector<8x128xf32>
    %184 = vector.extract_strided_slice %175 {offsets = [0, 128], sizes = [8, 128], strides = [1, 1]} : vector<8x512xf32> to vector<8x128xf32>
    %cst_74 = arith.constant 5.000000e-01 : f32
    %185 = vector.broadcast %cst_74 : f32 to vector<8x128xf32>
    %186 = arith.mulf %185, %184 : vector<8x128xf32>
    %187 = math.tanh %186 : vector<8x128xf32>
    %cst_75 = arith.constant 5.000000e-01 : f32
    %188 = vector.broadcast %cst_75 : f32 to vector<8x128xf32>
    %189 = arith.mulf %188, %187 : vector<8x128xf32>
    %cst_76 = arith.constant 5.000000e-01 : f32
    %190 = vector.broadcast %cst_76 : f32 to vector<8x128xf32>
    %191 = arith.addf %189, %190 : vector<8x128xf32>
    %192 = vector.extract_strided_slice %175 {offsets = [0, 256], sizes = [8, 128], strides = [1, 1]} : vector<8x512xf32> to vector<8x128xf32>
    %193 = math.tanh %192 : vector<8x128xf32>
    %194 = vector.extract_strided_slice %175 {offsets = [0, 384], sizes = [8, 128], strides = [1, 1]} : vector<8x512xf32> to vector<8x128xf32>
    %cst_77 = arith.constant 5.000000e-01 : f32
    %195 = vector.broadcast %cst_77 : f32 to vector<8x128xf32>
    %196 = arith.mulf %195, %194 : vector<8x128xf32>
    %197 = math.tanh %196 : vector<8x128xf32>
    %cst_78 = arith.constant 5.000000e-01 : f32
    %198 = vector.broadcast %cst_78 : f32 to vector<8x128xf32>
    %199 = arith.mulf %198, %197 : vector<8x128xf32>
    %cst_79 = arith.constant 5.000000e-01 : f32
    %200 = vector.broadcast %cst_79 : f32 to vector<8x128xf32>
    %201 = arith.addf %199, %200 : vector<8x128xf32>
    %202 = arith.mulf %191, %164 : vector<8x128xf32>
    %203 = arith.mulf %183, %193 : vector<8x128xf32>
    %204 = arith.addf %202, %203 : vector<8x128xf32>
    %205 = math.tanh %204 : vector<8x128xf32>
    %206 = arith.mulf %201, %205 : vector<8x128xf32>
    %207 = arith.index_cast %c4_i32 : i32 to index
    %c0_80 = arith.constant 0 : index
    %c0_81 = arith.constant 0 : index
    %208 = vector.load %arg10[%207, %c0_80, %c0_81] : memref<8x8x128xf32, #tpu.memory_space<vmem>>, vector<1x8x128xf32>
    %209 = vector.shape_cast %208 : vector<1x8x128xf32> to vector<8x128xf32>
    %210 = vector.shape_cast %206 : vector<8x128xf32> to vector<1x8x128xf32>
    tpu.vector_store %arg10[%207, %c0_80, %c0_81], %210 {strides = array<i32>} : memref<8x8x128xf32, #tpu.memory_space<vmem>>, vector<1x8x128xf32>,
    %c5_i32 = arith.constant 5 : i32
    %211 = arith.index_cast %c5_i32 : i32 to index
    %c0_82 = arith.constant 0 : index
    %c0_83 = arith.constant 0 : index
    %212 = vector.load %arg11[%211, %c0_82, %c0_83] : memref<8x8x512xf32, #tpu.memory_space<vmem>>, vector<1x8x512xf32>
    %213 = vector.shape_cast %212 : vector<1x8x512xf32> to vector<8x512xf32>
    %cst_84 = arith.constant dense<0.000000e+00> : vector<8x512xf32>
    %214 = tpu.matmul %206, %10, %cst_84 {dimension_numbers = #tpu.dot_dimension_numbers<[1], [0], [0], [1], [0, 0, 1, 1], [], []>} : vector<8x128xf32>, vector<128x512xf32>, vector<8x512xf32> -> vector<8x512xf32>
    %215 = arith.addf %213, %214 : vector<8x512xf32>
    %216 = vector.extract_strided_slice %215 {offsets = [0, 0], sizes = [8, 128], strides = [1, 1]} : vector<8x512xf32> to vector<8x128xf32>
    %cst_85 = arith.constant 5.000000e-01 : f32
    %217 = vector.broadcast %cst_85 : f32 to vector<8x128xf32>
    %218 = arith.mulf %217, %216 : vector<8x128xf32>
    %219 = math.tanh %218 : vector<8x128xf32>
    %cst_86 = arith.constant 5.000000e-01 : f32
    %220 = vector.broadcast %cst_86 : f32 to vector<8x128xf32>
    %221 = arith.mulf %220, %219 : vector<8x128xf32>
    %cst_87 = arith.constant 5.000000e-01 : f32
    %222 = vector.broadcast %cst_87 : f32 to vector<8x128xf32>
    %223 = arith.addf %221, %222 : vector<8x128xf32>
    %224 = vector.extract_strided_slice %215 {offsets = [0, 128], sizes = [8, 128], strides = [1, 1]} : vector<8x512xf32> to vector<8x128xf32>
    %cst_88 = arith.constant 5.000000e-01 : f32
    %225 = vector.broadcast %cst_88 : f32 to vector<8x128xf32>
    %226 = arith.mulf %225, %224 : vector<8x128xf32>
    %227 = math.tanh %226 : vector<8x128xf32>
    %cst_89 = arith.constant 5.000000e-01 : f32
    %228 = vector.broadcast %cst_89 : f32 to vector<8x128xf32>
    %229 = arith.mulf %228, %227 : vector<8x128xf32>
    %cst_90 = arith.constant 5.000000e-01 : f32
    %230 = vector.broadcast %cst_90 : f32 to vector<8x128xf32>
    %231 = arith.addf %229, %230 : vector<8x128xf32>
    %232 = vector.extract_strided_slice %215 {offsets = [0, 256], sizes = [8, 128], strides = [1, 1]} : vector<8x512xf32> to vector<8x128xf32>
    %233 = math.tanh %232 : vector<8x128xf32>
    %234 = vector.extract_strided_slice %215 {offsets = [0, 384], sizes = [8, 128], strides = [1, 1]} : vector<8x512xf32> to vector<8x128xf32>
    %cst_91 = arith.constant 5.000000e-01 : f32
    %235 = vector.broadcast %cst_91 : f32 to vector<8x128xf32>
    %236 = arith.mulf %235, %234 : vector<8x128xf32>
    %237 = math.tanh %236 : vector<8x128xf32>
    %cst_92 = arith.constant 5.000000e-01 : f32
    %238 = vector.broadcast %cst_92 : f32 to vector<8x128xf32>
    %239 = arith.mulf %238, %237 : vector<8x128xf32>
    %cst_93 = arith.constant 5.000000e-01 : f32
    %240 = vector.broadcast %cst_93 : f32 to vector<8x128xf32>
    %241 = arith.addf %239, %240 : vector<8x128xf32>
    %242 = arith.mulf %231, %204 : vector<8x128xf32>
    %243 = arith.mulf %223, %233 : vector<8x128xf32>
    %244 = arith.addf %242, %243 : vector<8x128xf32>
    %245 = math.tanh %244 : vector<8x128xf32>
    %246 = arith.mulf %241, %245 : vector<8x128xf32>
    %247 = arith.index_cast %c5_i32 : i32 to index
    %c0_94 = arith.constant 0 : index
    %c0_95 = arith.constant 0 : index
    %248 = vector.load %arg10[%247, %c0_94, %c0_95] : memref<8x8x128xf32, #tpu.memory_space<vmem>>, vector<1x8x128xf32>
    %249 = vector.shape_cast %248 : vector<1x8x128xf32> to vector<8x128xf32>
    %250 = vector.shape_cast %246 : vector<8x128xf32> to vector<1x8x128xf32>
    tpu.vector_store %arg10[%247, %c0_94, %c0_95], %250 {strides = array<i32>} : memref<8x8x128xf32, #tpu.memory_space<vmem>>, vector<1x8x128xf32>,
    %c6_i32 = arith.constant 6 : i32
    %251 = arith.index_cast %c6_i32 : i32 to index
    %c0_96 = arith.constant 0 : index
    %c0_97 = arith.constant 0 : index
    %252 = vector.load %arg11[%251, %c0_96, %c0_97] : memref<8x8x512xf32, #tpu.memory_space<vmem>>, vector<1x8x512xf32>
    %253 = vector.shape_cast %252 : vector<1x8x512xf32> to vector<8x512xf32>
    %cst_98 = arith.constant dense<0.000000e+00> : vector<8x512xf32>
    %254 = tpu.matmul %246, %10, %cst_98 {dimension_numbers = #tpu.dot_dimension_numbers<[1], [0], [0], [1], [0, 0, 1, 1], [], []>} : vector<8x128xf32>, vector<128x512xf32>, vector<8x512xf32> -> vector<8x512xf32>
    %255 = arith.addf %253, %254 : vector<8x512xf32>
    %256 = vector.extract_strided_slice %255 {offsets = [0, 0], sizes = [8, 128], strides = [1, 1]} : vector<8x512xf32> to vector<8x128xf32>
    %cst_99 = arith.constant 5.000000e-01 : f32
    %257 = vector.broadcast %cst_99 : f32 to vector<8x128xf32>
    %258 = arith.mulf %257, %256 : vector<8x128xf32>
    %259 = math.tanh %258 : vector<8x128xf32>
    %cst_100 = arith.constant 5.000000e-01 : f32
    %260 = vector.broadcast %cst_100 : f32 to vector<8x128xf32>
    %261 = arith.mulf %260, %259 : vector<8x128xf32>
    %cst_101 = arith.constant 5.000000e-01 : f32
    %262 = vector.broadcast %cst_101 : f32 to vector<8x128xf32>
    %263 = arith.addf %261, %262 : vector<8x128xf32>
    %264 = vector.extract_strided_slice %255 {offsets = [0, 128], sizes = [8, 128], strides = [1, 1]} : vector<8x512xf32> to vector<8x128xf32>
    %cst_102 = arith.constant 5.000000e-01 : f32
    %265 = vector.broadcast %cst_102 : f32 to vector<8x128xf32>
    %266 = arith.mulf %265, %264 : vector<8x128xf32>
    %267 = math.tanh %266 : vector<8x128xf32>
    %cst_103 = arith.constant 5.000000e-01 : f32
    %268 = vector.broadcast %cst_103 : f32 to vector<8x128xf32>
    %269 = arith.mulf %268, %267 : vector<8x128xf32>
    %cst_104 = arith.constant 5.000000e-01 : f32
    %270 = vector.broadcast %cst_104 : f32 to vector<8x128xf32>
    %271 = arith.addf %269, %270 : vector<8x128xf32>
    %272 = vector.extract_strided_slice %255 {offsets = [0, 256], sizes = [8, 128], strides = [1, 1]} : vector<8x512xf32> to vector<8x128xf32>
    %273 = math.tanh %272 : vector<8x128xf32>
    %274 = vector.extract_strided_slice %255 {offsets = [0, 384], sizes = [8, 128], strides = [1, 1]} : vector<8x512xf32> to vector<8x128xf32>
    %cst_105 = arith.constant 5.000000e-01 : f32
    %275 = vector.broadcast %cst_105 : f32 to vector<8x128xf32>
    %276 = arith.mulf %275, %274 : vector<8x128xf32>
    %277 = math.tanh %276 : vector<8x128xf32>
    %cst_106 = arith.constant 5.000000e-01 : f32
    %278 = vector.broadcast %cst_106 : f32 to vector<8x128xf32>
    %279 = arith.mulf %278, %277 : vector<8x128xf32>
    %cst_107 = arith.constant 5.000000e-01 : f32
    %280 = vector.broadcast %cst_107 : f32 to vector<8x128xf32>
    %281 = arith.addf %279, %280 : vector<8x128xf32>
    %282 = arith.mulf %271, %244 : vector<8x128xf32>
    %283 = arith.mulf %263, %273 : vector<8x128xf32>
    %284 = arith.addf %282, %283 : vector<8x128xf32>
    %285 = math.tanh %284 : vector<8x128xf32>
    %286 = arith.mulf %281, %285 : vector<8x128xf32>
    %287 = arith.index_cast %c6_i32 : i32 to index
    %c0_108 = arith.constant 0 : index
    %c0_109 = arith.constant 0 : index
    %288 = vector.load %arg10[%287, %c0_108, %c0_109] : memref<8x8x128xf32, #tpu.memory_space<vmem>>, vector<1x8x128xf32>
    %289 = vector.shape_cast %288 : vector<1x8x128xf32> to vector<8x128xf32>
    %290 = vector.shape_cast %286 : vector<8x128xf32> to vector<1x8x128xf32>
    tpu.vector_store %arg10[%287, %c0_108, %c0_109], %290 {strides = array<i32>} : memref<8x8x128xf32, #tpu.memory_space<vmem>>, vector<1x8x128xf32>,
    %c7_i32 = arith.constant 7 : i32
    %291 = arith.index_cast %c7_i32 : i32 to index
    %c0_110 = arith.constant 0 : index
    %c0_111 = arith.constant 0 : index
    %292 = vector.load %arg11[%291, %c0_110, %c0_111] : memref<8x8x512xf32, #tpu.memory_space<vmem>>, vector<1x8x512xf32>
    %293 = vector.shape_cast %292 : vector<1x8x512xf32> to vector<8x512xf32>
    %cst_112 = arith.constant dense<0.000000e+00> : vector<8x512xf32>
    %294 = tpu.matmul %286, %10, %cst_112 {dimension_numbers = #tpu.dot_dimension_numbers<[1], [0], [0], [1], [0, 0, 1, 1], [], []>} : vector<8x128xf32>, vector<128x512xf32>, vector<8x512xf32> -> vector<8x512xf32>
    %295 = arith.addf %293, %294 : vector<8x512xf32>
    %296 = vector.extract_strided_slice %295 {offsets = [0, 0], sizes = [8, 128], strides = [1, 1]} : vector<8x512xf32> to vector<8x128xf32>
    %cst_113 = arith.constant 5.000000e-01 : f32
    %297 = vector.broadcast %cst_113 : f32 to vector<8x128xf32>
    %298 = arith.mulf %297, %296 : vector<8x128xf32>
    %299 = math.tanh %298 : vector<8x128xf32>
    %cst_114 = arith.constant 5.000000e-01 : f32
    %300 = vector.broadcast %cst_114 : f32 to vector<8x128xf32>
    %301 = arith.mulf %300, %299 : vector<8x128xf32>
    %cst_115 = arith.constant 5.000000e-01 : f32
    %302 = vector.broadcast %cst_115 : f32 to vector<8x128xf32>
    %303 = arith.addf %301, %302 : vector<8x128xf32>
    %304 = vector.extract_strided_slice %295 {offsets = [0, 128], sizes = [8, 128], strides = [1, 1]} : vector<8x512xf32> to vector<8x128xf32>
    %cst_116 = arith.constant 5.000000e-01 : f32
    %305 = vector.broadcast %cst_116 : f32 to vector<8x128xf32>
    %306 = arith.mulf %305, %304 : vector<8x128xf32>
    %307 = math.tanh %306 : vector<8x128xf32>
    %cst_117 = arith.constant 5.000000e-01 : f32
    %308 = vector.broadcast %cst_117 : f32 to vector<8x128xf32>
    %309 = arith.mulf %308, %307 : vector<8x128xf32>
    %cst_118 = arith.constant 5.000000e-01 : f32
    %310 = vector.broadcast %cst_118 : f32 to vector<8x128xf32>
    %311 = arith.addf %309, %310 : vector<8x128xf32>
    %312 = vector.extract_strided_slice %295 {offsets = [0, 256], sizes = [8, 128], strides = [1, 1]} : vector<8x512xf32> to vector<8x128xf32>
    %313 = math.tanh %312 : vector<8x128xf32>
    %314 = vector.extract_strided_slice %295 {offsets = [0, 384], sizes = [8, 128], strides = [1, 1]} : vector<8x512xf32> to vector<8x128xf32>
    %cst_119 = arith.constant 5.000000e-01 : f32
    %315 = vector.broadcast %cst_119 : f32 to vector<8x128xf32>
    %316 = arith.mulf %315, %314 : vector<8x128xf32>
    %317 = math.tanh %316 : vector<8x128xf32>
    %cst_120 = arith.constant 5.000000e-01 : f32
    %318 = vector.broadcast %cst_120 : f32 to vector<8x128xf32>
    %319 = arith.mulf %318, %317 : vector<8x128xf32>
    %cst_121 = arith.constant 5.000000e-01 : f32
    %320 = vector.broadcast %cst_121 : f32 to vector<8x128xf32>
    %321 = arith.addf %319, %320 : vector<8x128xf32>
    %322 = arith.mulf %311, %284 : vector<8x128xf32>
    %323 = arith.mulf %303, %313 : vector<8x128xf32>
    %324 = arith.addf %322, %323 : vector<8x128xf32>
    %325 = math.tanh %324 : vector<8x128xf32>
    %326 = arith.mulf %321, %325 : vector<8x128xf32>
    %327 = arith.index_cast %c7_i32 : i32 to index
    %c0_122 = arith.constant 0 : index
    %c0_123 = arith.constant 0 : index
    %328 = vector.load %arg10[%327, %c0_122, %c0_123] : memref<8x8x128xf32, #tpu.memory_space<vmem>>, vector<1x8x128xf32>
    %329 = vector.shape_cast %328 : vector<1x8x128xf32> to vector<8x128xf32>
    %330 = vector.shape_cast %326 : vector<8x128xf32> to vector<1x8x128xf32>
    tpu.vector_store %arg10[%327, %c0_122, %c0_123], %330 {strides = array<i32>} : memref<8x8x128xf32, #tpu.memory_space<vmem>>, vector<1x8x128xf32>,
    %c8_i32 = arith.constant 8 : i32
    %c0_124 = arith.constant 0 : index
    %c0_125 = arith.constant 0 : index
    %c0_126 = arith.constant 0 : index
    %331 = vector.load %arg8[%c0_124, %c0_125, %c0_126] : memref<2x8x128xf32, #tpu.memory_space<vmem>>, vector<1x8x128xf32>
    %332 = vector.shape_cast %331 : vector<1x8x128xf32> to vector<8x128xf32>
    %333 = vector.shape_cast %326 : vector<8x128xf32> to vector<1x8x128xf32>
    tpu.vector_store %arg8[%c0_124, %c0_125, %c0_126], %333 {strides = array<i32>} : memref<2x8x128xf32, #tpu.memory_space<vmem>>, vector<1x8x128xf32>,
    %c0_127 = arith.constant 0 : index
    %c0_128 = arith.constant 0 : index
    %c0_129 = arith.constant 0 : index
    %334 = vector.load %arg9[%c0_127, %c0_128, %c0_129] : memref<2x8x128xf32, #tpu.memory_space<vmem>>, vector<1x8x128xf32>
    %335 = vector.shape_cast %334 : vector<1x8x128xf32> to vector<8x128xf32>
    %336 = vector.shape_cast %324 : vector<8x128xf32> to vector<1x8x128xf32>
    tpu.vector_store %arg9[%c0_127, %c0_128, %c0_129], %336 {strides = array<i32>} : memref<2x8x128xf32, #tpu.memory_space<vmem>>, vector<1x8x128xf32>,
    %c0_130 = arith.constant 0 : index
    %c0_131 = arith.constant 0 : index
    %c0_132 = arith.constant 0 : index
    %337 = vector.load %arg10[%c0_130, %c0_131, %c0_132] : memref<8x8x128xf32, #tpu.memory_space<vmem>>, vector<8x8x128xf32>
    %338 = vector.shape_cast %337 : vector<8x8x128xf32> to vector<64x128xf32>
    %c0_133 = arith.constant 0 : index
    %c0_134 = arith.constant 0 : index
    %339 = vector.load %arg5[%c0_133, %c0_134] : memref<128x512xf32, #tpu.memory_space<vmem>>, vector<128x512xf32>
    %cst_135 = arith.constant dense<0.000000e+00> : vector<64x512xf32>
    %340 = tpu.matmul %338, %339, %cst_135 {dimension_numbers = #tpu.dot_dimension_numbers<[1], [0], [0], [1], [0, 0, 1, 1], [], []>} : vector<64x128xf32>, vector<128x512xf32>, vector<64x512xf32> -> vector<64x512xf32>
    %c0_136 = arith.constant 0 : index
    %c0_137 = arith.constant 0 : index
    %341 = vector.load %arg7[%c0_136, %c0_137] : memref<1x512xf32, #tpu.memory_space<vmem>>, vector<1x512xf32>
    %342 = vector.broadcast %341 : vector<1x512xf32> to vector<64x512xf32>
    %343 = arith.addf %340, %342 : vector<64x512xf32>
    %344 = vector.shape_cast %343 : vector<64x512xf32> to vector<8x8x512xf32>
    %c0_138 = arith.constant 0 : index
    %c0_139 = arith.constant 0 : index
    %c0_140 = arith.constant 0 : index
    %345 = vector.load %arg11[%c0_138, %c0_139, %c0_140] : memref<8x8x512xf32, #tpu.memory_space<vmem>>, vector<8x8x512xf32>
    tpu.vector_store %arg11[%c0_138, %c0_139, %c0_140], %344 {strides = array<i32>} : memref<8x8x512xf32, #tpu.memory_space<vmem>>, vector<8x8x512xf32>,
    %c0_141 = arith.constant 0 : index
    %c0_142 = arith.constant 0 : index
    %346 = vector.load %arg6[%c0_141, %c0_142] : memref<128x512xf32, #tpu.memory_space<vmem>>, vector<128x512xf32>
    %c0_i32_143 = arith.constant 0 : i32
    %347 = arith.index_cast %c0_i32_143 : i32 to index
    %c0_144 = arith.constant 0 : index
    %c0_145 = arith.constant 0 : index
    %348 = vector.load %arg11[%347, %c0_144, %c0_145] : memref<8x8x512xf32, #tpu.memory_space<vmem>>, vector<1x8x512xf32>
    %349 = vector.shape_cast %348 : vector<1x8x512xf32> to vector<8x512xf32>
    %cst_146 = arith.constant dense<0.000000e+00> : vector<8x512xf32>
    %350 = tpu.matmul %0, %346, %cst_146 {dimension_numbers = #tpu.dot_dimension_numbers<[1], [0], [0], [1], [0, 0, 1, 1], [], []>} : vector<8x128xf32>, vector<128x512xf32>, vector<8x512xf32> -> vector<8x512xf32>
    %351 = arith.addf %349, %350 : vector<8x512xf32>
    %352 = vector.extract_strided_slice %351 {offsets = [0, 0], sizes = [8, 128], strides = [1, 1]} : vector<8x512xf32> to vector<8x128xf32>
    %cst_147 = arith.constant 5.000000e-01 : f32
    %353 = vector.broadcast %cst_147 : f32 to vector<8x128xf32>
    %354 = arith.mulf %353, %352 : vector<8x128xf32>
    %355 = math.tanh %354 : vector<8x128xf32>
    %cst_148 = arith.constant 5.000000e-01 : f32
    %356 = vector.broadcast %cst_148 : f32 to vector<8x128xf32>
    %357 = arith.mulf %356, %355 : vector<8x128xf32>
    %cst_149 = arith.constant 5.000000e-01 : f32
    %358 = vector.broadcast %cst_149 : f32 to vector<8x128xf32>
    %359 = arith.addf %357, %358 : vector<8x128xf32>
    %360 = vector.extract_strided_slice %351 {offsets = [0, 128], sizes = [8, 128], strides = [1, 1]} : vector<8x512xf32> to vector<8x128xf32>
    %cst_150 = arith.constant 5.000000e-01 : f32
    %361 = vector.broadcast %cst_150 : f32 to vector<8x128xf32>
    %362 = arith.mulf %361, %360 : vector<8x128xf32>
    %363 = math.tanh %362 : vector<8x128xf32>
    %cst_151 = arith.constant 5.000000e-01 : f32
    %364 = vector.broadcast %cst_151 : f32 to vector<8x128xf32>
    %365 = arith.mulf %364, %363 : vector<8x128xf32>
    %cst_152 = arith.constant 5.000000e-01 : f32
    %366 = vector.broadcast %cst_152 : f32 to vector<8x128xf32>
    %367 = arith.addf %365, %366 : vector<8x128xf32>
    %368 = vector.extract_strided_slice %351 {offsets = [0, 256], sizes = [8, 128], strides = [1, 1]} : vector<8x512xf32> to vector<8x128xf32>
    %369 = math.tanh %368 : vector<8x128xf32>
    %370 = vector.extract_strided_slice %351 {offsets = [0, 384], sizes = [8, 128], strides = [1, 1]} : vector<8x512xf32> to vector<8x128xf32>
    %cst_153 = arith.constant 5.000000e-01 : f32
    %371 = vector.broadcast %cst_153 : f32 to vector<8x128xf32>
    %372 = arith.mulf %371, %370 : vector<8x128xf32>
    %373 = math.tanh %372 : vector<8x128xf32>
    %cst_154 = arith.constant 5.000000e-01 : f32
    %374 = vector.broadcast %cst_154 : f32 to vector<8x128xf32>
    %375 = arith.mulf %374, %373 : vector<8x128xf32>
    %cst_155 = arith.constant 5.000000e-01 : f32
    %376 = vector.broadcast %cst_155 : f32 to vector<8x128xf32>
    %377 = arith.addf %375, %376 : vector<8x128xf32>
    %378 = arith.mulf %367, %0 : vector<8x128xf32>
    %379 = arith.mulf %359, %369 : vector<8x128xf32>
    %380 = arith.addf %378, %379 : vector<8x128xf32>
    %381 = math.tanh %380 : vector<8x128xf32>
    %382 = arith.mulf %377, %381 : vector<8x128xf32>
    %c1_i32_156 = arith.constant 1 : i32
    %383 = arith.index_cast %c1_i32_156 : i32 to index
    %c0_157 = arith.constant 0 : index
    %c0_158 = arith.constant 0 : index
    %384 = vector.load %arg11[%383, %c0_157, %c0_158] : memref<8x8x512xf32, #tpu.memory_space<vmem>>, vector<1x8x512xf32>
    %385 = vector.shape_cast %384 : vector<1x8x512xf32> to vector<8x512xf32>
    %cst_159 = arith.constant dense<0.000000e+00> : vector<8x512xf32>
    %386 = tpu.matmul %382, %346, %cst_159 {dimension_numbers = #tpu.dot_dimension_numbers<[1], [0], [0], [1], [0, 0, 1, 1], [], []>} : vector<8x128xf32>, vector<128x512xf32>, vector<8x512xf32> -> vector<8x512xf32>
    %387 = arith.addf %385, %386 : vector<8x512xf32>
    %388 = vector.extract_strided_slice %387 {offsets = [0, 0], sizes = [8, 128], strides = [1, 1]} : vector<8x512xf32> to vector<8x128xf32>
    %cst_160 = arith.constant 5.000000e-01 : f32
    %389 = vector.broadcast %cst_160 : f32 to vector<8x128xf32>
    %390 = arith.mulf %389, %388 : vector<8x128xf32>
    %391 = math.tanh %390 : vector<8x128xf32>
    %cst_161 = arith.constant 5.000000e-01 : f32
    %392 = vector.broadcast %cst_161 : f32 to vector<8x128xf32>
    %393 = arith.mulf %392, %391 : vector<8x128xf32>
    %cst_162 = arith.constant 5.000000e-01 : f32
    %394 = vector.broadcast %cst_162 : f32 to vector<8x128xf32>
    %395 = arith.addf %393, %394 : vector<8x128xf32>
    %396 = vector.extract_strided_slice %387 {offsets = [0, 128], sizes = [8, 128], strides = [1, 1]} : vector<8x512xf32> to vector<8x128xf32>
    %cst_163 = arith.constant 5.000000e-01 : f32
    %397 = vector.broadcast %cst_163 : f32 to vector<8x128xf32>
    %398 = arith.mulf %397, %396 : vector<8x128xf32>
    %399 = math.tanh %398 : vector<8x128xf32>
    %cst_164 = arith.constant 5.000000e-01 : f32
    %400 = vector.broadcast %cst_164 : f32 to vector<8x128xf32>
    %401 = arith.mulf %400, %399 : vector<8x128xf32>
    %cst_165 = arith.constant 5.000000e-01 : f32
    %402 = vector.broadcast %cst_165 : f32 to vector<8x128xf32>
    %403 = arith.addf %401, %402 : vector<8x128xf32>
    %404 = vector.extract_strided_slice %387 {offsets = [0, 256], sizes = [8, 128], strides = [1, 1]} : vector<8x512xf32> to vector<8x128xf32>
    %405 = math.tanh %404 : vector<8x128xf32>
    %406 = vector.extract_strided_slice %387 {offsets = [0, 384], sizes = [8, 128], strides = [1, 1]} : vector<8x512xf32> to vector<8x128xf32>
    %cst_166 = arith.constant 5.000000e-01 : f32
    %407 = vector.broadcast %cst_166 : f32 to vector<8x128xf32>
    %408 = arith.mulf %407, %406 : vector<8x128xf32>
    %409 = math.tanh %408 : vector<8x128xf32>
    %cst_167 = arith.constant 5.000000e-01 : f32
    %410 = vector.broadcast %cst_167 : f32 to vector<8x128xf32>
    %411 = arith.mulf %410, %409 : vector<8x128xf32>
    %cst_168 = arith.constant 5.000000e-01 : f32
    %412 = vector.broadcast %cst_168 : f32 to vector<8x128xf32>
    %413 = arith.addf %411, %412 : vector<8x128xf32>
    %414 = arith.mulf %403, %380 : vector<8x128xf32>
    %415 = arith.mulf %395, %405 : vector<8x128xf32>
    %416 = arith.addf %414, %415 : vector<8x128xf32>
    %417 = math.tanh %416 : vector<8x128xf32>
    %418 = arith.mulf %413, %417 : vector<8x128xf32>
    %c2_i32_169 = arith.constant 2 : i32
    %419 = arith.index_cast %c2_i32_169 : i32 to index
    %c0_170 = arith.constant 0 : index
    %c0_171 = arith.constant 0 : index
    %420 = vector.load %arg11[%419, %c0_170, %c0_171] : memref<8x8x512xf32, #tpu.memory_space<vmem>>, vector<1x8x512xf32>
    %421 = vector.shape_cast %420 : vector<1x8x512xf32> to vector<8x512xf32>
    %cst_172 = arith.constant dense<0.000000e+00> : vector<8x512xf32>
    %422 = tpu.matmul %418, %346, %cst_172 {dimension_numbers = #tpu.dot_dimension_numbers<[1], [0], [0], [1], [0, 0, 1, 1], [], []>} : vector<8x128xf32>, vector<128x512xf32>, vector<8x512xf32> -> vector<8x512xf32>
    %423 = arith.addf %421, %422 : vector<8x512xf32>
    %424 = vector.extract_strided_slice %423 {offsets = [0, 0], sizes = [8, 128], strides = [1, 1]} : vector<8x512xf32> to vector<8x128xf32>
    %cst_173 = arith.constant 5.000000e-01 : f32
    %425 = vector.broadcast %cst_173 : f32 to vector<8x128xf32>
    %426 = arith.mulf %425, %424 : vector<8x128xf32>
    %427 = math.tanh %426 : vector<8x128xf32>
    %cst_174 = arith.constant 5.000000e-01 : f32
    %428 = vector.broadcast %cst_174 : f32 to vector<8x128xf32>
    %429 = arith.mulf %428, %427 : vector<8x128xf32>
    %cst_175 = arith.constant 5.000000e-01 : f32
    %430 = vector.broadcast %cst_175 : f32 to vector<8x128xf32>
    %431 = arith.addf %429, %430 : vector<8x128xf32>
    %432 = vector.extract_strided_slice %423 {offsets = [0, 128], sizes = [8, 128], strides = [1, 1]} : vector<8x512xf32> to vector<8x128xf32>
    %cst_176 = arith.constant 5.000000e-01 : f32
    %433 = vector.broadcast %cst_176 : f32 to vector<8x128xf32>
    %434 = arith.mulf %433, %432 : vector<8x128xf32>
    %435 = math.tanh %434 : vector<8x128xf32>
    %cst_177 = arith.constant 5.000000e-01 : f32
    %436 = vector.broadcast %cst_177 : f32 to vector<8x128xf32>
    %437 = arith.mulf %436, %435 : vector<8x128xf32>
    %cst_178 = arith.constant 5.000000e-01 : f32
    %438 = vector.broadcast %cst_178 : f32 to vector<8x128xf32>
    %439 = arith.addf %437, %438 : vector<8x128xf32>
    %440 = vector.extract_strided_slice %423 {offsets = [0, 256], sizes = [8, 128], strides = [1, 1]} : vector<8x512xf32> to vector<8x128xf32>
    %441 = math.tanh %440 : vector<8x128xf32>
    %442 = vector.extract_strided_slice %423 {offsets = [0, 384], sizes = [8, 128], strides = [1, 1]} : vector<8x512xf32> to vector<8x128xf32>
    %cst_179 = arith.constant 5.000000e-01 : f32
    %443 = vector.broadcast %cst_179 : f32 to vector<8x128xf32>
    %444 = arith.mulf %443, %442 : vector<8x128xf32>
    %445 = math.tanh %444 : vector<8x128xf32>
    %cst_180 = arith.constant 5.000000e-01 : f32
    %446 = vector.broadcast %cst_180 : f32 to vector<8x128xf32>
    %447 = arith.mulf %446, %445 : vector<8x128xf32>
    %cst_181 = arith.constant 5.000000e-01 : f32
    %448 = vector.broadcast %cst_181 : f32 to vector<8x128xf32>
    %449 = arith.addf %447, %448 : vector<8x128xf32>
    %450 = arith.mulf %439, %416 : vector<8x128xf32>
    %451 = arith.mulf %431, %441 : vector<8x128xf32>
    %452 = arith.addf %450, %451 : vector<8x128xf32>
    %453 = math.tanh %452 : vector<8x128xf32>
    %454 = arith.mulf %449, %453 : vector<8x128xf32>
    %c3_i32_182 = arith.constant 3 : i32
    %455 = arith.index_cast %c3_i32_182 : i32 to index
    %c0_183 = arith.constant 0 : index
    %c0_184 = arith.constant 0 : index
    %456 = vector.load %arg11[%455, %c0_183, %c0_184] : memref<8x8x512xf32, #tpu.memory_space<vmem>>, vector<1x8x512xf32>
    %457 = vector.shape_cast %456 : vector<1x8x512xf32> to vector<8x512xf32>
    %cst_185 = arith.constant dense<0.000000e+00> : vector<8x512xf32>
    %458 = tpu.matmul %454, %346, %cst_185 {dimension_numbers = #tpu.dot_dimension_numbers<[1], [0], [0], [1], [0, 0, 1, 1], [], []>} : vector<8x128xf32>, vector<128x512xf32>, vector<8x512xf32> -> vector<8x512xf32>
    %459 = arith.addf %457, %458 : vector<8x512xf32>
    %460 = vector.extract_strided_slice %459 {offsets = [0, 0], sizes = [8, 128], strides = [1, 1]} : vector<8x512xf32> to vector<8x128xf32>
    %cst_186 = arith.constant 5.000000e-01 : f32
    %461 = vector.broadcast %cst_186 : f32 to vector<8x128xf32>
    %462 = arith.mulf %461, %460 : vector<8x128xf32>
    %463 = math.tanh %462 : vector<8x128xf32>
    %cst_187 = arith.constant 5.000000e-01 : f32
    %464 = vector.broadcast %cst_187 : f32 to vector<8x128xf32>
    %465 = arith.mulf %464, %463 : vector<8x128xf32>
    %cst_188 = arith.constant 5.000000e-01 : f32
    %466 = vector.broadcast %cst_188 : f32 to vector<8x128xf32>
    %467 = arith.addf %465, %466 : vector<8x128xf32>
    %468 = vector.extract_strided_slice %459 {offsets = [0, 128], sizes = [8, 128], strides = [1, 1]} : vector<8x512xf32> to vector<8x128xf32>
    %cst_189 = arith.constant 5.000000e-01 : f32
    %469 = vector.broadcast %cst_189 : f32 to vector<8x128xf32>
    %470 = arith.mulf %469, %468 : vector<8x128xf32>
    %471 = math.tanh %470 : vector<8x128xf32>
    %cst_190 = arith.constant 5.000000e-01 : f32
    %472 = vector.broadcast %cst_190 : f32 to vector<8x128xf32>
    %473 = arith.mulf %472, %471 : vector<8x128xf32>
    %cst_191 = arith.constant 5.000000e-01 : f32
    %474 = vector.broadcast %cst_191 : f32 to vector<8x128xf32>
    %475 = arith.addf %473, %474 : vector<8x128xf32>
    %476 = vector.extract_strided_slice %459 {offsets = [0, 256], sizes = [8, 128], strides = [1, 1]} : vector<8x512xf32> to vector<8x128xf32>
    %477 = math.tanh %476 : vector<8x128xf32>
    %478 = vector.extract_strided_slice %459 {offsets = [0, 384], sizes = [8, 128], strides = [1, 1]} : vector<8x512xf32> to vector<8x128xf32>
    %cst_192 = arith.constant 5.000000e-01 : f32
    %479 = vector.broadcast %cst_192 : f32 to vector<8x128xf32>
    %480 = arith.mulf %479, %478 : vector<8x128xf32>
    %481 = math.tanh %480 : vector<8x128xf32>
    %cst_193 = arith.constant 5.000000e-01 : f32
    %482 = vector.broadcast %cst_193 : f32 to vector<8x128xf32>
    %483 = arith.mulf %482, %481 : vector<8x128xf32>
    %cst_194 = arith.constant 5.000000e-01 : f32
    %484 = vector.broadcast %cst_194 : f32 to vector<8x128xf32>
    %485 = arith.addf %483, %484 : vector<8x128xf32>
    %486 = arith.mulf %475, %452 : vector<8x128xf32>
    %487 = arith.mulf %467, %477 : vector<8x128xf32>
    %488 = arith.addf %486, %487 : vector<8x128xf32>
    %489 = math.tanh %488 : vector<8x128xf32>
    %490 = arith.mulf %485, %489 : vector<8x128xf32>
    %c4_i32_195 = arith.constant 4 : i32
    %491 = arith.index_cast %c4_i32_195 : i32 to index
    %c0_196 = arith.constant 0 : index
    %c0_197 = arith.constant 0 : index
    %492 = vector.load %arg11[%491, %c0_196, %c0_197] : memref<8x8x512xf32, #tpu.memory_space<vmem>>, vector<1x8x512xf32>
    %493 = vector.shape_cast %492 : vector<1x8x512xf32> to vector<8x512xf32>
    %cst_198 = arith.constant dense<0.000000e+00> : vector<8x512xf32>
    %494 = tpu.matmul %490, %346, %cst_198 {dimension_numbers = #tpu.dot_dimension_numbers<[1], [0], [0], [1], [0, 0, 1, 1], [], []>} : vector<8x128xf32>, vector<128x512xf32>, vector<8x512xf32> -> vector<8x512xf32>
    %495 = arith.addf %493, %494 : vector<8x512xf32>
    %496 = vector.extract_strided_slice %495 {offsets = [0, 0], sizes = [8, 128], strides = [1, 1]} : vector<8x512xf32> to vector<8x128xf32>
    %cst_199 = arith.constant 5.000000e-01 : f32
    %497 = vector.broadcast %cst_199 : f32 to vector<8x128xf32>
    %498 = arith.mulf %497, %496 : vector<8x128xf32>
    %499 = math.tanh %498 : vector<8x128xf32>
    %cst_200 = arith.constant 5.000000e-01 : f32
    %500 = vector.broadcast %cst_200 : f32 to vector<8x128xf32>
    %501 = arith.mulf %500, %499 : vector<8x128xf32>
    %cst_201 = arith.constant 5.000000e-01 : f32
    %502 = vector.broadcast %cst_201 : f32 to vector<8x128xf32>
    %503 = arith.addf %501, %502 : vector<8x128xf32>
    %504 = vector.extract_strided_slice %495 {offsets = [0, 128], sizes = [8, 128], strides = [1, 1]} : vector<8x512xf32> to vector<8x128xf32>
    %cst_202 = arith.constant 5.000000e-01 : f32
    %505 = vector.broadcast %cst_202 : f32 to vector<8x128xf32>
    %506 = arith.mulf %505, %504 : vector<8x128xf32>
    %507 = math.tanh %506 : vector<8x128xf32>
    %cst_203 = arith.constant 5.000000e-01 : f32
    %508 = vector.broadcast %cst_203 : f32 to vector<8x128xf32>
    %509 = arith.mulf %508, %507 : vector<8x128xf32>
    %cst_204 = arith.constant 5.000000e-01 : f32
    %510 = vector.broadcast %cst_204 : f32 to vector<8x128xf32>
    %511 = arith.addf %509, %510 : vector<8x128xf32>
    %512 = vector.extract_strided_slice %495 {offsets = [0, 256], sizes = [8, 128], strides = [1, 1]} : vector<8x512xf32> to vector<8x128xf32>
    %513 = math.tanh %512 : vector<8x128xf32>
    %514 = vector.extract_strided_slice %495 {offsets = [0, 384], sizes = [8, 128], strides = [1, 1]} : vector<8x512xf32> to vector<8x128xf32>
    %cst_205 = arith.constant 5.000000e-01 : f32
    %515 = vector.broadcast %cst_205 : f32 to vector<8x128xf32>
    %516 = arith.mulf %515, %514 : vector<8x128xf32>
    %517 = math.tanh %516 : vector<8x128xf32>
    %cst_206 = arith.constant 5.000000e-01 : f32
    %518 = vector.broadcast %cst_206 : f32 to vector<8x128xf32>
    %519 = arith.mulf %518, %517 : vector<8x128xf32>
    %cst_207 = arith.constant 5.000000e-01 : f32
    %520 = vector.broadcast %cst_207 : f32 to vector<8x128xf32>
    %521 = arith.addf %519, %520 : vector<8x128xf32>
    %522 = arith.mulf %511, %488 : vector<8x128xf32>
    %523 = arith.mulf %503, %513 : vector<8x128xf32>
    %524 = arith.addf %522, %523 : vector<8x128xf32>
    %525 = math.tanh %524 : vector<8x128xf32>
    %526 = arith.mulf %521, %525 : vector<8x128xf32>
    %c5_i32_208 = arith.constant 5 : i32
    %527 = arith.index_cast %c5_i32_208 : i32 to index
    %c0_209 = arith.constant 0 : index
    %c0_210 = arith.constant 0 : index
    %528 = vector.load %arg11[%527, %c0_209, %c0_210] : memref<8x8x512xf32, #tpu.memory_space<vmem>>, vector<1x8x512xf32>
    %529 = vector.shape_cast %528 : vector<1x8x512xf32> to vector<8x512xf32>
    %cst_211 = arith.constant dense<0.000000e+00> : vector<8x512xf32>
    %530 = tpu.matmul %526, %346, %cst_211 {dimension_numbers = #tpu.dot_dimension_numbers<[1], [0], [0], [1], [0, 0, 1, 1], [], []>} : vector<8x128xf32>, vector<128x512xf32>, vector<8x512xf32> -> vector<8x512xf32>
    %531 = arith.addf %529, %530 : vector<8x512xf32>
    %532 = vector.extract_strided_slice %531 {offsets = [0, 0], sizes = [8, 128], strides = [1, 1]} : vector<8x512xf32> to vector<8x128xf32>
    %cst_212 = arith.constant 5.000000e-01 : f32
    %533 = vector.broadcast %cst_212 : f32 to vector<8x128xf32>
    %534 = arith.mulf %533, %532 : vector<8x128xf32>
    %535 = math.tanh %534 : vector<8x128xf32>
    %cst_213 = arith.constant 5.000000e-01 : f32
    %536 = vector.broadcast %cst_213 : f32 to vector<8x128xf32>
    %537 = arith.mulf %536, %535 : vector<8x128xf32>
    %cst_214 = arith.constant 5.000000e-01 : f32
    %538 = vector.broadcast %cst_214 : f32 to vector<8x128xf32>
    %539 = arith.addf %537, %538 : vector<8x128xf32>
    %540 = vector.extract_strided_slice %531 {offsets = [0, 128], sizes = [8, 128], strides = [1, 1]} : vector<8x512xf32> to vector<8x128xf32>
    %cst_215 = arith.constant 5.000000e-01 : f32
    %541 = vector.broadcast %cst_215 : f32 to vector<8x128xf32>
    %542 = arith.mulf %541, %540 : vector<8x128xf32>
    %543 = math.tanh %542 : vector<8x128xf32>
    %cst_216 = arith.constant 5.000000e-01 : f32
    %544 = vector.broadcast %cst_216 : f32 to vector<8x128xf32>
    %545 = arith.mulf %544, %543 : vector<8x128xf32>
    %cst_217 = arith.constant 5.000000e-01 : f32
    %546 = vector.broadcast %cst_217 : f32 to vector<8x128xf32>
    %547 = arith.addf %545, %546 : vector<8x128xf32>
    %548 = vector.extract_strided_slice %531 {offsets = [0, 256], sizes = [8, 128], strides = [1, 1]} : vector<8x512xf32> to vector<8x128xf32>
    %549 = math.tanh %548 : vector<8x128xf32>
    %550 = vector.extract_strided_slice %531 {offsets = [0, 384], sizes = [8, 128], strides = [1, 1]} : vector<8x512xf32> to vector<8x128xf32>
    %cst_218 = arith.constant 5.000000e-01 : f32
    %551 = vector.broadcast %cst_218 : f32 to vector<8x128xf32>
    %552 = arith.mulf %551, %550 : vector<8x128xf32>
    %553 = math.tanh %552 : vector<8x128xf32>
    %cst_219 = arith.constant 5.000000e-01 : f32
    %554 = vector.broadcast %cst_219 : f32 to vector<8x128xf32>
    %555 = arith.mulf %554, %553 : vector<8x128xf32>
    %cst_220 = arith.constant 5.000000e-01 : f32
    %556 = vector.broadcast %cst_220 : f32 to vector<8x128xf32>
    %557 = arith.addf %555, %556 : vector<8x128xf32>
    %558 = arith.mulf %547, %524 : vector<8x128xf32>
    %559 = arith.mulf %539, %549 : vector<8x128xf32>
    %560 = arith.addf %558, %559 : vector<8x128xf32>
    %561 = math.tanh %560 : vector<8x128xf32>
    %562 = arith.mulf %557, %561 : vector<8x128xf32>
    %c6_i32_221 = arith.constant 6 : i32
    %563 = arith.index_cast %c6_i32_221 : i32 to index
    %c0_222 = arith.constant 0 : index
    %c0_223 = arith.constant 0 : index
    %564 = vector.load %arg11[%563, %c0_222, %c0_223] : memref<8x8x512xf32, #tpu.memory_space<vmem>>, vector<1x8x512xf32>
    %565 = vector.shape_cast %564 : vector<1x8x512xf32> to vector<8x512xf32>
    %cst_224 = arith.constant dense<0.000000e+00> : vector<8x512xf32>
    %566 = tpu.matmul %562, %346, %cst_224 {dimension_numbers = #tpu.dot_dimension_numbers<[1], [0], [0], [1], [0, 0, 1, 1], [], []>} : vector<8x128xf32>, vector<128x512xf32>, vector<8x512xf32> -> vector<8x512xf32>
    %567 = arith.addf %565, %566 : vector<8x512xf32>
    %568 = vector.extract_strided_slice %567 {offsets = [0, 0], sizes = [8, 128], strides = [1, 1]} : vector<8x512xf32> to vector<8x128xf32>
    %cst_225 = arith.constant 5.000000e-01 : f32
    %569 = vector.broadcast %cst_225 : f32 to vector<8x128xf32>
    %570 = arith.mulf %569, %568 : vector<8x128xf32>
    %571 = math.tanh %570 : vector<8x128xf32>
    %cst_226 = arith.constant 5.000000e-01 : f32
    %572 = vector.broadcast %cst_226 : f32 to vector<8x128xf32>
    %573 = arith.mulf %572, %571 : vector<8x128xf32>
    %cst_227 = arith.constant 5.000000e-01 : f32
    %574 = vector.broadcast %cst_227 : f32 to vector<8x128xf32>
    %575 = arith.addf %573, %574 : vector<8x128xf32>
    %576 = vector.extract_strided_slice %567 {offsets = [0, 128], sizes = [8, 128], strides = [1, 1]} : vector<8x512xf32> to vector<8x128xf32>
    %cst_228 = arith.constant 5.000000e-01 : f32
    %577 = vector.broadcast %cst_228 : f32 to vector<8x128xf32>
    %578 = arith.mulf %577, %576 : vector<8x128xf32>
    %579 = math.tanh %578 : vector<8x128xf32>
    %cst_229 = arith.constant 5.000000e-01 : f32
    %580 = vector.broadcast %cst_229 : f32 to vector<8x128xf32>
    %581 = arith.mulf %580, %579 : vector<8x128xf32>
    %cst_230 = arith.constant 5.000000e-01 : f32
    %582 = vector.broadcast %cst_230 : f32 to vector<8x128xf32>
    %583 = arith.addf %581, %582 : vector<8x128xf32>
    %584 = vector.extract_strided_slice %567 {offsets = [0, 256], sizes = [8, 128], strides = [1, 1]} : vector<8x512xf32> to vector<8x128xf32>
    %585 = math.tanh %584 : vector<8x128xf32>
    %586 = vector.extract_strided_slice %567 {offsets = [0, 384], sizes = [8, 128], strides = [1, 1]} : vector<8x512xf32> to vector<8x128xf32>
    %cst_231 = arith.constant 5.000000e-01 : f32
    %587 = vector.broadcast %cst_231 : f32 to vector<8x128xf32>
    %588 = arith.mulf %587, %586 : vector<8x128xf32>
    %589 = math.tanh %588 : vector<8x128xf32>
    %cst_232 = arith.constant 5.000000e-01 : f32
    %590 = vector.broadcast %cst_232 : f32 to vector<8x128xf32>
    %591 = arith.mulf %590, %589 : vector<8x128xf32>
    %cst_233 = arith.constant 5.000000e-01 : f32
    %592 = vector.broadcast %cst_233 : f32 to vector<8x128xf32>
    %593 = arith.addf %591, %592 : vector<8x128xf32>
    %594 = arith.mulf %583, %560 : vector<8x128xf32>
    %595 = arith.mulf %575, %585 : vector<8x128xf32>
    %596 = arith.addf %594, %595 : vector<8x128xf32>
    %597 = math.tanh %596 : vector<8x128xf32>
    %598 = arith.mulf %593, %597 : vector<8x128xf32>
    %c7_i32_234 = arith.constant 7 : i32
    %599 = arith.index_cast %c7_i32_234 : i32 to index
    %c0_235 = arith.constant 0 : index
    %c0_236 = arith.constant 0 : index
    %600 = vector.load %arg11[%599, %c0_235, %c0_236] : memref<8x8x512xf32, #tpu.memory_space<vmem>>, vector<1x8x512xf32>
    %601 = vector.shape_cast %600 : vector<1x8x512xf32> to vector<8x512xf32>
    %cst_237 = arith.constant dense<0.000000e+00> : vector<8x512xf32>
    %602 = tpu.matmul %598, %346, %cst_237 {dimension_numbers = #tpu.dot_dimension_numbers<[1], [0], [0], [1], [0, 0, 1, 1], [], []>} : vector<8x128xf32>, vector<128x512xf32>, vector<8x512xf32> -> vector<8x512xf32>
    %603 = arith.addf %601, %602 : vector<8x512xf32>
    %604 = vector.extract_strided_slice %603 {offsets = [0, 0], sizes = [8, 128], strides = [1, 1]} : vector<8x512xf32> to vector<8x128xf32>
    %cst_238 = arith.constant 5.000000e-01 : f32
    %605 = vector.broadcast %cst_238 : f32 to vector<8x128xf32>
    %606 = arith.mulf %605, %604 : vector<8x128xf32>
    %607 = math.tanh %606 : vector<8x128xf32>
    %cst_239 = arith.constant 5.000000e-01 : f32
    %608 = vector.broadcast %cst_239 : f32 to vector<8x128xf32>
    %609 = arith.mulf %608, %607 : vector<8x128xf32>
    %cst_240 = arith.constant 5.000000e-01 : f32
    %610 = vector.broadcast %cst_240 : f32 to vector<8x128xf32>
    %611 = arith.addf %609, %610 : vector<8x128xf32>
    %612 = vector.extract_strided_slice %603 {offsets = [0, 128], sizes = [8, 128], strides = [1, 1]} : vector<8x512xf32> to vector<8x128xf32>
    %cst_241 = arith.constant 5.000000e-01 : f32
    %613 = vector.broadcast %cst_241 : f32 to vector<8x128xf32>
    %614 = arith.mulf %613, %612 : vector<8x128xf32>
    %615 = math.tanh %614 : vector<8x128xf32>
    %cst_242 = arith.constant 5.000000e-01 : f32
    %616 = vector.broadcast %cst_242 : f32 to vector<8x128xf32>
    %617 = arith.mulf %616, %615 : vector<8x128xf32>
    %cst_243 = arith.constant 5.000000e-01 : f32
    %618 = vector.broadcast %cst_243 : f32 to vector<8x128xf32>
    %619 = arith.addf %617, %618 : vector<8x128xf32>
    %620 = vector.extract_strided_slice %603 {offsets = [0, 256], sizes = [8, 128], strides = [1, 1]} : vector<8x512xf32> to vector<8x128xf32>
    %621 = math.tanh %620 : vector<8x128xf32>
    %622 = vector.extract_strided_slice %603 {offsets = [0, 384], sizes = [8, 128], strides = [1, 1]} : vector<8x512xf32> to vector<8x128xf32>
    %cst_244 = arith.constant 5.000000e-01 : f32
    %623 = vector.broadcast %cst_244 : f32 to vector<8x128xf32>
    %624 = arith.mulf %623, %622 : vector<8x128xf32>
    %625 = math.tanh %624 : vector<8x128xf32>
    %cst_245 = arith.constant 5.000000e-01 : f32
    %626 = vector.broadcast %cst_245 : f32 to vector<8x128xf32>
    %627 = arith.mulf %626, %625 : vector<8x128xf32>
    %cst_246 = arith.constant 5.000000e-01 : f32
    %628 = vector.broadcast %cst_246 : f32 to vector<8x128xf32>
    %629 = arith.addf %627, %628 : vector<8x128xf32>
    %630 = arith.mulf %619, %596 : vector<8x128xf32>
    %631 = arith.mulf %611, %621 : vector<8x128xf32>
    %632 = arith.addf %630, %631 : vector<8x128xf32>
    %633 = math.tanh %632 : vector<8x128xf32>
    %634 = arith.mulf %629, %633 : vector<8x128xf32>
    %c8_i32_247 = arith.constant 8 : i32
    %c1 = arith.constant 1 : index
    %c0_248 = arith.constant 0 : index
    %c0_249 = arith.constant 0 : index
    %635 = vector.load %arg8[%c1, %c0_248, %c0_249] : memref<2x8x128xf32, #tpu.memory_space<vmem>>, vector<1x8x128xf32>
    %636 = vector.shape_cast %635 : vector<1x8x128xf32> to vector<8x128xf32>
    %637 = vector.shape_cast %634 : vector<8x128xf32> to vector<1x8x128xf32>
    tpu.vector_store %arg8[%c1, %c0_248, %c0_249], %637 {strides = array<i32>} : memref<2x8x128xf32, #tpu.memory_space<vmem>>, vector<1x8x128xf32>,
    %c1_250 = arith.constant 1 : index
    %c0_251 = arith.constant 0 : index
    %c0_252 = arith.constant 0 : index
    %638 = vector.load %arg9[%c1_250, %c0_251, %c0_252] : memref<2x8x128xf32, #tpu.memory_space<vmem>>, vector<1x8x128xf32>
    %639 = vector.shape_cast %638 : vector<1x8x128xf32> to vector<8x128xf32>
    %640 = vector.shape_cast %632 : vector<8x128xf32> to vector<1x8x128xf32>
    tpu.vector_store %arg9[%c1_250, %c0_251, %c0_252], %640 {strides = array<i32>} : memref<2x8x128xf32, #tpu.memory_space<vmem>>, vector<1x8x128xf32>,
    return
  }
  func.func @transform_0(%arg0: i32) -> (i32, i32, i32) {
    %c0_i32 = arith.constant 0 : i32
    %c0_i32_0 = arith.constant 0 : i32
    %c0_i32_1 = arith.constant 0 : i32
    return %c0_i32, %arg0, %c0_i32_0 : i32, i32, i32
  }
  func.func @transform_1(%arg0: i32) -> (i32, i32) {
    %c0_i32 = arith.constant 0 : i32
    %c0_i32_0 = arith.constant 0 : i32
    %c0_i32_1 = arith.constant 0 : i32
    return %c0_i32, %c0_i32_0 : i32, i32
  }
  func.func @transform_2(%arg0: i32) -> (i32, i32) {
    %c0_i32 = arith.constant 0 : i32
    %c0_i32_0 = arith.constant 0 : i32
    %c0_i32_1 = arith.constant 0 : i32
    return %c0_i32, %c0_i32_0 : i32, i32
  }
  func.func @transform_3(%arg0: i32) -> (i32, i32) {
    %c0_i32 = arith.constant 0 : i32
    %c0_i32_0 = arith.constant 0 : i32
    %c0_i32_1 = arith.constant 0 : i32
    return %c0_i32, %c0_i32_0 : i32, i32
  }
  func.func @transform_4(%arg0: i32) -> (i32, i32) {
    %c0_i32 = arith.constant 0 : i32
    %c0_i32_0 = arith.constant 0 : i32
    %c0_i32_1 = arith.constant 0 : i32
    return %c0_i32, %c0_i32_0 : i32, i32
  }
  func.func @transform_5(%arg0: i32) -> (i32, i32) {
    %c0_i32 = arith.constant 0 : i32
    %c0_i32_0 = arith.constant 0 : i32
    %c0_i32_1 = arith.constant 0 : i32
    return %c0_i32, %c0_i32_0 : i32, i32
  }
  func.func @transform_6(%arg0: i32) -> (i32, i32) {
    %c0_i32 = arith.constant 0 : i32
    %c0_i32_0 = arith.constant 0 : i32
    %c0_i32_1 = arith.constant 0 : i32
    return %c0_i32, %c0_i32_0 : i32, i32
  }
  func.func @transform_7(%arg0: i32) -> (i32, i32, i32) {
    %c0_i32 = arith.constant 0 : i32
    %c0_i32_0 = arith.constant 0 : i32
    %c0_i32_1 = arith.constant 0 : i32
    return %c0_i32, %arg0, %c0_i32_0 : i32, i32, i32
  }
  func.func @transform_8(%arg0: i32) -> (i32, i32, i32) {
    %c0_i32 = arith.constant 0 : i32
    %c0_i32_0 = arith.constant 0 : i32
    %c0_i32_1 = arith.constant 0 : i32
    return %c0_i32, %arg0, %c0_i32_0 : i32, i32, i32
  }
}

</mosaic_0001>

<bundles_post_ra>
// kernel: encoder_forward.1
= control target key start
LH: loop header
LB: loop body
LE: loop exit
PB: predicated region body
PF: predicated region fallthrough
CT: control target
= control target key end

     0   :  { %14 = vsyncpa [#allocation5], 0  ;;  %s6257_s0 = inlined_call_operand.vmem [shape: f32[8,8,128], index: 0, kind: input, shape index: {}]   ;;  %s6258_s1 = inlined_call_operand.hbm [shape: f32[128,512], index: 1, kind: input, shape index: {}]   ;;  %s6259_s2 = inlined_call_operand.hbm [shape: f32[128,512], index: 2, kind: input, shape index: {}]   ;;  %s6260_s3 = inlined_call_operand.vmem [shape: f32[1,512], index: 3, kind: input, shape index: {}]   ;;  %s6261_s4 = inlined_call_operand.hbm [shape: f32[128,512], index: 4, kind: input, shape index: {}]   ;;  %s6262_s5 = inlined_call_operand.hbm [shape: f32[128,512], index: 5, kind: input, shape index: {}]   ;;  %s6263_s6 = inlined_call_operand.vmem [shape: f32[1,512], index: 6, kind: input, shape index: {}]   ;;  %s6264_s7 = inlined_call_operand.vmem [shape: f32[2,8,128], index: 7, kind: output, shape index: {0}]   ;;  %s6265_s8 = inlined_call_operand.vmem [shape: f32[2,8,128], index: 8, kind: output, shape index: {1}]  }
   0x1   :  { %15 = vsyncpa [#allocation7], 0 }
   0x2   :  { %16 = vsyncpa [#allocation10], 0  ;;  %s5185_s27 = smov [#allocation6]   ;;  %s5186_s29 = smov [#allocation4]  }
   0x3   :  { %s36_s28 = sshll.u32 %s5185_s27, 4  ;;  %s24_s30 = sshll.u32 %s5186_s29, 4  ;;  %s37_s28 = int_to_ptr.vmem [resolvable:$true] %s36_s28  ;;  %s5237_s30 = int_to_ptr.vmem [resolvable:$true] %s24_s30 }
   0x4   :  { %s5091_s11 = scalar_lea.hbm %s6259_s2, 8192 }
   0x5   :  { %p5092_p0 = scmp.ne.s32.totalorder %s6259_s2, %s5091_s11  ;;  %p5095_p1 = scmp.lt.u32.totalorder %s5091_s11, %s6259_s2 }
   0x7   :  { %p5097_p2 = pnand %p5095_p1, %p5092_p0 }
   0x9   :  { %5100 = shalt.err (!%p5097_p2)
}
   0xa   :  { %s5101_s16 = scalar_lea.vmem %s37_s28, 8192  ;;  %p5106_p4 = scmp.lt.s32.totalorder %s37_s28, %s37_s28 }
   0xb   :  { %p5102_p3 = scmp.ne.s32.totalorder %s37_s28, %s5101_s16  ;;  %p5107_p5 = scmp.lt.s32.totalorder %s5101_s16, %s5101_s16 }
   0xd   :  { %p5108_p6 = por %p5107_p5, %p5106_p4 }
   0xf   :  { %p5109_p7 = pnand %p5108_p6, %p5102_p3 }
  0x11   :  { %5112 = shalt.err (!%p5109_p7)
}
  0x12   :  { %s5187_s17 = smov 512   ;;  %s5188_s18 = smov 32  }
  0x13   :  { %42 = dma.hbm_to_vmem [thread:$0]  %s6259_s2, 8192, %s37_s28, [#allocation7], %s5187_s17, %s5187_s17, %s5188_s18  }
  0x14   :  { %s5113_s23 = scalar_lea.hbm %s6258_s1, 8192 }
  0x15   :  { %p5114_p8 = scmp.ne.s32.totalorder %s6258_s1, %s5113_s23  ;;  %p5117_p9 = scmp.lt.u32.totalorder %s5113_s23, %s6258_s1 }
  0x17   :  { %p5119_p10 = pnand %p5117_p9, %p5114_p8 }
  0x19   :  { %5122 = shalt.err (!%p5119_p10)
}
  0x1a   :  { %s5123_s29 = scalar_lea.vmem %s5237_s30, 8192  ;;  %p5128_p12 = scmp.lt.s32.totalorder %s5237_s30, %s5237_s30 }
  0x1b   :  { %p5124_p11 = scmp.ne.s32.totalorder %s5237_s30, %s5123_s29  ;;  %p5129_p13 = scmp.lt.s32.totalorder %s5123_s29, %s5123_s29 }
  0x1d   :  { %p5130_p0 = por %p5129_p13, %p5128_p12 }
  0x1f   :  { %p5131_p1 = pnand %p5130_p0, %p5124_p11 }
  0x21   :  { %5134 = shalt.err (!%p5131_p1)
}
  0x22   :  { %30 = dma.hbm_to_vmem [thread:$0]  %s6258_s1, 8192, %s5237_s30, [#allocation5], %s5187_s17, %s5187_s17, %s5188_s18  }
  0x23   :  { %s5189_s9 = smov [#allocation8]   ;;  %s5190_s11 = smov [#allocation9]  }
  0x24   :  { %s50_s10 = sshll.u32 %s5189_s9, 4  ;;  %s62_s12 = sshll.u32 %s5190_s11, 4  ;;  %s51_s10 = int_to_ptr.vmem [resolvable:$true] %s50_s10  ;;  %s5274_s12 = int_to_ptr.vmem [resolvable:$true] %s62_s12 }
  0x25   :  { %s5135_s15 = scalar_lea.hbm %s6261_s4, 8192 }
  0x26   :  { %p5136_p2 = scmp.ne.s32.totalorder %s6261_s4, %s5135_s15  ;;  %p5139_p3 = scmp.lt.u32.totalorder %s5135_s15, %s6261_s4 }
  0x28   :  { %p5141_p4 = pnand %p5139_p3, %p5136_p2 }
  0x2a   :  { %5144 = shalt.err (!%p5141_p4)
}
  0x2b   :  { %s5145_s1 = scalar_lea.vmem %s51_s10, 8192  ;;  %p5150_p6 = scmp.lt.s32.totalorder %s51_s10, %s51_s10 }
  0x2c   :  { %p5146_p5 = scmp.ne.s32.totalorder %s51_s10, %s5145_s1  ;;  %p5151_p7 = scmp.lt.s32.totalorder %s5145_s1, %s5145_s1 }
  0x2e   :  { %p5152_p8 = por %p5151_p7, %p5150_p6 }
  0x30   :  { %p5153_p9 = pnand %p5152_p8, %p5146_p5 }
  0x32   :  { %5156 = shalt.err (!%p5153_p9)
}
  0x33   :  { %56 = dma.hbm_to_vmem [thread:$0]  %s6261_s4, 8192, %s51_s10, [#allocation7], %s5187_s17, %s5187_s17, %s5188_s18  }
  0x34   :  { %s5157_s25 = scalar_lea.hbm %s6262_s5, 8192 }
  0x35   :  { %p5158_p10 = scmp.ne.s32.totalorder %s6262_s5, %s5157_s25  ;;  %p5161_p11 = scmp.lt.u32.totalorder %s5157_s25, %s6262_s5 }
  0x37   :  { %p5163_p12 = pnand %p5161_p11, %p5158_p10 }
  0x39   :  { %5166 = shalt.err (!%p5163_p12)
}
  0x3a   :  { %s5167_s28 = scalar_lea.vmem %s5274_s12, 8192  ;;  %p5172_p0 = scmp.lt.s32.totalorder %s5274_s12, %s5274_s12 }
  0x3b   :  { %p5168_p13 = scmp.ne.s32.totalorder %s5274_s12, %s5167_s28  ;;  %p5173_p1 = scmp.lt.s32.totalorder %s5167_s28, %s5167_s28 }
  0x3d   :  { %p5174_p2 = por %p5173_p1, %p5172_p0 }
  0x3f   :  { %p5175_p3 = pnand %p5174_p2, %p5168_p13 }
  0x41   :  { %5178 = shalt.err (!%p5175_p3)
}
  0x42   :  { %68 = dma.hbm_to_vmem [thread:$0]  %s6262_s5, 8192, %s5274_s12, [#allocation10], %s5187_s17, %s5187_s17, %s5188_s18  }
  0x43   :  { %5179 = dma.done.wait [#allocation5], 8192  }
  0x44   :  { %5180 = vsyncadd [#allocation5], 4294959104 }
  0x45   :  { %5181 = dma.done.wait [#allocation7], 16384  }
  0x46   :  { %5182 = vsyncadd [#allocation7], 4294950912 }
  0x47   :  { %5183 = dma.done.wait [#allocation10], 8192  }
  0x48   :  { %5184 = vsyncadd [#allocation10], 4294959104  ;;  %v5191_v0 = vmov 0.0   ;;  %v92_v1 = vld [vmem:[#allocation4 + $0x8] sm:$0xff]  ;;  %v94_v3 = vld [vmem:[#allocation4 + $0x18] sm:$0xff] }
  0x49   :  { %241 = vmatprep.mubr.f32.mxu0 %v5191_v0  ;;  %354 = vmatprep.mubr.f32.mxu1 %v5191_v0  ;;  %v96_v2 = vld [vmem:[#allocation4 + $0x28] sm:$0xff]  ;;  %v98_v5 = vld [vmem:[#allocation4 + $0x38] sm:$0xff]  ;;  %v91_v6 = vld [vmem:[#allocation4] sm:$0xff] }
  0x4a   :  { %v3644_v4 = vpack.c.bf16 %v96_v2, %v92_v1  ;;  %v95_v7 = vld [vmem:[#allocation4 + $0x20] sm:$0xff]  ;;  %v3676_v8 = vpack.c.bf16 %v98_v5, %v94_v3  ;;  %v93_v10 = vld [vmem:[#allocation4 + $0x10] sm:$0xff]  ;;  %v100_v12 = vld [vmem:[#allocation4 + $0x48] sm:$0xff] }
  0x4b   :  { %v3646_v9 = vpack.c.bf16 %v95_v7, %v91_v6  ;;  %v97_v11 = vld [vmem:[#allocation4 + $0x30] sm:$0xff]  ;;  %v104_v14 = vld [vmem:[#allocation4 + $0x68] sm:$0xff]  ;;  %v102_v15 = vld [vmem:[#allocation4 + $0x58] sm:$0xff] }
  0x4c   :  { %3645 = vmatprep.subr.bf16.mxu0 %v3644_v4  ;;  %v3678_v13 = vpack.c.bf16 %v97_v11, %v93_v10  ;;  %v106_v16 = vld [vmem:[#allocation4 + $0x78] sm:$0xff]  ;;  %3677 = vmatprep.subr.bf16.mxu1 %v3676_v8  ;;  %v3648_v17 = vpack.c.bf16 %v104_v14, %v100_v12  ;;  %v99_v19 = vld [vmem:[#allocation4 + $0x40] sm:$0xff]  ;;  %v101_v21 = vld [vmem:[#allocation4 + $0x50] sm:$0xff] }
  0x4d   :  { %3647 = vmatpush1.bf16.msra.mxu0 %v3646_v9  ;;  %v3680_v18 = vpack.c.bf16 %v106_v16, %v102_v15  ;;  %v103_v20 = vld [vmem:[#allocation4 + $0x60] sm:$0xff]  ;;  %v105_v23 = vld [vmem:[#allocation4 + $0x70] sm:$0xff]  ;;  %v108_v24 = vld [vmem:[#allocation4 + $0x88] sm:$0xff] }
  0x4e   :  { %3679 = vmatpush1.bf16.msra.mxu1 %v3678_v13  ;;  %v3650_v22 = vpack.c.bf16 %v103_v20, %v99_v19  ;;  %v112_v25 = vld [vmem:[#allocation4 + $0xa8] sm:$0xff]  ;;  %3649 = vmatprep.subr.bf16.mxu0 %v3648_v17  ;;  %v3682_v26 = vpack.c.bf16 %v105_v23, %v101_v21  ;;  %v110_v28 = vld [vmem:[#allocation4 + $0x98] sm:$0xff]  ;;  %v107_v30 = vld [vmem:[#allocation4 + $0x80] sm:$0xff] }
  0x4f   :  { %3681 = vmatprep.subr.bf16.mxu1 %v3680_v18  ;;  %v3652_v27 = vpack.c.bf16 %v112_v25, %v108_v24  ;;  %v114_v29 = vld [vmem:[#allocation4 + $0xb8] sm:$0xff]  ;;  %v111_v32 = vld [vmem:[#allocation4 + $0xa0] sm:$0xff]  ;;  %v109_v33 = vld [vmem:[#allocation4 + $0x90] sm:$0xff] }
  0x50   :  { %v3684_v31 = vpack.c.bf16 %v114_v29, %v110_v28  ;;  %v113_v34 = vld [vmem:[#allocation4 + $0xb0] sm:$0xff]  ;;  %v3654_v35 = vpack.c.bf16 %v111_v32, %v107_v30  ;;  %v116_v36 = vld [vmem:[#allocation4 + $0xc8] sm:$0xff]  ;;  %v118_v38 = vld [vmem:[#allocation4 + $0xd8] sm:$0xff] }
  0x51   :  { %3651 = vmatpush1.bf16.msra.mxu0 %v3650_v22  ;;  %v120_v37 = vld [vmem:[#allocation4 + $0xe8] sm:$0xff]  ;;  %v3686_v39 = vpack.c.bf16 %v113_v34, %v109_v33  ;;  %v122_v41 = vld [vmem:[#allocation4 + $0xf8] sm:$0xff]  ;;  %v115_v42 = vld [vmem:[#allocation4 + $0xc0] sm:$0xff] }
  0x52   :  { %3683 = vmatpush1.bf16.msra.mxu1 %v3682_v26  ;;  %3653 = vmatprep.subr.bf16.mxu0 %v3652_v27  ;;  %v3656_v40 = vpack.c.bf16 %v120_v37, %v116_v36  ;;  %v119_v43 = vld [vmem:[#allocation4 + $0xe0] sm:$0xff]  ;;  %v3688_v44 = vpack.c.bf16 %v122_v41, %v118_v38  ;;  %v117_v45 = vld [vmem:[#allocation4 + $0xd0] sm:$0xff]  ;;  %v124_v47 = vld [vmem:[#allocation4 + $0x108] sm:$0xff] }
  0x53   :  { %3685 = vmatprep.subr.bf16.mxu1 %v3684_v31  ;;  %v121_v46 = vld [vmem:[#allocation4 + $0xf0] sm:$0xff]  ;;  %v128_v48 = vld [vmem:[#allocation4 + $0x128] sm:$0xff]  ;;  %v126_v49 = vld [vmem:[#allocation4 + $0x118] sm:$0xff]  ;;  %v3658_v51 = vpack.c.bf16 %v119_v43, %v115_v42 }
  0x54   :  { %v130_v50 = vld [vmem:[#allocation4 + $0x138] sm:$0xff]  ;;  %v3690_v52 = vpack.c.bf16 %v121_v46, %v117_v45  ;;  %v3660_v53 = vpack.c.bf16 %v128_v48, %v124_v47  ;;  %v123_v54 = vld [vmem:[#allocation4 + $0x100] sm:$0xff]  ;;  %v125_v56 = vld [vmem:[#allocation4 + $0x110] sm:$0xff] }
  0x55   :  { %3655 = vmatpush1.bf16.msra.mxu0 %v3654_v35  ;;  %v127_v55 = vld [vmem:[#allocation4 + $0x120] sm:$0xff]  ;;  %v3692_v57 = vpack.c.bf16 %v130_v50, %v126_v49  ;;  %v129_v58 = vld [vmem:[#allocation4 + $0x130] sm:$0xff]  ;;  %v132_v59 = vld [vmem:[#allocation4 + $0x148] sm:$0xff] }
  0x56   :  { %3687 = vmatpush1.bf16.msra.mxu1 %v3686_v39  ;;  %3657 = vmatprep.subr.bf16.mxu0 %v3656_v40  ;;  %v136_v60 = vld [vmem:[#allocation4 + $0x168] sm:$0xff]  ;;  %v134_v61 = vld [vmem:[#allocation4 + $0x158] sm:$0xff]  ;;  %v3662_v63 = vpack.c.bf16 %v127_v55, %v123_v54  ;;  %v3694_v1 = vpack.c.bf16 %v129_v58, %v125_v56  ;;  %v131_v3 = vld [vmem:[#allocation4 + $0x140] sm:$0xff] }
  0x57   :  { %3689 = vmatprep.subr.bf16.mxu1 %v3688_v44  ;;  %v138_v62 = vld [vmem:[#allocation4 + $0x178] sm:$0xff]  ;;  %v3664_v2 = vpack.c.bf16 %v136_v60, %v132_v59  ;;  %v135_v4 = vld [vmem:[#allocation4 + $0x160] sm:$0xff]  ;;  %v133_v5 = vld [vmem:[#allocation4 + $0x150] sm:$0xff] }
  0x58   :  { %v3696_v6 = vpack.c.bf16 %v138_v62, %v134_v61  ;;  %v137_v7 = vld [vmem:[#allocation4 + $0x170] sm:$0xff]  ;;  %v140_v8 = vld [vmem:[#allocation4 + $0x188] sm:$0xff]  ;;  %v142_v10 = vld [vmem:[#allocation4 + $0x198] sm:$0xff]  ;;  %v3666_v12 = vpack.c.bf16 %v135_v4, %v131_v3 }
  0x59   :  { %3659 = vmatpush1.bf16.msra.mxu0 %v3658_v51  ;;  %v144_v9 = vld [vmem:[#allocation4 + $0x1a8] sm:$0xff]  ;;  %v146_v11 = vld [vmem:[#allocation4 + $0x1b8] sm:$0xff]  ;;  %v3698_v13 = vpack.c.bf16 %v137_v7, %v133_v5  ;;  %v139_v15 = vld [vmem:[#allocation4 + $0x180] sm:$0xff] }
  0x5a   :  { %3691 = vmatpush1.bf16.msra.mxu1 %v3690_v52  ;;  %3661 = vmatprep.subr.bf16.mxu0 %v3660_v53  ;;  %v3668_v14 = vpack.c.bf16 %v144_v9, %v140_v8  ;;  %v143_v16 = vld [vmem:[#allocation4 + $0x1a0] sm:$0xff]  ;;  %v141_v17 = vld [vmem:[#allocation4 + $0x190] sm:$0xff]  ;;  %v3700_v18 = vpack.c.bf16 %v146_v11, %v142_v10  ;;  %v148_v20 = vld [vmem:[#allocation4 + $0x1c8] sm:$0xff] }
  0x5b   :  { %3693 = vmatprep.subr.bf16.mxu1 %v3692_v57  ;;  %v145_v19 = vld [vmem:[#allocation4 + $0x1b0] sm:$0xff]  ;;  %v152_v21 = vld [vmem:[#allocation4 + $0x1e8] sm:$0xff]  ;;  %v150_v22 = vld [vmem:[#allocation4 + $0x1d8] sm:$0xff]  ;;  %v3670_v24 = vpack.c.bf16 %v143_v16, %v139_v15 }
  0x5c   :  { %v154_v23 = vld [vmem:[#allocation4 + $0x1f8] sm:$0xff]  ;;  %v3702_v25 = vpack.c.bf16 %v145_v19, %v141_v17  ;;  %v3672_v26 = vpack.c.bf16 %v152_v21, %v148_v20  ;;  %v147_v27 = vld [vmem:[#allocation4 + $0x1c0] sm:$0xff]  ;;  %v149_v29 = vld [vmem:[#allocation4 + $0x1d0] sm:$0xff] }
  0x5d   :  { %3663 = vmatpush1.bf16.msra.mxu0 %v3662_v63  ;;  %v151_v28 = vld [vmem:[#allocation4 + $0x1e0] sm:$0xff]  ;;  %v3704_v30 = vpack.c.bf16 %v154_v23, %v150_v22  ;;  %v153_v31 = vld [vmem:[#allocation4 + $0x1f0] sm:$0xff]  ;;  %v436_v32 = vld [vmem:[#allocation6 + $0x8] sm:$0xff] }
  0x5e   :  { %3695 = vmatpush1.bf16.msra.mxu1 %v3694_v1  ;;  %3665 = vmatprep.subr.bf16.mxu0 %v3664_v2  ;;  %v440_v33 = vld [vmem:[#allocation6 + $0x28] sm:$0xff]  ;;  %v438_v34 = vld [vmem:[#allocation6 + $0x18] sm:$0xff]  ;;  %v3674_v36 = vpack.c.bf16 %v151_v28, %v147_v27  ;;  %v3706_v37 = vpack.c.bf16 %v153_v31, %v149_v29  ;;  %v435_v39 = vld [vmem:[#allocation6] sm:$0xff] }
  0x5f   :  { %3697 = vmatprep.subr.bf16.mxu1 %v3696_v6  ;;  %v442_v35 = vld [vmem:[#allocation6 + $0x38] sm:$0xff]  ;;  %v5313_v38 = vpack.c.bf16 %v440_v33, %v436_v32  ;;  %v439_v40 = vld [vmem:[#allocation6 + $0x20] sm:$0xff]  ;;  %v437_v42 = vld [vmem:[#allocation6 + $0x10] sm:$0xff] }
  0x60   :  { %v5315_v41 = vpack.c.bf16 %v442_v35, %v438_v34  ;;  %v441_v43 = vld [vmem:[#allocation6 + $0x30] sm:$0xff]  ;;  %v444_v44 = vld [vmem:[#allocation6 + $0x48] sm:$0xff]  ;;  %v83_v46 = vld [vmem:[%s6257_s0] sm:$0xff]  ;;  %v5320_v47 = vpack.c.bf16 %v439_v40, %v435_v39 }
  0x61   :  { %3667 = vmatpush1.bf16.msra.mxu0 %v3666_v12  ;;  %v448_v45 = vld [vmem:[#allocation6 + $0x68] sm:$0xff]  ;;  %v446_v48 = vld [vmem:[#allocation6 + $0x58] sm:$0xff]  ;;  %v5323_v50 = vpack.c.bf16 %v441_v43, %v437_v42  ;;  %v443_v51 = vld [vmem:[#allocation6 + $0x40] sm:$0xff] }
  0x62   :  { %3699 = vmatpush1.bf16.msra.mxu1 %v3698_v13  ;;  %3669 = vmatprep.subr.bf16.mxu0 %v3668_v14  ;;  %v450_v49 = vld [vmem:[#allocation6 + $0x78] sm:$0xff]  ;;  %v447_v52 = vld [vmem:[#allocation6 + $0x60] sm:$0xff]  ;;  %v5326_v53 = vpack.c.bf16 %v448_v45, %v444_v44  ;;  %v445_v54 = vld [vmem:[#allocation6 + $0x50] sm:$0xff] }
  0x63   :  { %3701 = vmatprep.subr.bf16.mxu1 %v3700_v18  ;;  %v449_v55 = vld [vmem:[#allocation6 + $0x70] sm:$0xff]  ;;  %v5328_v56 = vpack.c.bf16 %v450_v49, %v446_v48  ;;  %v452_v57 = vld [vmem:[#allocation6 + $0x88] sm:$0xff]  ;;  %v5334_v60 = vpack.c.bf16 %v447_v52, %v443_v51  ;;  %v454_v61 = vld [vmem:[#allocation6 + $0x98] sm:$0xff] }
  0x64   :  { %v456_v58 = vld [vmem:[#allocation6 + $0xa8] sm:$0xff]  ;;  %v458_v62 = vld [vmem:[#allocation6 + $0xb8] sm:$0xff]  ;;  %v5338_v63 = vpack.c.bf16 %v449_v55, %v445_v54  ;;  %v451_v1 = vld [vmem:[#allocation6 + $0x80] sm:$0xff] }
  0x65   :  { %3671 = vmatpush1.bf16.msra.mxu0 %v3670_v24  ;;  %v84_v59 = vld [vmem:[%s6257_s0 + $0x8] sm:$0xff]  ;;  %v455_v2 = vld [vmem:[#allocation6 + $0xa0] sm:$0xff]  ;;  %v5342_v3 = vpack.c.bf16 %v456_v58, %v452_v57  ;;  %v453_v4 = vld [vmem:[#allocation6 + $0x90] sm:$0xff]  ;;  %v5345_v6 = vpack.c.bf16 %v458_v62, %v454_v61 }
  0x66   :  { %3703 = vmatpush1.bf16.msra.mxu1 %v3702_v25  ;;  %3673 = vmatprep.subr.bf16.mxu0 %v3672_v26  ;;  %v457_v5 = vld [vmem:[#allocation6 + $0xb0] sm:$0xff]  ;;  %v460_v7 = vld [vmem:[#allocation6 + $0xc8] sm:$0xff]  ;;  %v5351_v10 = vpack.c.bf16 %v455_v2, %v451_v1  ;;  %v462_v11 = vld [vmem:[#allocation6 + $0xd8] sm:$0xff] }
  0x67   :  { %3705 = vmatprep.subr.bf16.mxu1 %v3704_v30  ;;  %v464_v8 = vld [vmem:[#allocation6 + $0xe8] sm:$0xff]  ;;  %v85_v9 = vld [vmem:[%s6257_s0 + $0x10] sm:$0xff]  ;;  %v466_v12 = vld [vmem:[#allocation6 + $0xf8] sm:$0xff]  ;;  %v5355_v13 = vpack.c.bf16 %v457_v5, %v453_v4 }
  0x68   :  { %v459_v14 = vld [vmem:[#allocation6 + $0xc0] sm:$0xff]  ;;  %v5359_v16 = vpack.c.bf16 %v464_v8, %v460_v7  ;;  %v461_v17 = vld [vmem:[#allocation6 + $0xd0] sm:$0xff]  ;;  %v5362_v19 = vpack.c.bf16 %v466_v12, %v462_v11  ;;  %v468_v20 = vld [vmem:[#allocation6 + $0x108] sm:$0xff] }
  0x69   :  { %3675 = vmatpush1.bf16.msra.mxu0 %v3674_v36  ;;  %v463_v15 = vld [vmem:[#allocation6 + $0xe0] sm:$0xff]  ;;  %v465_v18 = vld [vmem:[#allocation6 + $0xf0] sm:$0xff]  ;;  %v472_v21 = vld [vmem:[#allocation6 + $0x128] sm:$0xff] }
  0x6a   :  { %3707 = vmatpush1.bf16.msra.mxu1 %v3706_v37  ;;  %3709 = vmatprep.subr.bf16.mxu0 %v5313_v38  ;;  %v86_v22 = vld [vmem:[%s6257_s0 + $0x18] sm:$0xff]  ;;  %v5368_v23 = vpack.c.bf16 %v463_v15, %v459_v14  ;;  %v5372_v26 = vpack.c.bf16 %v465_v18, %v461_v17  ;;  %v467_v27 = vld [vmem:[#allocation6 + $0x100] sm:$0xff]  ;;  %v5376_v29 = vpack.c.bf16 %v472_v21, %v468_v20  ;;  %v469_v30 = vld [vmem:[#allocation6 + $0x110] sm:$0xff] }
  0x6b   :  { %3741 = vmatprep.subr.bf16.mxu1 %v5315_v41  ;;  %v470_v24 = vld [vmem:[#allocation6 + $0x118] sm:$0xff]  ;;  %v471_v28 = vld [vmem:[#allocation6 + $0x120] sm:$0xff]  ;;  %v473_v31 = vld [vmem:[#allocation6 + $0x130] sm:$0xff] }
  0x6c   :  { %242 = vmatmul.mubr.f32.vlgmr.msra.gmra.mrb[0].mxu0 %v83_v46  ;;  %v474_v25 = vld [vmem:[#allocation6 + $0x138] sm:$0xff]  ;;  %v476_v33 = vld [vmem:[#allocation6 + $0x148] sm:$0xff]  ;;  %v87_v35 = vld [vmem:[%s6257_s0 + $0x20] sm:$0xff]  ;;  %v5385_v36 = vpack.c.bf16 %v471_v28, %v467_v27  ;;  %v5389_v40 = vpack.c.bf16 %v473_v31, %v469_v30  ;;  %v157_v28 = vlaneseq }
  0x6d   :  { %355 = vmatmul.mubr.f32.vlgmr.msra.gmra.mrb[0].mxu1 %v83_v46  ;;  %3711 = vmatpush1.bf16.msra.mxu0 %v5320_v47  ;;  %v5379_v32 = vpack.c.bf16 %v474_v25, %v470_v24  ;;  %v480_v34 = vld [vmem:[#allocation6 + $0x168] sm:$0xff]  ;;  %v478_v37 = vld [vmem:[#allocation6 + $0x158] sm:$0xff]  ;;  %v475_v42 = vld [vmem:[#allocation6 + $0x140] sm:$0xff] }
  0x6e   :  { %3743 = vmatpush1.bf16.msra.mxu1 %v5323_v50  ;;  %247 = vmatprep.mubr.f32.mxu0 %v5191_v0  ;;  %v482_v39 = vld [vmem:[#allocation6 + $0x178] sm:$0xff]  ;;  %v479_v43 = vld [vmem:[#allocation6 + $0x160] sm:$0xff]  ;;  %v5393_v44 = vpack.c.bf16 %v480_v34, %v476_v33  ;;  %v477_v45 = vld [vmem:[#allocation6 + $0x150] sm:$0xff]  ;;  %v5487_v30 = vshrl.u32 %v157_v28, 7 }
  0x6f   :  { %360 = vmatprep.mubr.f32.mxu1 %v5191_v0  ;;  %3713 = vmatprep.subr.bf16.mxu0 %v5326_v53  ;;  %v481_v46 = vld [vmem:[#allocation6 + $0x170] sm:$0xff]  ;;  %v5396_v48 = vpack.c.bf16 %v482_v39, %v478_v37  ;;  %v484_v49 = vld [vmem:[#allocation6 + $0x188] sm:$0xff]  ;;  %v5402_v54 = vpack.c.bf16 %v479_v43, %v475_v42  ;;  %v486_v55 = vld [vmem:[#allocation6 + $0x198] sm:$0xff] }
  0x70   :  { %248 = vmatmul.mubr.f32.gmra.mrb[2].mxu0 %v84_v59  ;;  %3745 = vmatprep.subr.bf16.mxu1 %v5328_v56  ;;  %v488_v51 = vld [vmem:[#allocation6 + $0x1a8] sm:$0xff]  ;;  %v490_v57 = vld [vmem:[#allocation6 + $0x1b8] sm:$0xff]  ;;  %v5406_v58 = vpack.c.bf16 %v481_v46, %v477_v45  ;;  %v487_v61 = vld [vmem:[#allocation6 + $0x1a0] sm:$0xff]  ;;  %v159_v31 = vsub.s32 0, %v5487_v30  ;;  %v163_v34 = vsub.s32 1, %v5487_v30  ;;  %v167_v37 = vsub.s32 2, %v5487_v30 }
  0x71   :  { %361 = vmatmul.mubr.f32.gmra.mrb[2].mxu1 %v84_v59  ;;  %3715 = vmatpush1.bf16.msra.mxu0 %v5334_v60  ;;  %v88_v52 = vld [vmem:[%s6257_s0 + $0x28] sm:$0xff]  ;;  %v483_v59 = vld [vmem:[#allocation6 + $0x180] sm:$0xff]  ;;  %v5410_v62 = vpack.c.bf16 %v488_v51, %v484_v49  ;;  %v485_v1 = vld [vmem:[#allocation6 + $0x190] sm:$0xff]  ;;  %v5413_v4 = vpack.c.bf16 %v490_v57, %v486_v55  ;;  %v6266_v51 = vsub.s32 3, %v5487_v30 }
  0x72   :  { %3747 = vmatpush1.bf16.msra.mxu1 %v5338_v63  ;;  %253 = vmatprep.mubr.f32.mxu0 %v5191_v0  ;;  %v489_v2 = vld [vmem:[#allocation6 + $0x1b0] sm:$0xff]  ;;  %v492_v5 = vld [vmem:[#allocation6 + $0x1c8] sm:$0xff]  ;;  %v494_v11 = vld [vmem:[#allocation6 + $0x1d8] sm:$0xff] }
  0x73   :  { %366 = vmatprep.mubr.f32.mxu1 %v5191_v0  ;;  %3717 = vmatprep.subr.bf16.mxu0 %v5342_v3  ;;  %v496_v7 = vld [vmem:[#allocation6 + $0x1e8] sm:$0xff]  ;;  %v89_v8 = vld [vmem:[%s6257_s0 + $0x30] sm:$0xff]  ;;  %v498_v12 = vld [vmem:[#allocation6 + $0x1f8] sm:$0xff]  ;;  %v5423_v14 = vpack.c.bf16 %v489_v2, %v485_v1 }
  0x74   :  { %254 = vmatmul.mubr.f32.gmra.mrb[4].mxu0 %v85_v9  ;;  %3749 = vmatprep.subr.bf16.mxu1 %v5345_v6  ;;  %v491_v15 = vld [vmem:[#allocation6 + $0x1c0] sm:$0xff]  ;;  %v5427_v18 = vpack.c.bf16 %v496_v7, %v492_v5  ;;  %v493_v20 = vld [vmem:[#allocation6 + $0x1d0] sm:$0xff]  ;;  %v90_v24 = vld [vmem:[%s6257_s0 + $0x38] sm:$0xff] }
  0x75   :  { %367 = vmatmul.mubr.f32.gmra.mrb[4].mxu1 %v85_v9  ;;  %3719 = vmatpush1.bf16.msra.mxu0 %v5351_v10  ;;  %v5419_v9 = vpack.c.bf16 %v487_v61, %v483_v59  ;;  %v495_v17 = vld [vmem:[#allocation6 + $0x1e0] sm:$0xff]  ;;  %v497_v21 = vld [vmem:[#allocation6 + $0x1f0] sm:$0xff] }
  0x76   :  { %3751 = vmatpush1.bf16.msra.mxu1 %v5355_v13  ;;  %259 = vmatprep.mubr.f32.mxu0 %v5191_v0  ;;  %v5436_v25 = vpack.c.bf16 %v495_v17, %v491_v15  ;;  %v5440_v27 = vpack.c.bf16 %v497_v21, %v493_v20  ;;  %v155_v33 = vld [vmem:[%s6260_s3] sm:$0xf] }
  0x77   :  { %372 = vmatprep.mubr.f32.mxu1 %v5191_v0  ;;  %3721 = vmatprep.subr.bf16.mxu0 %v5359_v16  ;;  %v5501_v39 = vrot.slane %v155_v33, %v163_v34  ;;  %v5506_v45 = vrot.slane %v155_v33, %v167_v37  ;;  %v5513_v1 = vrot.slane %v155_v33, %v6266_v51 }
  0x78   :  { %260 = vmatmul.mubr.f32.gmra.mrb[6].mxu0 %v86_v22  ;;  %3753 = vmatprep.subr.bf16.mxu1 %v5362_v19 }
  0x79   :  { %373 = vmatmul.mubr.f32.gmra.mrb[6].mxu1 %v86_v22  ;;  %3723 = vmatpush1.bf16.msra.mxu0 %v5368_v23  ;;  %v5430_v22 = vpack.c.bf16 %v498_v12, %v494_v11 }
  0x7a   :  { %3755 = vmatpush1.bf16.msra.mxu1 %v5372_v26  ;;  %265 = vmatprep.mubr.f32.mxu0 %v5191_v0 }
  0x7b   :  { %378 = vmatprep.mubr.f32.mxu1 %v5191_v0  ;;  %3725 = vmatprep.subr.bf16.mxu0 %v5376_v29 }
  0x7c   :  { %266 = vmatmul.mubr.f32.gmra.mrb[8].mxu0 %v87_v35  ;;  %3757 = vmatprep.subr.bf16.mxu1 %v5379_v32 }
  0x7d   :  { %379 = vmatmul.mubr.f32.gmra.mrb[8].mxu1 %v87_v35  ;;  %3727 = vmatpush1.bf16.msra.mxu0 %v5385_v36  ;;  %v5496_v35 = vrot.slane %v155_v33, %v159_v31 }
  0x7e   :  { %3759 = vmatpush1.bf16.msra.mxu1 %v5389_v40  ;;  %271 = vmatprep.mubr.f32.mxu0 %v5191_v0 }
  0x7f   :  { %384 = vmatprep.mubr.f32.mxu1 %v5191_v0  ;;  %3729 = vmatprep.subr.bf16.mxu0 %v5393_v44 }
  0x80   :  { %272 = vmatmul.mubr.f32.gmra.mrb[10].mxu0 %v88_v52  ;;  %3761 = vmatprep.subr.bf16.mxu1 %v5396_v48 }
  0x81   :  { %385 = vmatmul.mubr.f32.gmra.mrb[10].mxu1 %v88_v52  ;;  %3731 = vmatpush1.bf16.msra.mxu0 %v5402_v54 }
  0x82   :  { %3763 = vmatpush1.bf16.msra.mxu1 %v5406_v58  ;;  %277 = vmatprep.mubr.f32.mxu0 %v5191_v0 }
  0x83   :  { %390 = vmatprep.mubr.f32.mxu1 %v5191_v0  ;;  %3733 = vmatprep.subr.bf16.mxu0 %v5410_v62 }
  0x84   :  { %278 = vmatmul.mubr.f32.gmra.mrb[12].mxu0 %v89_v8  ;;  %3765 = vmatprep.subr.bf16.mxu1 %v5413_v4 }
  0x85   :  { %391 = vmatmul.mubr.f32.gmra.mrb[12].mxu1 %v89_v8  ;;  %3735 = vmatpush1.bf16.msra.mxu0 %v5419_v9 }
  0x86   :  { %3767 = vmatpush1.bf16.msra.mxu1 %v5423_v14  ;;  %283 = vmatprep.mubr.f32.mxu0 %v5191_v0 }
  0x87   :  { %396 = vmatprep.mubr.f32.mxu1 %v5191_v0  ;;  %3737 = vmatprep.subr.bf16.mxu0 %v5427_v18 }
  0x88   :  { %284 = vmatmul.mubr.f32.gmra.mrb[14].mxu0 %v90_v24  ;;  %3769 = vmatprep.subr.bf16.mxu1 %v5430_v22 }
  0x89   :  { %397 = vmatmul.mubr.f32.gmra.mrb[14].mxu1 %v90_v24  ;;  %3739 = vmatpush1.bf16.msra.mxu0 %v5436_v25 }
  0x8a   :  { %3771 = vmatpush1.bf16.msra.mxu1 %v5440_v27  ;;  %567 = vmatprep.mubr.f32.mxu0 %v5191_v0 }
  0x8b   :  { %638 = vmatprep.mubr.f32.mxu1 %v5191_v0  ;;  %3773 = vmatprep.subr.bf16.mxu0 %v5313_v38 }
  0x8c   :  { %568 = vmatmul.mubr.f32.vlgmr.msra.gmra.mrb[0].mxu0 %v5191_v0  ;;  %3805 = vmatprep.subr.bf16.mxu1 %v5315_v41 }
  0x8d   :  { %639 = vmatmul.mubr.f32.vlgmr.msra.gmra.mrb[0].mxu1 %v5191_v0  ;;  %3775 = vmatpush1.bf16.msra.mxu0 %v5320_v47 }
  0x8e   :  { %3807 = vmatpush1.bf16.msra.mxu1 %v5323_v50  ;;  %3777 = vmatprep.subr.bf16.mxu0 %v5326_v53 }
  0x8f   :  { %3809 = vmatprep.subr.bf16.mxu1 %v5328_v56  ;;  %737 = vmatprep.mubr.f32.mxu0 %v5191_v0 }
  0x90   :  { %808 = vmatprep.mubr.f32.mxu1 %v5191_v0 }
  0x91   :  { %3779 = vmatpush1.bf16.msra.mxu0 %v5334_v60 }
  0x92   :  { %3811 = vmatpush1.bf16.msra.mxu1 %v5338_v63  ;;  %3781 = vmatprep.subr.bf16.mxu0 %v5342_v3 }
  0x93   :  { %3813 = vmatprep.subr.bf16.mxu1 %v5345_v6 }
  0x95   :  { %3783 = vmatpush1.bf16.msra.mxu0 %v5351_v10 }
  0x96   :  { %3815 = vmatpush1.bf16.msra.mxu1 %v5355_v13  ;;  %3785 = vmatprep.subr.bf16.mxu0 %v5359_v16 }
  0x97   :  { %3817 = vmatprep.subr.bf16.mxu1 %v5362_v19 }
  0x99   :  { %3787 = vmatpush1.bf16.msra.mxu0 %v5368_v23 }
  0x9a   :  { %3819 = vmatpush1.bf16.msra.mxu1 %v5372_v26  ;;  %3789 = vmatprep.subr.bf16.mxu0 %v5376_v29 }
  0x9b   :  { %3821 = vmatprep.subr.bf16.mxu1 %v5379_v32 }
  0x9d   :  { %3791 = vmatpush1.bf16.msra.mxu0 %v5385_v36 }
  0x9e   :  { %3823 = vmatpush1.bf16.msra.mxu1 %v5389_v40  ;;  %3793 = vmatprep.subr.bf16.mxu0 %v5393_v44 }
  0x9f   :  { %3825 = vmatprep.subr.bf16.mxu1 %v5396_v48 }
  0xa1   :  { %3795 = vmatpush1.bf16.msra.mxu0 %v5402_v54 }
  0xa2   :  { %3827 = vmatpush1.bf16.msra.mxu1 %v5406_v58  ;;  %3797 = vmatprep.subr.bf16.mxu0 %v5410_v62 }
  0xa3   :  { %3829 = vmatprep.subr.bf16.mxu1 %v5413_v4 }
  0xa5   :  { %3799 = vmatpush1.bf16.msra.mxu0 %v5419_v9 }
  0xa6   :  { %3831 = vmatpush1.bf16.msra.mxu1 %v5423_v14  ;;  %3801 = vmatprep.subr.bf16.mxu0 %v5427_v18 }
  0xa7   :  { %3833 = vmatprep.subr.bf16.mxu1 %v5430_v22 }
  0xa9   :  { %3803 = vmatpush1.bf16.msra.mxu0 %v5436_v25 }
  0xaa   :  { %3835 = vmatpush1.bf16.msra.mxu1 %v5440_v27  ;;  %3837 = vmatprep.subr.bf16.mxu0 %v5313_v38 }
  0xab   :  { %3869 = vmatprep.subr.bf16.mxu1 %v5315_v41 }
 0x15f   :  { %v569_v42 = vpop.f32.mrb[0].mxu0 }
 0x160   :  { %v4796_v43 = vadd.f32 %v569_v42, %v5496_v35  ;;  %v640_v46 = vpop.f32.mrb[0].mxu1  ;;  %v571_v49 = vpop.f32.mrb[1].mxu0 }
 0x161   :  { %v4797_v52 = vadd.f32 %v571_v49, %v5501_v39  ;;  %v642_v55 = vpop.f32.mrb[1].mxu1  ;;  %v4812_v61 = vadd.f32 %v640_v46, %v5506_v45 }
 0x162   :  { %v649_v57 = vmul.f32 0.5, %v4796_v43  ;;  %v4813_v2 = vadd.f32 %v642_v55, %v5513_v1 }
 0x163   :  { %v653_v59 = vmul.f32 0.5, %v4797_v52 }
 0x164   :  { %4931 = vtanh.f32 %v649_v57  ;;  %v658_v5 = vmul.f32 0.5, %v4813_v2 }
 0x165   :  { %4933 = vtanh.f32 %v653_v59 }
 0x166   :  { %4935 = vtanh.f32 %v4812_v61 }
 0x167   :  { %4937 = vtanh.f32 %v658_v5 }
 0x16e   :  { %v4932_v7 = vpop.eup %4931 }
 0x16f   :  { %v4934_v8 = vpop.eup %4933  ;;  %v651_v11 = vmul.f32 0.5, %v4932_v7 }
 0x170   :  { %v655_v12 = vmul.f32 0.5, %v4934_v8  ;;  %v4936_v17 = vpop.eup %4935 }
 0x171   :  { %v652_v15 = vadd.f32 0.5, %v651_v11  ;;  %v4938_v33 = vpop.eup %4937 }
 0x172   :  { %v656_v20 = vadd.f32 0.5, %v655_v12  ;;  %v660_v42 = vmul.f32 0.5, %v4938_v33 }
 0x173   :  { %v663_v21 = vmul.f32 %v4936_v17, %v652_v15 }
 0x174   :  { %v662_v24 = vmul.f32 0.0, %v656_v20  ;;  %v661_v43 = vadd.f32 0.5, %v660_v42 }
 0x176   :  { %v5516_v28 = vadd.f32 %v663_v21, %v662_v24 }
 0x178   :  { %4939 = vtanh.f32 %v5516_v28 }
 0x182   :  { %v4940_v46 = vpop.eup %4939 }
 0x183   :  { %v5519_v49 = vmul.f32 %v4940_v46, %v661_v43 }
 0x185   :  { %738 = vmatmul.mubr.f32.vlgmr.msra.gmra.mrb[2].mxu0 %v5519_v49  ;;  %809 = vmatmul.mubr.f32.vlgmr.msra.gmra.mrb[2].mxu1 %v5519_v49 }
 0x186   :  { %3839 = vmatpush1.bf16.msra.mxu0 %v5320_v47  ;;  %3871 = vmatpush1.bf16.msra.mxu1 %v5323_v50 }
 0x187   :  { %3841 = vmatprep.subr.bf16.mxu0 %v5326_v53  ;;  %3873 = vmatprep.subr.bf16.mxu1 %v5328_v56 }
 0x188   :  { %908 = vmatprep.mubr.f32.mxu0 %v5191_v0  ;;  %979 = vmatprep.mubr.f32.mxu1 %v5191_v0 }
 0x18a   :  { %3843 = vmatpush1.bf16.msra.mxu0 %v5334_v60  ;;  %3875 = vmatpush1.bf16.msra.mxu1 %v5338_v63 }
 0x18b   :  { %3845 = vmatprep.subr.bf16.mxu0 %v5342_v3  ;;  %3877 = vmatprep.subr.bf16.mxu1 %v5345_v6 }
 0x18e   :  { %3847 = vmatpush1.bf16.msra.mxu0 %v5351_v10  ;;  %3879 = vmatpush1.bf16.msra.mxu1 %v5355_v13 }
 0x18f   :  { %3849 = vmatprep.subr.bf16.mxu0 %v5359_v16  ;;  %3881 = vmatprep.subr.bf16.mxu1 %v5362_v19 }
 0x192   :  { %3851 = vmatpush1.bf16.msra.mxu0 %v5368_v23  ;;  %3883 = vmatpush1.bf16.msra.mxu1 %v5372_v26 }
 0x193   :  { %3853 = vmatprep.subr.bf16.mxu0 %v5376_v29  ;;  %3885 = vmatprep.subr.bf16.mxu1 %v5379_v32 }
 0x196   :  { %3855 = vmatpush1.bf16.msra.mxu0 %v5385_v36  ;;  %3887 = vmatpush1.bf16.msra.mxu1 %v5389_v40 }
 0x197   :  { %3857 = vmatprep.subr.bf16.mxu0 %v5393_v44  ;;  %3889 = vmatprep.subr.bf16.mxu1 %v5396_v48 }
 0x19a   :  { %3859 = vmatpush1.bf16.msra.mxu0 %v5402_v54  ;;  %3891 = vmatpush1.bf16.msra.mxu1 %v5406_v58 }
 0x19b   :  { %3861 = vmatprep.subr.bf16.mxu0 %v5410_v62  ;;  %3893 = vmatprep.subr.bf16.mxu1 %v5413_v4 }
 0x19e   :  { %3863 = vmatpush1.bf16.msra.mxu0 %v5419_v9  ;;  %3895 = vmatpush1.bf16.msra.mxu1 %v5423_v14 }
 0x19f   :  { %3865 = vmatprep.subr.bf16.mxu0 %v5427_v18  ;;  %3897 = vmatprep.subr.bf16.mxu1 %v5430_v22 }
 0x1a2   :  { %3867 = vmatpush1.bf16.msra.mxu0 %v5436_v25  ;;  %3899 = vmatpush1.bf16.msra.mxu1 %v5440_v27 }
 0x1a3   :  { %3901 = vmatprep.subr.bf16.mxu0 %v5313_v38  ;;  %3933 = vmatprep.subr.bf16.mxu1 %v5315_v41 }
 0x258   :  { %v739_v52 = vpop.f32.mrb[2].mxu0  ;;  %v810_v55 = vpop.f32.mrb[2].mxu1 }
 0x259   :  { %v4798_v57 = vadd.f32 %v739_v52, %v5496_v35  ;;  %v741_v59 = vpop.f32.mrb[3].mxu0  ;;  %v812_v61 = vpop.f32.mrb[3].mxu1  ;;  %v4814_v8 = vadd.f32 %v810_v55, %v5506_v45 }
 0x25a   :  { %v4799_v2 = vadd.f32 %v741_v59, %v5501_v39  ;;  %v4815_v11 = vadd.f32 %v812_v61, %v5513_v1 }
 0x25b   :  { %v819_v5 = vmul.f32 0.5, %v4798_v57 }
 0x25c   :  { %v823_v7 = vmul.f32 0.5, %v4799_v2  ;;  %v828_v12 = vmul.f32 0.5, %v4815_v11 }
 0x25d   :  { %4941 = vtanh.f32 %v819_v5 }
 0x25e   :  { %4943 = vtanh.f32 %v823_v7 }
 0x25f   :  { %4945 = vtanh.f32 %v4814_v8 }
 0x260   :  { %4947 = vtanh.f32 %v828_v12 }
 0x267   :  { %v4942_v15 = vpop.eup %4941 }
 0x268   :  { %v4944_v17 = vpop.eup %4943  ;;  %v821_v20 = vmul.f32 0.5, %v4942_v15 }
 0x269   :  { %v825_v21 = vmul.f32 0.5, %v4944_v17  ;;  %v4946_v33 = vpop.eup %4945 }
 0x26a   :  { %v822_v24 = vadd.f32 0.5, %v821_v20  ;;  %v4948_v55 = vpop.eup %4947 }
 0x26b   :  { %v826_v42 = vadd.f32 0.5, %v825_v21  ;;  %v830_v57 = vmul.f32 0.5, %v4948_v55 }
 0x26c   :  { %v833_v43 = vmul.f32 %v4946_v33, %v822_v24 }
 0x26d   :  { %v832_v46 = vmul.f32 %v826_v42, %v5516_v28  ;;  %v831_v59 = vadd.f32 0.5, %v830_v57 }
 0x26f   :  { %v5562_v52 = vadd.f32 %v833_v43, %v832_v46 }
 0x271   :  { %4949 = vtanh.f32 %v5562_v52 }
 0x27b   :  { %v4950_v61 = vpop.eup %4949 }
 0x27c   :  { %v5565_v2 = vmul.f32 %v4950_v61, %v831_v59 }
 0x27e   :  { %909 = vmatmul.mubr.f32.vlgmr.msra.gmra.mrb[4].mxu0 %v5565_v2  ;;  %980 = vmatmul.mubr.f32.vlgmr.msra.gmra.mrb[4].mxu1 %v5565_v2 }
 0x27f   :  { %3903 = vmatpush1.bf16.msra.mxu0 %v5320_v47  ;;  %3935 = vmatpush1.bf16.msra.mxu1 %v5323_v50 }
 0x280   :  { %3905 = vmatprep.subr.bf16.mxu0 %v5326_v53  ;;  %3937 = vmatprep.subr.bf16.mxu1 %v5328_v56 }
 0x281   :  { %1079 = vmatprep.mubr.f32.mxu0 %v5191_v0  ;;  %1150 = vmatprep.mubr.f32.mxu1 %v5191_v0 }
 0x283   :  { %3907 = vmatpush1.bf16.msra.mxu0 %v5334_v60  ;;  %3939 = vmatpush1.bf16.msra.mxu1 %v5338_v63 }
 0x284   :  { %3909 = vmatprep.subr.bf16.mxu0 %v5342_v3  ;;  %3941 = vmatprep.subr.bf16.mxu1 %v5345_v6 }
 0x287   :  { %3911 = vmatpush1.bf16.msra.mxu0 %v5351_v10  ;;  %3943 = vmatpush1.bf16.msra.mxu1 %v5355_v13 }
 0x288   :  { %3913 = vmatprep.subr.bf16.mxu0 %v5359_v16  ;;  %3945 = vmatprep.subr.bf16.mxu1 %v5362_v19 }
 0x28b   :  { %3915 = vmatpush1.bf16.msra.mxu0 %v5368_v23  ;;  %3947 = vmatpush1.bf16.msra.mxu1 %v5372_v26 }
 0x28c   :  { %3917 = vmatprep.subr.bf16.mxu0 %v5376_v29  ;;  %3949 = vmatprep.subr.bf16.mxu1 %v5379_v32 }
 0x28f   :  { %3919 = vmatpush1.bf16.msra.mxu0 %v5385_v36  ;;  %3951 = vmatpush1.bf16.msra.mxu1 %v5389_v40 }
 0x290   :  { %3921 = vmatprep.subr.bf16.mxu0 %v5393_v44  ;;  %3953 = vmatprep.subr.bf16.mxu1 %v5396_v48 }
 0x293   :  { %3923 = vmatpush1.bf16.msra.mxu0 %v5402_v54  ;;  %3955 = vmatpush1.bf16.msra.mxu1 %v5406_v58 }
 0x294   :  { %3925 = vmatprep.subr.bf16.mxu0 %v5410_v62  ;;  %3957 = vmatprep.subr.bf16.mxu1 %v5413_v4 }
 0x297   :  { %3927 = vmatpush1.bf16.msra.mxu0 %v5419_v9  ;;  %3959 = vmatpush1.bf16.msra.mxu1 %v5423_v14 }
 0x298   :  { %3929 = vmatprep.subr.bf16.mxu0 %v5427_v18  ;;  %3961 = vmatprep.subr.bf16.mxu1 %v5430_v22 }
 0x29b   :  { %3931 = vmatpush1.bf16.msra.mxu0 %v5436_v25  ;;  %3963 = vmatpush1.bf16.msra.mxu1 %v5440_v27 }
 0x29c   :  { %3965 = vmatprep.subr.bf16.mxu0 %v5313_v38  ;;  %3997 = vmatprep.subr.bf16.mxu1 %v5315_v41 }
 0x351   :  { %v910_v28 = vpop.f32.mrb[4].mxu0  ;;  %v981_v5 = vpop.f32.mrb[4].mxu1 }
 0x352   :  { %v4800_v7 = vadd.f32 %v910_v28, %v5496_v35  ;;  %v912_v8 = vpop.f32.mrb[5].mxu0  ;;  %v983_v11 = vpop.f32.mrb[5].mxu1  ;;  %v4816_v20 = vadd.f32 %v981_v5, %v5506_v45 }
 0x353   :  { %v4801_v12 = vadd.f32 %v912_v8, %v5501_v39  ;;  %v4817_v21 = vadd.f32 %v983_v11, %v5513_v1 }
 0x354   :  { %v990_v15 = vmul.f32 0.5, %v4800_v7 }
 0x355   :  { %v994_v17 = vmul.f32 0.5, %v4801_v12  ;;  %v999_v24 = vmul.f32 0.5, %v4817_v21 }
 0x356   :  { %4951 = vtanh.f32 %v990_v15 }
 0x357   :  { %4953 = vtanh.f32 %v994_v17 }
 0x358   :  { %4955 = vtanh.f32 %v4816_v20 }
 0x359   :  { %4957 = vtanh.f32 %v999_v24 }
 0x360   :  { %v4952_v33 = vpop.eup %4951 }
 0x361   :  { %v4954_v42 = vpop.eup %4953  ;;  %v992_v43 = vmul.f32 0.5, %v4952_v33 }
 0x362   :  { %v996_v46 = vmul.f32 0.5, %v4954_v42  ;;  %v4956_v57 = vpop.eup %4955 }
 0x363   :  { %v993_v55 = vadd.f32 0.5, %v992_v43  ;;  %v4958_v5 = vpop.eup %4957 }
 0x364   :  { %v997_v59 = vadd.f32 0.5, %v996_v46  ;;  %v1001_v8 = vmul.f32 0.5, %v4958_v5 }
 0x365   :  { %v1004_v61 = vmul.f32 %v4956_v57, %v993_v55 }
 0x366   :  { %v1003_v28 = vmul.f32 %v997_v59, %v5562_v52  ;;  %v1002_v12 = vadd.f32 0.5, %v1001_v8 }
 0x368   :  { %v5608_v7 = vadd.f32 %v1004_v61, %v1003_v28 }
 0x36a   :  { %4959 = vtanh.f32 %v5608_v7 }
 0x374   :  { %v4960_v11 = vpop.eup %4959 }
 0x375   :  { %v5611_v15 = vmul.f32 %v4960_v11, %v1002_v12 }
 0x377   :  { %1080 = vmatmul.mubr.f32.vlgmr.msra.gmra.mrb[6].mxu0 %v5611_v15  ;;  %1151 = vmatmul.mubr.f32.vlgmr.msra.gmra.mrb[6].mxu1 %v5611_v15 }
 0x378   :  { %3967 = vmatpush1.bf16.msra.mxu0 %v5320_v47  ;;  %3999 = vmatpush1.bf16.msra.mxu1 %v5323_v50 }
 0x379   :  { %3969 = vmatprep.subr.bf16.mxu0 %v5326_v53  ;;  %4001 = vmatprep.subr.bf16.mxu1 %v5328_v56 }
 0x37a   :  { %1250 = vmatprep.mubr.f32.mxu0 %v5191_v0  ;;  %1321 = vmatprep.mubr.f32.mxu1 %v5191_v0 }
 0x37c   :  { %3971 = vmatpush1.bf16.msra.mxu0 %v5334_v60  ;;  %4003 = vmatpush1.bf16.msra.mxu1 %v5338_v63 }
 0x37d   :  { %3973 = vmatprep.subr.bf16.mxu0 %v5342_v3  ;;  %4005 = vmatprep.subr.bf16.mxu1 %v5345_v6 }
 0x380   :  { %3975 = vmatpush1.bf16.msra.mxu0 %v5351_v10  ;;  %4007 = vmatpush1.bf16.msra.mxu1 %v5355_v13 }
 0x381   :  { %3977 = vmatprep.subr.bf16.mxu0 %v5359_v16  ;;  %4009 = vmatprep.subr.bf16.mxu1 %v5362_v19 }
 0x384   :  { %3979 = vmatpush1.bf16.msra.mxu0 %v5368_v23  ;;  %4011 = vmatpush1.bf16.msra.mxu1 %v5372_v26 }
 0x385   :  { %3981 = vmatprep.subr.bf16.mxu0 %v5376_v29  ;;  %4013 = vmatprep.subr.bf16.mxu1 %v5379_v32 }
 0x388   :  { %3983 = vmatpush1.bf16.msra.mxu0 %v5385_v36  ;;  %4015 = vmatpush1.bf16.msra.mxu1 %v5389_v40 }
 0x389   :  { %3985 = vmatprep.subr.bf16.mxu0 %v5393_v44  ;;  %4017 = vmatprep.subr.bf16.mxu1 %v5396_v48 }
 0x38c   :  { %3987 = vmatpush1.bf16.msra.mxu0 %v5402_v54  ;;  %4019 = vmatpush1.bf16.msra.mxu1 %v5406_v58 }
 0x38d   :  { %3989 = vmatprep.subr.bf16.mxu0 %v5410_v62  ;;  %4021 = vmatprep.subr.bf16.mxu1 %v5413_v4 }
 0x390   :  { %3991 = vmatpush1.bf16.msra.mxu0 %v5419_v9  ;;  %4023 = vmatpush1.bf16.msra.mxu1 %v5423_v14 }
 0x391   :  { %3993 = vmatprep.subr.bf16.mxu0 %v5427_v18  ;;  %4025 = vmatprep.subr.bf16.mxu1 %v5430_v22 }
 0x394   :  { %3995 = vmatpush1.bf16.msra.mxu0 %v5436_v25  ;;  %4027 = vmatpush1.bf16.msra.mxu1 %v5440_v27 }
 0x395   :  { %4029 = vmatprep.subr.bf16.mxu0 %v5313_v38  ;;  %4061 = vmatprep.subr.bf16.mxu1 %v5315_v41 }
 0x44a   :  { %v1081_v52 = vpop.f32.mrb[6].mxu0  ;;  %v1152_v17 = vpop.f32.mrb[6].mxu1 }
 0x44b   :  { %v4802_v20 = vadd.f32 %v1081_v52, %v5496_v35  ;;  %v1083_v21 = vpop.f32.mrb[7].mxu0  ;;  %v1154_v24 = vpop.f32.mrb[7].mxu1  ;;  %v4818_v46 = vadd.f32 %v1152_v17, %v5506_v45 }
 0x44c   :  { %v4803_v33 = vadd.f32 %v1083_v21, %v5501_v39  ;;  %v4819_v55 = vadd.f32 %v1154_v24, %v5513_v1 }
 0x44d   :  { %v1161_v42 = vmul.f32 0.5, %v4802_v20 }
 0x44e   :  { %v1165_v43 = vmul.f32 0.5, %v4803_v33  ;;  %v1170_v57 = vmul.f32 0.5, %v4819_v55 }
 0x44f   :  { %4961 = vtanh.f32 %v1161_v42 }
 0x450   :  { %4963 = vtanh.f32 %v1165_v43 }
 0x451   :  { %4965 = vtanh.f32 %v4818_v46 }
 0x452   :  { %4967 = vtanh.f32 %v1170_v57 }
 0x459   :  { %v4962_v59 = vpop.eup %4961 }
 0x45a   :  { %v4964_v61 = vpop.eup %4963  ;;  %v1163_v28 = vmul.f32 0.5, %v4962_v59 }
 0x45b   :  { %v1167_v5 = vmul.f32 0.5, %v4964_v61  ;;  %v4966_v12 = vpop.eup %4965 }
 0x45c   :  { %v1164_v8 = vadd.f32 0.5, %v1163_v28  ;;  %v4968_v17 = vpop.eup %4967 }
 0x45d   :  { %v1168_v11 = vadd.f32 0.5, %v1167_v5  ;;  %v1172_v33 = vmul.f32 0.5, %v4968_v17 }
 0x45e   :  { %v1175_v52 = vmul.f32 %v4966_v12, %v1164_v8 }
 0x45f   :  { %v1174_v20 = vmul.f32 %v1168_v11, %v5608_v7  ;;  %v1173_v42 = vadd.f32 0.5, %v1172_v33 }
 0x461   :  { %v5654_v21 = vadd.f32 %v1175_v52, %v1174_v20 }
 0x463   :  { %4969 = vtanh.f32 %v5654_v21 }
 0x46d   :  { %v4970_v24 = vpop.eup %4969 }
 0x46e   :  { %v5657_v43 = vmul.f32 %v4970_v24, %v1173_v42 }
 0x470   :  { %1251 = vmatmul.mubr.f32.vlgmr.msra.gmra.mrb[8].mxu0 %v5657_v43  ;;  %1322 = vmatmul.mubr.f32.vlgmr.msra.gmra.mrb[8].mxu1 %v5657_v43 }
 0x471   :  { %4031 = vmatpush1.bf16.msra.mxu0 %v5320_v47  ;;  %4063 = vmatpush1.bf16.msra.mxu1 %v5323_v50 }
 0x472   :  { %4033 = vmatprep.subr.bf16.mxu0 %v5326_v53  ;;  %4065 = vmatprep.subr.bf16.mxu1 %v5328_v56 }
 0x473   :  { %1421 = vmatprep.mubr.f32.mxu0 %v5191_v0  ;;  %1492 = vmatprep.mubr.f32.mxu1 %v5191_v0 }
 0x475   :  { %4035 = vmatpush1.bf16.msra.mxu0 %v5334_v60  ;;  %4067 = vmatpush1.bf16.msra.mxu1 %v5338_v63 }
 0x476   :  { %4037 = vmatprep.subr.bf16.mxu0 %v5342_v3  ;;  %4069 = vmatprep.subr.bf16.mxu1 %v5345_v6 }
 0x479   :  { %4039 = vmatpush1.bf16.msra.mxu0 %v5351_v10  ;;  %4071 = vmatpush1.bf16.msra.mxu1 %v5355_v13 }
 0x47a   :  { %4041 = vmatprep.subr.bf16.mxu0 %v5359_v16  ;;  %4073 = vmatprep.subr.bf16.mxu1 %v5362_v19 }
 0x47d   :  { %4043 = vmatpush1.bf16.msra.mxu0 %v5368_v23  ;;  %4075 = vmatpush1.bf16.msra.mxu1 %v5372_v26 }
 0x47e   :  { %4045 = vmatprep.subr.bf16.mxu0 %v5376_v29  ;;  %4077 = vmatprep.subr.bf16.mxu1 %v5379_v32 }
 0x481   :  { %4047 = vmatpush1.bf16.msra.mxu0 %v5385_v36  ;;  %4079 = vmatpush1.bf16.msra.mxu1 %v5389_v40 }
 0x482   :  { %4049 = vmatprep.subr.bf16.mxu0 %v5393_v44  ;;  %4081 = vmatprep.subr.bf16.mxu1 %v5396_v48 }
 0x485   :  { %4051 = vmatpush1.bf16.msra.mxu0 %v5402_v54  ;;  %4083 = vmatpush1.bf16.msra.mxu1 %v5406_v58 }
 0x486   :  { %4053 = vmatprep.subr.bf16.mxu0 %v5410_v62  ;;  %4085 = vmatprep.subr.bf16.mxu1 %v5413_v4 }
 0x489   :  { %4055 = vmatpush1.bf16.msra.mxu0 %v5419_v9  ;;  %4087 = vmatpush1.bf16.msra.mxu1 %v5423_v14 }
 0x48a   :  { %4057 = vmatprep.subr.bf16.mxu0 %v5427_v18  ;;  %4089 = vmatprep.subr.bf16.mxu1 %v5430_v22 }
 0x48d   :  { %4059 = vmatpush1.bf16.msra.mxu0 %v5436_v25  ;;  %4091 = vmatpush1.bf16.msra.mxu1 %v5440_v27 }
 0x48e   :  { %4093 = vmatprep.subr.bf16.mxu0 %v5313_v38  ;;  %4125 = vmatprep.subr.bf16.mxu1 %v5315_v41 }
 0x543   :  { %v1252_v7 = vpop.f32.mrb[8].mxu0  ;;  %v1323_v46 = vpop.f32.mrb[8].mxu1 }
 0x544   :  { %v4804_v55 = vadd.f32 %v1252_v7, %v5496_v35  ;;  %v1254_v57 = vpop.f32.mrb[9].mxu0  ;;  %v1325_v59 = vpop.f32.mrb[9].mxu1  ;;  %v4820_v8 = vadd.f32 %v1323_v46, %v5506_v45 }
 0x545   :  { %v4805_v61 = vadd.f32 %v1254_v57, %v5501_v39  ;;  %v4821_v12 = vadd.f32 %v1325_v59, %v5513_v1 }
 0x546   :  { %v1332_v28 = vmul.f32 0.5, %v4804_v55 }
 0x547   :  { %v1336_v5 = vmul.f32 0.5, %v4805_v61  ;;  %v1341_v11 = vmul.f32 0.5, %v4821_v12 }
 0x548   :  { %4971 = vtanh.f32 %v1332_v28 }
 0x549   :  { %4973 = vtanh.f32 %v1336_v5 }
 0x54a   :  { %4975 = vtanh.f32 %v4820_v8 }
 0x54b   :  { %4977 = vtanh.f32 %v1341_v11 }
 0x552   :  { %v4972_v52 = vpop.eup %4971 }
 0x553   :  { %v4974_v20 = vpop.eup %4973  ;;  %v1334_v17 = vmul.f32 0.5, %v4972_v52 }
 0x554   :  { %v1338_v33 = vmul.f32 0.5, %v4974_v20  ;;  %v4976_v24 = vpop.eup %4975 }
 0x555   :  { %v1335_v42 = vadd.f32 0.5, %v1334_v17  ;;  %v4978_v46 = vpop.eup %4977 }
 0x556   :  { %v1339_v7 = vadd.f32 0.5, %v1338_v33  ;;  %v1343_v61 = vmul.f32 0.5, %v4978_v46 }
 0x557   :  { %v1346_v51 = vmul.f32 %v4976_v24, %v1335_v42 }
 0x558   :  { %v1345_v55 = vmul.f32 %v1339_v7, %v5654_v21  ;;  %v1344_v28 = vadd.f32 0.5, %v1343_v61 }
 0x55a   :  { %v5700_v57 = vadd.f32 %v1346_v51, %v1345_v55 }
 0x55c   :  { %4979 = vtanh.f32 %v5700_v57 }
 0x566   :  { %v4980_v59 = vpop.eup %4979 }
 0x567   :  { %v5703_v5 = vmul.f32 %v4980_v59, %v1344_v28 }
 0x569   :  { %1422 = vmatmul.mubr.f32.vlgmr.msra.gmra.mrb[10].mxu0 %v5703_v5  ;;  %1493 = vmatmul.mubr.f32.vlgmr.msra.gmra.mrb[10].mxu1 %v5703_v5 }
 0x56a   :  { %4095 = vmatpush1.bf16.msra.mxu0 %v5320_v47  ;;  %4127 = vmatpush1.bf16.msra.mxu1 %v5323_v50 }
 0x56b   :  { %4097 = vmatprep.subr.bf16.mxu0 %v5326_v53  ;;  %4129 = vmatprep.subr.bf16.mxu1 %v5328_v56 }
 0x56c   :  { %1592 = vmatprep.mubr.f32.mxu0 %v5191_v0  ;;  %1663 = vmatprep.mubr.f32.mxu1 %v5191_v0 }
 0x56e   :  { %4099 = vmatpush1.bf16.msra.mxu0 %v5334_v60  ;;  %4131 = vmatpush1.bf16.msra.mxu1 %v5338_v63 }
 0x56f   :  { %4101 = vmatprep.subr.bf16.mxu0 %v5342_v3  ;;  %4133 = vmatprep.subr.bf16.mxu1 %v5345_v6 }
 0x572   :  { %4103 = vmatpush1.bf16.msra.mxu0 %v5351_v10  ;;  %4135 = vmatpush1.bf16.msra.mxu1 %v5355_v13 }
 0x573   :  { %4105 = vmatprep.subr.bf16.mxu0 %v5359_v16  ;;  %4137 = vmatprep.subr.bf16.mxu1 %v5362_v19 }
 0x576   :  { %4107 = vmatpush1.bf16.msra.mxu0 %v5368_v23  ;;  %4139 = vmatpush1.bf16.msra.mxu1 %v5372_v26 }
 0x577   :  { %4109 = vmatprep.subr.bf16.mxu0 %v5376_v29  ;;  %4141 = vmatprep.subr.bf16.mxu1 %v5379_v32 }
 0x57a   :  { %4111 = vmatpush1.bf16.msra.mxu0 %v5385_v36  ;;  %4143 = vmatpush1.bf16.msra.mxu1 %v5389_v40 }
 0x57b   :  { %4113 = vmatprep.subr.bf16.mxu0 %v5393_v44  ;;  %4145 = vmatprep.subr.bf16.mxu1 %v5396_v48 }
 0x57e   :  { %4115 = vmatpush1.bf16.msra.mxu0 %v5402_v54  ;;  %4147 = vmatpush1.bf16.msra.mxu1 %v5406_v58 }
 0x57f   :  { %4117 = vmatprep.subr.bf16.mxu0 %v5410_v62  ;;  %4149 = vmatprep.subr.bf16.mxu1 %v5413_v4 }
 0x582   :  { %4119 = vmatpush1.bf16.msra.mxu0 %v5419_v9  ;;  %4151 = vmatpush1.bf16.msra.mxu1 %v5423_v14 }
 0x583   :  { %4121 = vmatprep.subr.bf16.mxu0 %v5427_v18  ;;  %4153 = vmatprep.subr.bf16.mxu1 %v5430_v22 }
 0x586   :  { %4123 = vmatpush1.bf16.msra.mxu0 %v5436_v25  ;;  %4155 = vmatpush1.bf16.msra.mxu1 %v5440_v27 }
 0x587   :  { %4157 = vmatprep.subr.bf16.mxu0 %v5313_v38  ;;  %4189 = vmatprep.subr.bf16.mxu1 %v5315_v41 }
 0x63c   :  { %v1423_v51 = vpop.f32.mrb[10].mxu0  ;;  %v1494_v21 = vpop.f32.mrb[10].mxu1 }
 0x63d   :  { %v4806_v8 = vadd.f32 %v1423_v51, %v5496_v35  ;;  %v1425_v12 = vpop.f32.mrb[11].mxu0  ;;  %v1496_v11 = vpop.f32.mrb[11].mxu1  ;;  %v4822_v33 = vadd.f32 %v1494_v21, %v5506_v45 }
 0x63e   :  { %v4807_v52 = vadd.f32 %v1425_v12, %v5501_v39  ;;  %v4823_v42 = vadd.f32 %v1496_v11, %v5513_v1 }
 0x63f   :  { %v1503_v20 = vmul.f32 0.5, %v4806_v8 }
 0x640   :  { %v1507_v17 = vmul.f32 0.5, %v4807_v52  ;;  %v1512_v38 = vmul.f32 0.5, %v4823_v42  ;;  %v1884_v42 = vld [vmem:[#allocation8 + $0x48] sm:$0xff] }
 0x641   :  { %4981 = vtanh.f32 %v1503_v20 }
 0x642   :  { %4983 = vtanh.f32 %v1507_v17  ;;  %v1877_v17 = vld [vmem:[#allocation8 + $0x10] sm:$0xff] }
 0x643   :  { %4985 = vtanh.f32 %v4822_v33  ;;  %v1881_v33 = vld [vmem:[#allocation8 + $0x30] sm:$0xff] }
 0x644   :  { %4987 = vtanh.f32 %v1512_v38  ;;  %v1888_v38 = vld [vmem:[#allocation8 + $0x68] sm:$0xff] }
 0x64b   :  { %v4982_v24 = vpop.eup %4981 }
 0x64c   :  { %v4984_v41 = vpop.eup %4983  ;;  %v1505_v7 = vmul.f32 0.5, %v4982_v24  ;;  %v1886_v24 = vld [vmem:[#allocation8 + $0x58] sm:$0xff] }
 0x64d   :  { %v1509_v55 = vmul.f32 0.5, %v4984_v41  ;;  %v4986_v61 = vpop.eup %4985  ;;  %v1890_v41 = vld [vmem:[#allocation8 + $0x78] sm:$0xff] }
 0x64e   :  { %v1506_v46 = vadd.f32 0.5, %v1505_v7  ;;  %v4988_v21 = vpop.eup %4987 }
 0x64f   :  { %v1510_v28 = vadd.f32 0.5, %v1509_v55  ;;  %v1514_v12 = vmul.f32 0.5, %v4988_v21  ;;  %v4256_v21 = vpack.c.bf16 %v1890_v41, %v1886_v24  ;;  %v1913_v24 = vld [vmem:[#allocation8 + $0x130] sm:$0xff]  ;;  %v1916_v41 = vld [vmem:[#allocation8 + $0x148] sm:$0xff] }
 0x650   :  { %v1517_v59 = vmul.f32 %v4986_v61, %v1506_v46  ;;  %v4254_v61 = vpack.c.bf16 %v1881_v33, %v1877_v17  ;;  %v1911_v17 = vld [vmem:[#allocation8 + $0x120] sm:$0xff] }
 0x651   :  { %v1516_v51 = vmul.f32 %v1510_v28, %v5700_v57  ;;  %v1515_v52 = vadd.f32 0.5, %v1514_v12  ;;  %v1879_v57 = vld [vmem:[#allocation8 + $0x20] sm:$0xff]  ;;  %v1885_v12 = vld [vmem:[#allocation8 + $0x50] sm:$0xff] }
 0x652   :  { %v1883_v28 = vld [vmem:[#allocation8 + $0x40] sm:$0xff] }
 0x653   :  { %v5746_v8 = vadd.f32 %v1517_v59, %v1516_v51  ;;  %v1887_v59 = vld [vmem:[#allocation8 + $0x60] sm:$0xff] }
 0x655   :  { %4989 = vtanh.f32 %v5746_v8 }
 0x65f   :  { %v4990_v11 = vpop.eup %4989 }
 0x660   :  { %v5749_v20 = vmul.f32 %v4990_v11, %v1515_v52  ;;  %v1889_v52 = vld [vmem:[#allocation8 + $0x70] sm:$0xff]  ;;  %v1892_v11 = vld [vmem:[#allocation8 + $0x88] sm:$0xff] }
 0x662   :  { %1593 = vmatmul.mubr.f32.vlgmr.msra.gmra.mrb[12].mxu0 %v5749_v20  ;;  %1664 = vmatmul.mubr.f32.vlgmr.msra.gmra.mrb[12].mxu1 %v5749_v20 }
 0x663   :  { %4159 = vmatpush1.bf16.msra.mxu0 %v5320_v47  ;;  %4191 = vmatpush1.bf16.msra.mxu1 %v5323_v50  ;;  %v1876_v47 = vld [vmem:[#allocation8 + $0x8] sm:$0xff] }
 0x664   :  { %4161 = vmatprep.subr.bf16.mxu0 %v5326_v53  ;;  %4193 = vmatprep.subr.bf16.mxu1 %v5328_v56  ;;  %v1880_v50 = vld [vmem:[#allocation8 + $0x28] sm:$0xff]  ;;  %v1878_v53 = vld [vmem:[#allocation8 + $0x18] sm:$0xff] }
 0x665   :  { %1763 = vmatprep.mubr.f32.mxu0 %v5191_v0  ;;  %1834 = vmatprep.mubr.f32.mxu1 %v5191_v0  ;;  %v4220_v56 = vpack.c.bf16 %v1880_v50, %v1876_v47  ;;  %v1896_v47 = vld [vmem:[#allocation8 + $0xa8] sm:$0xff]  ;;  %v1894_v50 = vld [vmem:[#allocation8 + $0x98] sm:$0xff] }
 0x667   :  { %4163 = vmatpush1.bf16.msra.mxu0 %v5334_v60  ;;  %4195 = vmatpush1.bf16.msra.mxu1 %v5338_v63  ;;  %v1882_v60 = vld [vmem:[#allocation8 + $0x38] sm:$0xff] }
 0x668   :  { %4165 = vmatprep.subr.bf16.mxu0 %v5342_v3  ;;  %4197 = vmatprep.subr.bf16.mxu1 %v5345_v6  ;;  %v4252_v63 = vpack.c.bf16 %v1882_v60, %v1878_v53  ;;  %v1898_v53 = vld [vmem:[#allocation8 + $0xb8] sm:$0xff]  ;;  %v4258_v60 = vpack.c.bf16 %v1889_v52, %v1885_v12  ;;  %v1917_v52 = vld [vmem:[#allocation8 + $0x150] sm:$0xff] }
 0x66b   :  { %4167 = vmatpush1.bf16.msra.mxu0 %v5351_v10  ;;  %4199 = vmatpush1.bf16.msra.mxu1 %v5355_v13 }
 0x66c   :  { %4169 = vmatprep.subr.bf16.mxu0 %v5359_v16  ;;  %4201 = vmatprep.subr.bf16.mxu1 %v5362_v19 }
 0x66f   :  { %4171 = vmatpush1.bf16.msra.mxu0 %v5368_v23  ;;  %4203 = vmatpush1.bf16.msra.mxu1 %v5372_v26 }
 0x670   :  { %4173 = vmatprep.subr.bf16.mxu0 %v5376_v29  ;;  %4205 = vmatprep.subr.bf16.mxu1 %v5379_v32 }
 0x673   :  { %4175 = vmatpush1.bf16.msra.mxu0 %v5385_v36  ;;  %4207 = vmatpush1.bf16.msra.mxu1 %v5389_v40 }
 0x674   :  { %4177 = vmatprep.subr.bf16.mxu0 %v5393_v44  ;;  %4209 = vmatprep.subr.bf16.mxu1 %v5396_v48 }
 0x677   :  { %4179 = vmatpush1.bf16.msra.mxu0 %v5402_v54  ;;  %4211 = vmatpush1.bf16.msra.mxu1 %v5406_v58 }
 0x678   :  { %4181 = vmatprep.subr.bf16.mxu0 %v5410_v62  ;;  %4213 = vmatprep.subr.bf16.mxu1 %v5413_v4 }
 0x67b   :  { %4183 = vmatpush1.bf16.msra.mxu0 %v5419_v9  ;;  %4215 = vmatpush1.bf16.msra.mxu1 %v5423_v14 }
 0x67c   :  { %4185 = vmatprep.subr.bf16.mxu0 %v5427_v18  ;;  %4217 = vmatprep.subr.bf16.mxu1 %v5430_v22 }
 0x67f   :  { %4187 = vmatpush1.bf16.msra.mxu0 %v5436_v25  ;;  %4219 = vmatpush1.bf16.msra.mxu1 %v5440_v27  ;;  %v1875_v27 = vld [vmem:[#allocation8] sm:$0xff] }
 0x680   :  { %4221 = vmatprep.subr.bf16.mxu0 %v4220_v56  ;;  %4253 = vmatprep.subr.bf16.mxu1 %v4252_v63  ;;  %v4222_v46 = vpack.c.bf16 %v1879_v57, %v1875_v27  ;;  %v4226_v56 = vpack.c.bf16 %v1887_v59, %v1883_v28  ;;  %v1891_v63 = vld [vmem:[#allocation8 + $0x80] sm:$0xff] }
 0x681   :  { %v1907_v57 = vld [vmem:[#allocation8 + $0x100] sm:$0xff] }
 0x682   :  { %v1915_v59 = vld [vmem:[#allocation8 + $0x140] sm:$0xff] }
 0x735   :  { %v1594_v3 = vpop.f32.mrb[12].mxu0  ;;  %v1665_v6 = vpop.f32.mrb[12].mxu1 }
 0x736   :  { %v4808_v10 = vadd.f32 %v1594_v3, %v5496_v35  ;;  %v1596_v13 = vpop.f32.mrb[13].mxu0  ;;  %v1667_v16 = vpop.f32.mrb[13].mxu1  ;;  %v4824_v29 = vadd.f32 %v1665_v6, %v5506_v45  ;;  %v1895_v3 = vld [vmem:[#allocation8 + $0xa0] sm:$0xff]  ;;  %v4228_v6 = vpack.c.bf16 %v1896_v47, %v1892_v11  ;;  %v1921_v11 = vld [vmem:[#allocation8 + $0x170] sm:$0xff]  ;;  %v1924_v47 = vld [vmem:[#allocation8 + $0x188] sm:$0xff] }
 0x737   :  { %v4809_v19 = vadd.f32 %v1596_v13, %v5501_v39  ;;  %v4825_v32 = vadd.f32 %v1667_v16, %v5513_v1  ;;  %v1893_v13 = vld [vmem:[#allocation8 + $0x90] sm:$0xff] }
 0x738   :  { %v1674_v23 = vmul.f32 0.5, %v4808_v10  ;;  %v4260_v10 = vpack.c.bf16 %v1898_v53, %v1894_v50  ;;  %v1897_v16 = vld [vmem:[#allocation8 + $0xb0] sm:$0xff]  ;;  %v1928_v50 = vld [vmem:[#allocation8 + $0x1a8] sm:$0xff]  ;;  %v1926_v53 = vld [vmem:[#allocation8 + $0x198] sm:$0xff] }
 0x739   :  { %v1678_v26 = vmul.f32 0.5, %v4809_v19  ;;  %v1683_v36 = vmul.f32 0.5, %v4825_v32  ;;  %v1900_v19 = vld [vmem:[#allocation8 + $0xc8] sm:$0xff]  ;;  %v4230_v32 = vpack.c.bf16 %v1895_v3, %v1891_v63  ;;  %v4274_v63 = vpack.c.bf16 %v1921_v11, %v1917_v52  ;;  %v1923_v3 = vld [vmem:[#allocation8 + $0x180] sm:$0xff]  ;;  %v2238_v52 = vld [vmem:[#allocation9 + $0x98] sm:$0xff] }
 0x73a   :  { %4991 = vtanh.f32 %v1674_v23  ;;  %v1904_v23 = vld [vmem:[#allocation8 + $0xe8] sm:$0xff] }
 0x73b   :  { %4993 = vtanh.f32 %v1678_v26  ;;  %v1902_v26 = vld [vmem:[#allocation8 + $0xd8] sm:$0xff] }
 0x73c   :  { %4995 = vtanh.f32 %v4824_v29  ;;  %v1906_v29 = vld [vmem:[#allocation8 + $0xf8] sm:$0xff] }
 0x73d   :  { %4997 = vtanh.f32 %v1683_v36  ;;  %v4262_v36 = vpack.c.bf16 %v1897_v16, %v1893_v13  ;;  %v1925_v16 = vld [vmem:[#allocation8 + $0x190] sm:$0xff] }
 0x744   :  { %v4992_v40 = vpop.eup %4991 }
 0x745   :  { %v4994_v44 = vpop.eup %4993  ;;  %v1676_v48 = vmul.f32 0.5, %v4992_v40  ;;  %v1899_v40 = vld [vmem:[#allocation8 + $0xc0] sm:$0xff] }
 0x746   :  { %v1680_v54 = vmul.f32 0.5, %v4994_v44  ;;  %v4996_v62 = vpop.eup %4995  ;;  %v1903_v44 = vld [vmem:[#allocation8 + $0xe0] sm:$0xff] }
 0x747   :  { %v1677_v58 = vadd.f32 0.5, %v1676_v48  ;;  %v4998_v22 = vpop.eup %4997  ;;  %v4232_v48 = vpack.c.bf16 %v1904_v23, %v1900_v19  ;;  %v1929_v19 = vld [vmem:[#allocation8 + $0x1b0] sm:$0xff]  ;;  %v1932_v23 = vld [vmem:[#allocation8 + $0x1c8] sm:$0xff] }
 0x748   :  { %v1681_v4 = vadd.f32 0.5, %v1680_v54  ;;  %v1685_v25 = vmul.f32 0.5, %v4998_v22  ;;  %v4264_v54 = vpack.c.bf16 %v1906_v29, %v1902_v26  ;;  %v1914_v22 = vld [vmem:[#allocation8 + $0x138] sm:$0xff]  ;;  %v1936_v26 = vld [vmem:[#allocation8 + $0x1e8] sm:$0xff] }
 0x749   :  { %v1688_v9 = vmul.f32 %v4996_v62, %v1677_v58  ;;  %v1901_v58 = vld [vmem:[#allocation8 + $0xd0] sm:$0xff]  ;;  %v1934_v29 = vld [vmem:[#allocation8 + $0x1d8] sm:$0xff] }
 0x74a   :  { %v1687_v14 = vmul.f32 %v1681_v4, %v5746_v8  ;;  %v1686_v7 = vadd.f32 0.5, %v1685_v25  ;;  %v4224_v8 = vpack.c.bf16 %v1888_v38, %v1884_v42  ;;  %v1905_v62 = vld [vmem:[#allocation8 + $0xf0] sm:$0xff]  ;;  %v1908_v4 = vld [vmem:[#allocation8 + $0x108] sm:$0xff]  ;;  %v4234_v25 = vpack.c.bf16 %v1903_v44, %v1899_v40  ;;  %v1931_v44 = vld [vmem:[#allocation8 + $0x1c0] sm:$0xff] }
 0x74b   :  { %v4266_v27 = vpack.c.bf16 %v1905_v62, %v1901_v58  ;;  %v1909_v38 = vld [vmem:[#allocation8 + $0x110] sm:$0xff]  ;;  %v4278_v40 = vpack.c.bf16 %v1929_v19, %v1925_v16  ;;  %v1935_v58 = vld [vmem:[#allocation8 + $0x1e0] sm:$0xff]  ;;  %v2246_v16 = vld [vmem:[#allocation9 + $0xd8] sm:$0xff] }
 0x74c   :  { %v5790_v18 = vadd.f32 %v1688_v9, %v1687_v14  ;;  %v1912_v9 = vld [vmem:[#allocation8 + $0x128] sm:$0xff]  ;;  %v1910_v14 = vld [vmem:[#allocation8 + $0x118] sm:$0xff]  ;;  %v4270_v28 = vpack.c.bf16 %v1913_v24, %v1909_v38  ;;  %v1933_v62 = vld [vmem:[#allocation8 + $0x1d0] sm:$0xff] }
 0x74d   :  { %v4236_v33 = vpack.c.bf16 %v1912_v9, %v1908_v4  ;;  %v4268_v42 = vpack.c.bf16 %v1914_v22, %v1910_v14  ;;  %v1937_v4 = vld [vmem:[#allocation8 + $0x1f0] sm:$0xff]  ;;  %v4250_v9 = vpack.c.bf16 %v1935_v58, %v1931_v44  ;;  %v2219_v22 = vld [vmem:[#allocation9] sm:$0xff]  ;;  %v2230_v38 = vld [vmem:[#allocation9 + $0x58] sm:$0xff] }
 0x74e   :  { %4999 = vtanh.f32 %v5790_v18  ;;  %v4282_v14 = vpack.c.bf16 %v1937_v4, %v1933_v62  ;;  %v2249_v44 = vld [vmem:[#allocation9 + $0xf0] sm:$0xff]  ;;  %v2256_v58 = vld [vmem:[#allocation9 + $0x128] sm:$0xff]  ;;  %v2254_v62 = vld [vmem:[#allocation9 + $0x118] sm:$0xff] }
 0x758   :  { %v5000_v55 = vpop.eup %4999 }
 0x759   :  { %v5793_v51 = vmul.f32 %v5000_v55, %v1686_v7  ;;  %v1920_v7 = vld [vmem:[#allocation8 + $0x168] sm:$0xff]  ;;  %v1918_v55 = vld [vmem:[#allocation8 + $0x158] sm:$0xff] }
 0x75b   :  { %1764 = vmatmul.mubr.f32.vlgmr.msra.gmra.mrb[14].mxu0 %v5793_v51  ;;  %1835 = vmatmul.mubr.f32.vlgmr.msra.gmra.mrb[14].mxu1 %v5793_v51 }
 0x75c   :  { %4223 = vmatpush1.bf16.msra.mxu0 %v4222_v46  ;;  %4255 = vmatpush1.bf16.msra.mxu1 %v4254_v61  ;;  %v1922_v46 = vld [vmem:[#allocation8 + $0x178] sm:$0xff]  ;;  %v4238_v61 = vpack.c.bf16 %v1911_v17, %v1907_v57  ;;  %v2221_v57 = vld [vmem:[#allocation9 + $0x10] sm:$0xff] }
 0x75d   :  { %4225 = vmatprep.subr.bf16.mxu0 %v4224_v8  ;;  %4257 = vmatprep.subr.bf16.mxu1 %v4256_v21  ;;  %v1919_v8 = vld [vmem:[#allocation8 + $0x160] sm:$0xff]  ;;  %v4240_v21 = vpack.c.bf16 %v1920_v7, %v1916_v41  ;;  %v4272_v12 = vpack.c.bf16 %v1922_v46, %v1918_v55  ;;  %v2225_v17 = vld [vmem:[#allocation9 + $0x30] sm:$0xff]  ;;  %v2234_v41 = vld [vmem:[#allocation9 + $0x78] sm:$0xff] }
 0x75e   :  { %2025 = vmatprep.mubr.f32.mxu0 %v5191_v0  ;;  %2138 = vmatprep.mubr.f32.mxu1 %v5191_v0  ;;  %v2227_v7 = vld [vmem:[#allocation9 + $0x40] sm:$0xff]  ;;  %v5841_v46 = vpack.c.bf16 %v2234_v41, %v2230_v38 }
 0x75f   :  { %v2231_v55 = vld [vmem:[#allocation9 + $0x60] sm:$0xff] }
 0x760   :  { %4227 = vmatpush1.bf16.msra.mxu0 %v4226_v56  ;;  %4259 = vmatpush1.bf16.msra.mxu1 %v4258_v60  ;;  %v1930_v56 = vld [vmem:[#allocation8 + $0x1b8] sm:$0xff]  ;;  %v4242_v60 = vpack.c.bf16 %v1919_v8, %v1915_v59  ;;  %v2233_v59 = vld [vmem:[#allocation9 + $0x70] sm:$0xff] }
 0x761   :  { %4229 = vmatprep.subr.bf16.mxu0 %v4228_v6  ;;  %4261 = vmatprep.subr.bf16.mxu1 %v4260_v10  ;;  %v1927_v6 = vld [vmem:[#allocation8 + $0x1a0] sm:$0xff]  ;;  %v4244_v10 = vpack.c.bf16 %v1928_v50, %v1924_v47  ;;  %v4276_v13 = vpack.c.bf16 %v1930_v56, %v1926_v53  ;;  %v2242_v47 = vld [vmem:[#allocation9 + $0xb8] sm:$0xff] }
 0x762   :  { %v2235_v50 = vld [vmem:[#allocation9 + $0x80] sm:$0xff]  ;;  %v5853_v56 = vpack.c.bf16 %v2242_v47, %v2238_v52  ;;  %v2272_v52 = vld [vmem:[#allocation9 + $0x1a8] sm:$0xff] }
 0x763   :  { %v2239_v53 = vld [vmem:[#allocation9 + $0xa0] sm:$0xff] }
 0x764   :  { %4231 = vmatpush1.bf16.msra.mxu0 %v4230_v32  ;;  %4263 = vmatpush1.bf16.msra.mxu1 %v4262_v36  ;;  %v1938_v32 = vld [vmem:[#allocation8 + $0x1f8] sm:$0xff]  ;;  %v4246_v36 = vpack.c.bf16 %v1927_v6, %v1923_v3  ;;  %v2241_v3 = vld [vmem:[#allocation9 + $0xb0] sm:$0xff] }
 0x765   :  { %4233 = vmatprep.subr.bf16.mxu0 %v4232_v48  ;;  %4265 = vmatprep.subr.bf16.mxu1 %v4264_v54  ;;  %v4248_v48 = vpack.c.bf16 %v1936_v26, %v1932_v23  ;;  %v4280_v54 = vpack.c.bf16 %v1938_v32, %v1934_v29  ;;  %v2250_v23 = vld [vmem:[#allocation9 + $0xf8] sm:$0xff]  ;;  %v2243_v26 = vld [vmem:[#allocation9 + $0xc0] sm:$0xff] }
 0x766   :  { %v2247_v29 = vld [vmem:[#allocation9 + $0xe0] sm:$0xff]  ;;  %v5865_v32 = vpack.c.bf16 %v2250_v23, %v2246_v16  ;;  %v2269_v16 = vld [vmem:[#allocation9 + $0x190] sm:$0xff] }
 0x767   :  { %v2273_v23 = vld [vmem:[#allocation9 + $0x1b0] sm:$0xff] }
 0x768   :  { %4235 = vmatpush1.bf16.msra.mxu0 %v4234_v25  ;;  %4267 = vmatpush1.bf16.msra.mxu1 %v4266_v27 }
 0x769   :  { %4237 = vmatprep.subr.bf16.mxu0 %v4236_v33  ;;  %4269 = vmatprep.subr.bf16.mxu1 %v4268_v42  ;;  %v2228_v33 = vld [vmem:[#allocation9 + $0x48] sm:$0xff] }
 0x76a   :  { %v2232_v42 = vld [vmem:[#allocation9 + $0x68] sm:$0xff] }
 0x76b   :  { %v5839_v24 = vpack.c.bf16 %v2232_v42, %v2228_v33  ;;  %v2262_v33 = vld [vmem:[#allocation9 + $0x158] sm:$0xff] }
 0x76c   :  { %4239 = vmatpush1.bf16.msra.mxu0 %v4238_v61  ;;  %4271 = vmatpush1.bf16.msra.mxu1 %v4270_v28  ;;  %v5843_v61 = vpack.c.bf16 %v2231_v55, %v2227_v7  ;;  %v2229_v28 = vld [vmem:[#allocation9 + $0x50] sm:$0xff]  ;;  %v2266_v42 = vld [vmem:[#allocation9 + $0x178] sm:$0xff]  ;;  %v2259_v7 = vld [vmem:[#allocation9 + $0x140] sm:$0xff] }
 0x76d   :  { %4241 = vmatprep.subr.bf16.mxu0 %v4240_v21  ;;  %4273 = vmatprep.subr.bf16.mxu1 %v4272_v12  ;;  %v5846_v8 = vpack.c.bf16 %v2233_v59, %v2229_v28  ;;  %v2236_v21 = vld [vmem:[#allocation9 + $0x88] sm:$0xff]  ;;  %v5888_v41 = vpack.c.bf16 %v2266_v42, %v2262_v33  ;;  %v2263_v55 = vld [vmem:[#allocation9 + $0x160] sm:$0xff]  ;;  %v2261_v28 = vld [vmem:[#allocation9 + $0x150] sm:$0xff] }
 0x76e   :  { %v2240_v12 = vld [vmem:[#allocation9 + $0xa8] sm:$0xff]  ;;  %v5891_v59 = vpack.c.bf16 %v2263_v55, %v2259_v7 }
 0x76f   :  { %v5851_v11 = vpack.c.bf16 %v2240_v12, %v2236_v21  ;;  %v2265_v21 = vld [vmem:[#allocation9 + $0x170] sm:$0xff]  ;;  %v2268_v12 = vld [vmem:[#allocation9 + $0x188] sm:$0xff] }
 0x770   :  { %4243 = vmatpush1.bf16.msra.mxu0 %v4242_v60  ;;  %4275 = vmatpush1.bf16.msra.mxu1 %v4274_v63  ;;  %v5855_v60 = vpack.c.bf16 %v2239_v53, %v2235_v50  ;;  %v2237_v63 = vld [vmem:[#allocation9 + $0x90] sm:$0xff]  ;;  %v5895_v47 = vpack.c.bf16 %v2265_v21, %v2261_v28  ;;  %v5897_v50 = vpack.c.bf16 %v2272_v52, %v2268_v12  ;;  %v2270_v53 = vld [vmem:[#allocation9 + $0x198] sm:$0xff] }
 0x771   :  { %4245 = vmatprep.subr.bf16.mxu0 %v4244_v10  ;;  %4277 = vmatprep.subr.bf16.mxu1 %v4276_v13  ;;  %v5858_v6 = vpack.c.bf16 %v2241_v3, %v2237_v63  ;;  %v2244_v10 = vld [vmem:[#allocation9 + $0xc8] sm:$0xff]  ;;  %v2274_v63 = vld [vmem:[#allocation9 + $0x1b8] sm:$0xff]  ;;  %v2267_v3 = vld [vmem:[#allocation9 + $0x180] sm:$0xff] }
 0x772   :  { %v2248_v13 = vld [vmem:[#allocation9 + $0xe8] sm:$0xff] }
 0x773   :  { %v5863_v19 = vpack.c.bf16 %v2248_v13, %v2244_v10  ;;  %v5899_v10 = vpack.c.bf16 %v2274_v63, %v2270_v53  ;;  %v2271_v13 = vld [vmem:[#allocation9 + $0x1a0] sm:$0xff] }
 0x774   :  { %4247 = vmatpush1.bf16.msra.mxu0 %v4246_v36  ;;  %4279 = vmatpush1.bf16.msra.mxu1 %v4278_v40  ;;  %v5867_v36 = vpack.c.bf16 %v2247_v29, %v2243_v26  ;;  %v2245_v40 = vld [vmem:[#allocation9 + $0xd0] sm:$0xff]  ;;  %v5902_v26 = vpack.c.bf16 %v2271_v13, %v2267_v3  ;;  %v5906_v29 = vpack.c.bf16 %v2273_v23, %v2269_v16 }
 0x775   :  { %4249 = vmatprep.subr.bf16.mxu0 %v4248_v48  ;;  %4281 = vmatprep.subr.bf16.mxu1 %v4280_v54  ;;  %v5870_v48 = vpack.c.bf16 %v2249_v44, %v2245_v40  ;;  %v2252_v54 = vld [vmem:[#allocation9 + $0x108] sm:$0xff] }
 0x776   :  { %v5875_v4 = vpack.c.bf16 %v2256_v58, %v2252_v54  ;;  %v2276_v40 = vld [vmem:[#allocation9 + $0x1c8] sm:$0xff]  ;;  %v2278_v54 = vld [vmem:[#allocation9 + $0x1d8] sm:$0xff] }
 0x777   :  { %v2280_v44 = vld [vmem:[#allocation9 + $0x1e8] sm:$0xff] }
 0x778   :  { %4251 = vmatpush1.bf16.msra.mxu0 %v4250_v9  ;;  %4283 = vmatpush1.bf16.msra.mxu1 %v4282_v14  ;;  %v2258_v9 = vld [vmem:[#allocation9 + $0x138] sm:$0xff]  ;;  %v2251_v14 = vld [vmem:[#allocation9 + $0x100] sm:$0xff]  ;;  %v5911_v58 = vpack.c.bf16 %v2280_v44, %v2276_v40 }
 0x77b   :  { %2026 = vmatmul.mubr.f32.vlgmr.msra.gmra.mrb[16].mxu0 %v5519_v49  ;;  %2139 = vmatmul.mubr.f32.vlgmr.msra.gmra.mrb[16].mxu1 %v5519_v49  ;;  %v2220_v49 = vld [vmem:[#allocation9 + $0x8] sm:$0xff] }
 0x77c   :  { %2031 = vmatprep.mubr.f32.mxu0 %v5191_v0  ;;  %2144 = vmatprep.mubr.f32.mxu1 %v5191_v0 }
 0x77f   :  { %2032 = vmatmul.mubr.f32.gmra.mrb[18].mxu0 %v5565_v2  ;;  %2145 = vmatmul.mubr.f32.gmra.mrb[18].mxu1 %v5565_v2  ;;  %v2224_v2 = vld [vmem:[#allocation9 + $0x28] sm:$0xff] }
 0x780   :  { %2037 = vmatprep.mubr.f32.mxu0 %v5191_v0  ;;  %2150 = vmatprep.mubr.f32.mxu1 %v5191_v0 }
 0x783   :  { %2038 = vmatmul.mubr.f32.gmra.mrb[20].mxu0 %v5611_v15  ;;  %2151 = vmatmul.mubr.f32.gmra.mrb[20].mxu1 %v5611_v15  ;;  %v2222_v15 = vld [vmem:[#allocation9 + $0x18] sm:$0xff] }
 0x784   :  { %2043 = vmatprep.mubr.f32.mxu0 %v5191_v0  ;;  %2156 = vmatprep.mubr.f32.mxu1 %v5191_v0 }
 0x787   :  { %2044 = vmatmul.mubr.f32.gmra.mrb[22].mxu0 %v5657_v43  ;;  %2157 = vmatmul.mubr.f32.gmra.mrb[22].mxu1 %v5657_v43  ;;  %v5827_v43 = vpack.c.bf16 %v2224_v2, %v2220_v49  ;;  %v2255_v49 = vld [vmem:[#allocation9 + $0x120] sm:$0xff]  ;;  %v5877_v2 = vpack.c.bf16 %v2258_v9, %v2254_v62  ;;  %v2282_v62 = vld [vmem:[#allocation9 + $0x1f8] sm:$0xff] }
 0x788   :  { %2049 = vmatprep.mubr.f32.mxu0 %v5191_v0  ;;  %2162 = vmatprep.mubr.f32.mxu1 %v5191_v0  ;;  %v2275_v9 = vld [vmem:[#allocation9 + $0x1c0] sm:$0xff] }
 0x789   :  { %4285 = vmatprep.subr.bf16.mxu0 %v5827_v43 }
 0x78b   :  { %2050 = vmatmul.mubr.f32.gmra.mrb[24].mxu0 %v5703_v5  ;;  %2163 = vmatmul.mubr.f32.gmra.mrb[24].mxu1 %v5703_v5  ;;  %v2226_v5 = vld [vmem:[#allocation9 + $0x38] sm:$0xff] }
 0x78c   :  { %2055 = vmatprep.mubr.f32.mxu0 %v5191_v0  ;;  %2168 = vmatprep.mubr.f32.mxu1 %v5191_v0  ;;  %v5829_v25 = vpack.c.bf16 %v2226_v5, %v2222_v15  ;;  %v5879_v15 = vpack.c.bf16 %v2255_v49, %v2251_v14  ;;  %v2253_v5 = vld [vmem:[#allocation9 + $0x110] sm:$0xff]  ;;  %v2279_v14 = vld [vmem:[#allocation9 + $0x1e0] sm:$0xff]  ;;  %v5913_v49 = vpack.c.bf16 %v2282_v62, %v2278_v54 }
 0x78e   :  { %4317 = vmatprep.subr.bf16.mxu1 %v5829_v25 }
 0x78f   :  { %2056 = vmatmul.mubr.f32.gmra.mrb[26].mxu0 %v5749_v20  ;;  %2169 = vmatmul.mubr.f32.gmra.mrb[26].mxu1 %v5749_v20  ;;  %v2223_v20 = vld [vmem:[#allocation9 + $0x20] sm:$0xff] }
 0x790   :  { %2061 = vmatprep.mubr.f32.mxu0 %v5191_v0  ;;  %2174 = vmatprep.mubr.f32.mxu1 %v5191_v0  ;;  %v5831_v27 = vpack.c.bf16 %v2223_v20, %v2219_v22  ;;  %v2257_v22 = vld [vmem:[#allocation9 + $0x130] sm:$0xff]  ;;  %v2260_v20 = vld [vmem:[#allocation9 + $0x148] sm:$0xff] }
 0x792   :  { %4287 = vmatpush1.bf16.msra.mxu0 %v5831_v27 }
 0x793   :  { %2062 = vmatmul.mubr.f32.gmra.mrb[28].mxu0 %v5793_v51  ;;  %2175 = vmatmul.mubr.f32.gmra.mrb[28].mxu1 %v5793_v51  ;;  %v5834_v51 = vpack.c.bf16 %v2225_v17, %v2221_v57  ;;  %v5882_v57 = vpack.c.bf16 %v2257_v22, %v2253_v5  ;;  %v2264_v17 = vld [vmem:[#allocation9 + $0x168] sm:$0xff]  ;;  %v5915_v5 = vpack.c.bf16 %v2279_v14, %v2275_v9  ;;  %v2277_v22 = vld [vmem:[#allocation9 + $0x1d0] sm:$0xff] }
 0x794   :  { %2067 = vmatprep.mubr.f32.mxu0 %v5191_v0  ;;  %2180 = vmatprep.mubr.f32.mxu1 %v5191_v0  ;;  %v5886_v38 = vpack.c.bf16 %v2264_v17, %v2260_v20  ;;  %v2281_v20 = vld [vmem:[#allocation9 + $0x1f0] sm:$0xff] }
 0x795   :  { %4319 = vmatpush1.bf16.msra.mxu1 %v5834_v51  ;;  %4289 = vmatprep.subr.bf16.mxu0 %v5839_v24  ;;  %v5918_v17 = vpack.c.bf16 %v2281_v20, %v2277_v22 }
 0x796   :  { %4321 = vmatprep.subr.bf16.mxu1 %v5841_v46  ;;  %4291 = vmatpush1.bf16.msra.mxu0 %v5843_v61 }
 0x797   :  { %4293 = vmatprep.subr.bf16.mxu0 %v5851_v11 }
 0x799   :  { %4323 = vmatpush1.bf16.msra.mxu1 %v5846_v8 }
 0x79a   :  { %4325 = vmatprep.subr.bf16.mxu1 %v5853_v56  ;;  %4295 = vmatpush1.bf16.msra.mxu0 %v5855_v60 }
 0x79b   :  { %4297 = vmatprep.subr.bf16.mxu0 %v5863_v19 }
 0x79d   :  { %4327 = vmatpush1.bf16.msra.mxu1 %v5858_v6 }
 0x79e   :  { %4329 = vmatprep.subr.bf16.mxu1 %v5865_v32  ;;  %4299 = vmatpush1.bf16.msra.mxu0 %v5867_v36 }
 0x79f   :  { %4301 = vmatprep.subr.bf16.mxu0 %v5875_v4 }
 0x7a1   :  { %4331 = vmatpush1.bf16.msra.mxu1 %v5870_v48 }
 0x7a2   :  { %4333 = vmatprep.subr.bf16.mxu1 %v5877_v2  ;;  %4303 = vmatpush1.bf16.msra.mxu0 %v5879_v15 }
 0x7a3   :  { %4305 = vmatprep.subr.bf16.mxu0 %v5886_v38 }
 0x7a5   :  { %4335 = vmatpush1.bf16.msra.mxu1 %v5882_v57 }
 0x7a6   :  { %4337 = vmatprep.subr.bf16.mxu1 %v5888_v41  ;;  %4307 = vmatpush1.bf16.msra.mxu0 %v5891_v59 }
 0x7a7   :  { %4309 = vmatprep.subr.bf16.mxu0 %v5897_v50 }
 0x7a9   :  { %4339 = vmatpush1.bf16.msra.mxu1 %v5895_v47 }
 0x7aa   :  { %4341 = vmatprep.subr.bf16.mxu1 %v5899_v10  ;;  %4311 = vmatpush1.bf16.msra.mxu0 %v5902_v26 }
 0x7ab   :  { %4313 = vmatprep.subr.bf16.mxu0 %v5911_v58 }
 0x7ad   :  { %4343 = vmatpush1.bf16.msra.mxu1 %v5906_v29 }
 0x7ae   :  { %4345 = vmatprep.subr.bf16.mxu1 %v5913_v49  ;;  %4315 = vmatpush1.bf16.msra.mxu0 %v5915_v5 }
 0x7af   :  { %4349 = vmatprep.subr.bf16.mxu0 %v5827_v43 }
 0x7b1   :  { %4347 = vmatpush1.bf16.msra.mxu1 %v5918_v17 }
 0x7b2   :  { %4381 = vmatprep.subr.bf16.mxu1 %v5829_v25 }
 0x82e   :  { %v1765_v33 = vpop.f32.mrb[14].mxu0  ;;  %v1836_v42 = vpop.f32.mrb[14].mxu1 }
 0x82f   :  { %v4810_v7 = vadd.f32 %v1765_v33, %v5496_v35  ;;  %v1767_v55 = vpop.f32.mrb[15].mxu0  ;;  %v1838_v28 = vpop.f32.mrb[15].mxu1  ;;  %v4826_v53 = vadd.f32 %v1836_v42, %v5506_v45 }
 0x830   :  { %v4811_v21 = vadd.f32 %v1767_v55, %v5501_v39  ;;  %v4827_v63 = vadd.f32 %v1838_v28, %v5513_v1 }
 0x831   :  { %v1845_v12 = vmul.f32 0.5, %v4810_v7 }
 0x832   :  { %v1849_v52 = vmul.f32 0.5, %v4811_v21  ;;  %v1854_v3 = vmul.f32 0.5, %v4827_v63 }
 0x833   :  { %5001 = vtanh.f32 %v1845_v12 }
 0x834   :  { %5003 = vtanh.f32 %v1849_v52 }
 0x835   :  { %5005 = vtanh.f32 %v4826_v53 }
 0x836   :  { %5007 = vtanh.f32 %v1854_v3 }
 0x83d   :  { %v5002_v13 = vpop.eup %5001 }
 0x83e   :  { %v5004_v16 = vpop.eup %5003  ;;  %v1847_v23 = vmul.f32 0.5, %v5002_v13 }
 0x83f   :  { %v1851_v40 = vmul.f32 0.5, %v5004_v16  ;;  %v5006_v44 = vpop.eup %5005 }
 0x840   :  { %v1848_v35 = vadd.f32 0.5, %v1847_v23  ;;  %v5008_v45 = vpop.eup %5007 }
 0x841   :  { %v1852_v54 = vadd.f32 0.5, %v1851_v40  ;;  %v1856_v1 = vmul.f32 0.5, %v5008_v45 }
 0x842   :  { %v1859_v62 = vmul.f32 %v5006_v44, %v1848_v35 }
 0x843   :  { %v1858_v39 = vmul.f32 %v1852_v54, %v5790_v18  ;;  %v1857_v14 = vadd.f32 0.5, %v1856_v1  ;;  %v1939_v18 = vld [vmem:[%s6263_s6] sm:$0xf] }
 0x844   :  { %v5979_v33 = vrot.slane %v1939_v18, %v159_v31  ;;  %v5983_v42 = vrot.slane %v1939_v18, %v163_v34  ;;  %v5988_v21 = vrot.slane %v1939_v18, %v167_v37  ;;  %v6267_v34 = vsub.s32 3, %v5487_v30 }
 0x845   :  { %v1860_v9 = vadd.f32 %v1859_v62, %v1858_v39 }
 0x846   :  { %v5994_v13 = vrot.slane %v1939_v18, %v6267_v34 }
 0x847   :  { %5009 = vtanh.f32 %v1860_v9  ;;  %1866 = vst [vmem:[%s6265_s8] sm:$0xff] %v1860_v9 }
 0x851   :  { %v5010_v22 = vpop.eup %5009 }
 0x852   :  { %v1862_v20 = vmul.f32 %v5010_v22, %v1857_v14 }
 0x854   :  { %1865 = vst [vmem:[%s6264_s7] sm:$0xff] %v1862_v20  ;;  %2068 = vmatmul.mubr.f32.gmra.mrb[30].mxu0 %v1862_v20  ;;  %2181 = vmatmul.mubr.f32.gmra.mrb[30].mxu1 %v1862_v20 }
 0x855   :  { %2351 = vmatprep.mubr.f32.mxu0 %v5191_v0  ;;  %2422 = vmatprep.mubr.f32.mxu1 %v5191_v0 }
 0x858   :  { %2352 = vmatmul.mubr.f32.vlgmr.msra.gmra.mrb[16].mxu0 %v5191_v0  ;;  %2423 = vmatmul.mubr.f32.vlgmr.msra.gmra.mrb[16].mxu1 %v5191_v0 }
 0x859   :  { %4351 = vmatpush1.bf16.msra.mxu0 %v5831_v27  ;;  %4383 = vmatpush1.bf16.msra.mxu1 %v5834_v51 }
 0x85a   :  { %4353 = vmatprep.subr.bf16.mxu0 %v5839_v24  ;;  %4385 = vmatprep.subr.bf16.mxu1 %v5841_v46 }
 0x85b   :  { %2519 = vmatprep.mubr.f32.mxu0 %v5191_v0  ;;  %2590 = vmatprep.mubr.f32.mxu1 %v5191_v0 }
 0x85d   :  { %4355 = vmatpush1.bf16.msra.mxu0 %v5843_v61  ;;  %4387 = vmatpush1.bf16.msra.mxu1 %v5846_v8 }
 0x85e   :  { %4357 = vmatprep.subr.bf16.mxu0 %v5851_v11  ;;  %4389 = vmatprep.subr.bf16.mxu1 %v5853_v56 }
 0x861   :  { %4359 = vmatpush1.bf16.msra.mxu0 %v5855_v60  ;;  %4391 = vmatpush1.bf16.msra.mxu1 %v5858_v6 }
 0x862   :  { %4361 = vmatprep.subr.bf16.mxu0 %v5863_v19  ;;  %4393 = vmatprep.subr.bf16.mxu1 %v5865_v32 }
 0x865   :  { %4363 = vmatpush1.bf16.msra.mxu0 %v5867_v36  ;;  %4395 = vmatpush1.bf16.msra.mxu1 %v5870_v48 }
 0x866   :  { %4365 = vmatprep.subr.bf16.mxu0 %v5875_v4  ;;  %4397 = vmatprep.subr.bf16.mxu1 %v5877_v2 }
 0x869   :  { %4367 = vmatpush1.bf16.msra.mxu0 %v5879_v15  ;;  %4399 = vmatpush1.bf16.msra.mxu1 %v5882_v57 }
 0x86a   :  { %4369 = vmatprep.subr.bf16.mxu0 %v5886_v38  ;;  %4401 = vmatprep.subr.bf16.mxu1 %v5888_v41 }
 0x86d   :  { %4371 = vmatpush1.bf16.msra.mxu0 %v5891_v59  ;;  %4403 = vmatpush1.bf16.msra.mxu1 %v5895_v47 }
 0x86e   :  { %4373 = vmatprep.subr.bf16.mxu0 %v5897_v50  ;;  %4405 = vmatprep.subr.bf16.mxu1 %v5899_v10 }
 0x871   :  { %4375 = vmatpush1.bf16.msra.mxu0 %v5902_v26  ;;  %4407 = vmatpush1.bf16.msra.mxu1 %v5906_v29 }
 0x872   :  { %4377 = vmatprep.subr.bf16.mxu0 %v5911_v58  ;;  %4409 = vmatprep.subr.bf16.mxu1 %v5913_v49 }
 0x875   :  { %4379 = vmatpush1.bf16.msra.mxu0 %v5915_v5  ;;  %4411 = vmatpush1.bf16.msra.mxu1 %v5918_v17 }
 0x876   :  { %4413 = vmatprep.subr.bf16.mxu0 %v5827_v43  ;;  %4445 = vmatprep.subr.bf16.mxu1 %v5829_v25 }
 0x92b   :  { %v2353_v7 = vpop.f32.mrb[16].mxu0  ;;  %v2424_v55 = vpop.f32.mrb[16].mxu1 }
 0x92c   :  { %v4828_v28 = vadd.f32 %v2353_v7, %v5979_v33  ;;  %v2355_v12 = vpop.f32.mrb[17].mxu0  ;;  %v2426_v52 = vpop.f32.mrb[17].mxu1  ;;  %v4844_v31 = vadd.f32 %v2424_v55, %v5988_v21 }
 0x92d   :  { %v4829_v53 = vadd.f32 %v2355_v12, %v5983_v42  ;;  %v4845_v16 = vadd.f32 %v2426_v52, %v5994_v13 }
 0x92e   :  { %v2433_v63 = vmul.f32 0.5, %v4828_v28 }
 0x92f   :  { %v2437_v3 = vmul.f32 0.5, %v4829_v53  ;;  %v2442_v23 = vmul.f32 0.5, %v4845_v16 }
 0x930   :  { %5011 = vtanh.f32 %v2433_v63 }
 0x931   :  { %5013 = vtanh.f32 %v2437_v3 }
 0x932   :  { %5015 = vtanh.f32 %v4844_v31 }
 0x933   :  { %5017 = vtanh.f32 %v2442_v23 }
 0x93a   :  { %v5012_v37 = vpop.eup %5011 }
 0x93b   :  { %v5014_v40 = vpop.eup %5013  ;;  %v2435_v35 = vmul.f32 0.5, %v5012_v37 }
 0x93c   :  { %v2439_v44 = vmul.f32 0.5, %v5014_v40  ;;  %v5016_v62 = vpop.eup %5015 }
 0x93d   :  { %v2436_v54 = vadd.f32 0.5, %v2435_v35  ;;  %v5018_v30 = vpop.eup %5017 }
 0x93e   :  { %v2440_v39 = vadd.f32 0.5, %v2439_v44  ;;  %v2444_v14 = vmul.f32 0.5, %v5018_v30 }
 0x93f   :  { %v2447_v9 = vmul.f32 %v5016_v62, %v2436_v54 }
 0x940   :  { %v2446_v45 = vmul.f32 0.0, %v2440_v39  ;;  %v2445_v22 = vadd.f32 0.5, %v2444_v14 }
 0x942   :  { %v5997_v1 = vadd.f32 %v2447_v9, %v2446_v45 }
 0x944   :  { %5019 = vtanh.f32 %v5997_v1 }
 0x94e   :  { %v5020_v20 = vpop.eup %5019 }
 0x94f   :  { %v2450_v18 = vmul.f32 %v5020_v20, %v2445_v22 }
 0x951   :  { %2520 = vmatmul.mubr.f32.vlgmr.msra.gmra.mrb[18].mxu0 %v2450_v18  ;;  %2591 = vmatmul.mubr.f32.vlgmr.msra.gmra.mrb[18].mxu1 %v2450_v18 }
 0x952   :  { %4415 = vmatpush1.bf16.msra.mxu0 %v5831_v27  ;;  %4447 = vmatpush1.bf16.msra.mxu1 %v5834_v51 }
 0x953   :  { %4417 = vmatprep.subr.bf16.mxu0 %v5839_v24  ;;  %4449 = vmatprep.subr.bf16.mxu1 %v5841_v46 }
 0x954   :  { %2687 = vmatprep.mubr.f32.mxu0 %v5191_v0  ;;  %2758 = vmatprep.mubr.f32.mxu1 %v5191_v0 }
 0x956   :  { %4419 = vmatpush1.bf16.msra.mxu0 %v5843_v61  ;;  %4451 = vmatpush1.bf16.msra.mxu1 %v5846_v8 }
 0x957   :  { %4421 = vmatprep.subr.bf16.mxu0 %v5851_v11  ;;  %4453 = vmatprep.subr.bf16.mxu1 %v5853_v56 }
 0x95a   :  { %4423 = vmatpush1.bf16.msra.mxu0 %v5855_v60  ;;  %4455 = vmatpush1.bf16.msra.mxu1 %v5858_v6 }
 0x95b   :  { %4425 = vmatprep.subr.bf16.mxu0 %v5863_v19  ;;  %4457 = vmatprep.subr.bf16.mxu1 %v5865_v32 }
 0x95e   :  { %4427 = vmatpush1.bf16.msra.mxu0 %v5867_v36  ;;  %4459 = vmatpush1.bf16.msra.mxu1 %v5870_v48 }
 0x95f   :  { %4429 = vmatprep.subr.bf16.mxu0 %v5875_v4  ;;  %4461 = vmatprep.subr.bf16.mxu1 %v5877_v2 }
 0x962   :  { %4431 = vmatpush1.bf16.msra.mxu0 %v5879_v15  ;;  %4463 = vmatpush1.bf16.msra.mxu1 %v5882_v57 }
 0x963   :  { %4433 = vmatprep.subr.bf16.mxu0 %v5886_v38  ;;  %4465 = vmatprep.subr.bf16.mxu1 %v5888_v41 }
 0x966   :  { %4435 = vmatpush1.bf16.msra.mxu0 %v5891_v59  ;;  %4467 = vmatpush1.bf16.msra.mxu1 %v5895_v47 }
 0x967   :  { %4437 = vmatprep.subr.bf16.mxu0 %v5897_v50  ;;  %4469 = vmatprep.subr.bf16.mxu1 %v5899_v10 }
 0x96a   :  { %4439 = vmatpush1.bf16.msra.mxu0 %v5902_v26  ;;  %4471 = vmatpush1.bf16.msra.mxu1 %v5906_v29 }
 0x96b   :  { %4441 = vmatprep.subr.bf16.mxu0 %v5911_v58  ;;  %4473 = vmatprep.subr.bf16.mxu1 %v5913_v49 }
 0x96e   :  { %4443 = vmatpush1.bf16.msra.mxu0 %v5915_v5  ;;  %4475 = vmatpush1.bf16.msra.mxu1 %v5918_v17 }
 0x96f   :  { %4477 = vmatprep.subr.bf16.mxu0 %v5827_v43  ;;  %4509 = vmatprep.subr.bf16.mxu1 %v5829_v25 }
 0xa24   :  { %v2521_v7 = vpop.f32.mrb[18].mxu0  ;;  %v2592_v55 = vpop.f32.mrb[18].mxu1 }
 0xa25   :  { %v4830_v28 = vadd.f32 %v2521_v7, %v5979_v33  ;;  %v2523_v12 = vpop.f32.mrb[19].mxu0  ;;  %v2594_v52 = vpop.f32.mrb[19].mxu1  ;;  %v4846_v31 = vadd.f32 %v2592_v55, %v5988_v21 }
 0xa26   :  { %v4831_v53 = vadd.f32 %v2523_v12, %v5983_v42  ;;  %v4847_v34 = vadd.f32 %v2594_v52, %v5994_v13 }
 0xa27   :  { %v2601_v63 = vmul.f32 0.5, %v4830_v28 }
 0xa28   :  { %v2605_v3 = vmul.f32 0.5, %v4831_v53  ;;  %v2610_v16 = vmul.f32 0.5, %v4847_v34 }
 0xa29   :  { %5021 = vtanh.f32 %v2601_v63 }
 0xa2a   :  { %5023 = vtanh.f32 %v2605_v3 }
 0xa2b   :  { %5025 = vtanh.f32 %v4846_v31 }
 0xa2c   :  { %5027 = vtanh.f32 %v2610_v16 }
 0xa33   :  { %v5022_v23 = vpop.eup %5021 }
 0xa34   :  { %v5024_v37 = vpop.eup %5023  ;;  %v2603_v40 = vmul.f32 0.5, %v5022_v23 }
 0xa35   :  { %v2607_v35 = vmul.f32 0.5, %v5024_v37  ;;  %v5026_v54 = vpop.eup %5025 }
 0xa36   :  { %v2604_v44 = vadd.f32 0.5, %v2603_v40  ;;  %v5028_v30 = vpop.eup %5027 }
 0xa37   :  { %v2608_v62 = vadd.f32 0.5, %v2607_v35  ;;  %v2612_v14 = vmul.f32 0.5, %v5028_v30 }
 0xa38   :  { %v2615_v39 = vmul.f32 %v5026_v54, %v2604_v44 }
 0xa39   :  { %v2614_v9 = vmul.f32 %v2608_v62, %v5997_v1  ;;  %v2613_v22 = vadd.f32 0.5, %v2612_v14 }
 0xa3b   :  { %v6039_v45 = vadd.f32 %v2615_v39, %v2614_v9 }
 0xa3d   :  { %5029 = vtanh.f32 %v6039_v45 }
 0xa47   :  { %v5030_v20 = vpop.eup %5029 }
 0xa48   :  { %v2618_v18 = vmul.f32 %v5030_v20, %v2613_v22 }
 0xa4a   :  { %2688 = vmatmul.mubr.f32.vlgmr.msra.gmra.mrb[20].mxu0 %v2618_v18  ;;  %2759 = vmatmul.mubr.f32.vlgmr.msra.gmra.mrb[20].mxu1 %v2618_v18 }
 0xa4b   :  { %4479 = vmatpush1.bf16.msra.mxu0 %v5831_v27  ;;  %4511 = vmatpush1.bf16.msra.mxu1 %v5834_v51 }
 0xa4c   :  { %4481 = vmatprep.subr.bf16.mxu0 %v5839_v24  ;;  %4513 = vmatprep.subr.bf16.mxu1 %v5841_v46 }
 0xa4d   :  { %2855 = vmatprep.mubr.f32.mxu0 %v5191_v0  ;;  %2926 = vmatprep.mubr.f32.mxu1 %v5191_v0 }
 0xa4f   :  { %4483 = vmatpush1.bf16.msra.mxu0 %v5843_v61  ;;  %4515 = vmatpush1.bf16.msra.mxu1 %v5846_v8 }
 0xa50   :  { %4485 = vmatprep.subr.bf16.mxu0 %v5851_v11  ;;  %4517 = vmatprep.subr.bf16.mxu1 %v5853_v56 }
 0xa53   :  { %4487 = vmatpush1.bf16.msra.mxu0 %v5855_v60  ;;  %4519 = vmatpush1.bf16.msra.mxu1 %v5858_v6 }
 0xa54   :  { %4489 = vmatprep.subr.bf16.mxu0 %v5863_v19  ;;  %4521 = vmatprep.subr.bf16.mxu1 %v5865_v32 }
 0xa57   :  { %4491 = vmatpush1.bf16.msra.mxu0 %v5867_v36  ;;  %4523 = vmatpush1.bf16.msra.mxu1 %v5870_v48 }
 0xa58   :  { %4493 = vmatprep.subr.bf16.mxu0 %v5875_v4  ;;  %4525 = vmatprep.subr.bf16.mxu1 %v5877_v2 }
 0xa5b   :  { %4495 = vmatpush1.bf16.msra.mxu0 %v5879_v15  ;;  %4527 = vmatpush1.bf16.msra.mxu1 %v5882_v57 }
 0xa5c   :  { %4497 = vmatprep.subr.bf16.mxu0 %v5886_v38  ;;  %4529 = vmatprep.subr.bf16.mxu1 %v5888_v41 }
 0xa5f   :  { %4499 = vmatpush1.bf16.msra.mxu0 %v5891_v59  ;;  %4531 = vmatpush1.bf16.msra.mxu1 %v5895_v47 }
 0xa60   :  { %4501 = vmatprep.subr.bf16.mxu0 %v5897_v50  ;;  %4533 = vmatprep.subr.bf16.mxu1 %v5899_v10 }
 0xa63   :  { %4503 = vmatpush1.bf16.msra.mxu0 %v5902_v26  ;;  %4535 = vmatpush1.bf16.msra.mxu1 %v5906_v29 }
 0xa64   :  { %4505 = vmatprep.subr.bf16.mxu0 %v5911_v58  ;;  %4537 = vmatprep.subr.bf16.mxu1 %v5913_v49 }
 0xa67   :  { %4507 = vmatpush1.bf16.msra.mxu0 %v5915_v5  ;;  %4539 = vmatpush1.bf16.msra.mxu1 %v5918_v17 }
 0xa68   :  { %4541 = vmatprep.subr.bf16.mxu0 %v5827_v43  ;;  %4573 = vmatprep.subr.bf16.mxu1 %v5829_v25 }
 0xb1d   :  { %v2689_v1 = vpop.f32.mrb[20].mxu0  ;;  %v2760_v7 = vpop.f32.mrb[20].mxu1 }
 0xb1e   :  { %v4832_v55 = vadd.f32 %v2689_v1, %v5979_v33  ;;  %v2691_v28 = vpop.f32.mrb[21].mxu0  ;;  %v2762_v12 = vpop.f32.mrb[21].mxu1  ;;  %v4848_v3 = vadd.f32 %v2760_v7, %v5988_v21 }
 0xb1f   :  { %v4833_v52 = vadd.f32 %v2691_v28, %v5983_v42  ;;  %v4849_v31 = vadd.f32 %v2762_v12, %v5994_v13 }
 0xb20   :  { %v2769_v53 = vmul.f32 0.5, %v4832_v55 }
 0xb21   :  { %v2773_v63 = vmul.f32 0.5, %v4833_v52  ;;  %v2778_v34 = vmul.f32 0.5, %v4849_v31 }
 0xb22   :  { %5031 = vtanh.f32 %v2769_v53 }
 0xb23   :  { %5033 = vtanh.f32 %v2773_v63 }
 0xb24   :  { %5035 = vtanh.f32 %v4848_v3 }
 0xb25   :  { %5037 = vtanh.f32 %v2778_v34 }
 0xb2c   :  { %v5032_v16 = vpop.eup %5031 }
 0xb2d   :  { %v5034_v23 = vpop.eup %5033  ;;  %v2771_v37 = vmul.f32 0.5, %v5032_v16 }
 0xb2e   :  { %v2775_v40 = vmul.f32 0.5, %v5034_v23  ;;  %v5036_v44 = vpop.eup %5035 }
 0xb2f   :  { %v2772_v35 = vadd.f32 0.5, %v2771_v37  ;;  %v5038_v30 = vpop.eup %5037 }
 0xb30   :  { %v2776_v54 = vadd.f32 0.5, %v2775_v40  ;;  %v2780_v14 = vmul.f32 0.5, %v5038_v30 }
 0xb31   :  { %v2783_v62 = vmul.f32 %v5036_v44, %v2772_v35 }
 0xb32   :  { %v2782_v39 = vmul.f32 %v2776_v54, %v6039_v45  ;;  %v2781_v22 = vadd.f32 0.5, %v2780_v14 }
 0xb34   :  { %v6081_v9 = vadd.f32 %v2783_v62, %v2782_v39 }
 0xb36   :  { %5039 = vtanh.f32 %v6081_v9 }
 0xb40   :  { %v5040_v20 = vpop.eup %5039 }
 0xb41   :  { %v2786_v18 = vmul.f32 %v5040_v20, %v2781_v22 }
 0xb43   :  { %2856 = vmatmul.mubr.f32.vlgmr.msra.gmra.mrb[22].mxu0 %v2786_v18  ;;  %2927 = vmatmul.mubr.f32.vlgmr.msra.gmra.mrb[22].mxu1 %v2786_v18 }
 0xb44   :  { %4543 = vmatpush1.bf16.msra.mxu0 %v5831_v27  ;;  %4575 = vmatpush1.bf16.msra.mxu1 %v5834_v51 }
 0xb45   :  { %4545 = vmatprep.subr.bf16.mxu0 %v5839_v24  ;;  %4577 = vmatprep.subr.bf16.mxu1 %v5841_v46 }
 0xb46   :  { %3023 = vmatprep.mubr.f32.mxu0 %v5191_v0  ;;  %3094 = vmatprep.mubr.f32.mxu1 %v5191_v0 }
 0xb48   :  { %4547 = vmatpush1.bf16.msra.mxu0 %v5843_v61  ;;  %4579 = vmatpush1.bf16.msra.mxu1 %v5846_v8 }
 0xb49   :  { %4549 = vmatprep.subr.bf16.mxu0 %v5851_v11  ;;  %4581 = vmatprep.subr.bf16.mxu1 %v5853_v56 }
 0xb4c   :  { %4551 = vmatpush1.bf16.msra.mxu0 %v5855_v60  ;;  %4583 = vmatpush1.bf16.msra.mxu1 %v5858_v6 }
 0xb4d   :  { %4553 = vmatprep.subr.bf16.mxu0 %v5863_v19  ;;  %4585 = vmatprep.subr.bf16.mxu1 %v5865_v32 }
 0xb50   :  { %4555 = vmatpush1.bf16.msra.mxu0 %v5867_v36  ;;  %4587 = vmatpush1.bf16.msra.mxu1 %v5870_v48 }
 0xb51   :  { %4557 = vmatprep.subr.bf16.mxu0 %v5875_v4  ;;  %4589 = vmatprep.subr.bf16.mxu1 %v5877_v2 }
 0xb54   :  { %4559 = vmatpush1.bf16.msra.mxu0 %v5879_v15  ;;  %4591 = vmatpush1.bf16.msra.mxu1 %v5882_v57 }
 0xb55   :  { %4561 = vmatprep.subr.bf16.mxu0 %v5886_v38  ;;  %4593 = vmatprep.subr.bf16.mxu1 %v5888_v41 }
 0xb58   :  { %4563 = vmatpush1.bf16.msra.mxu0 %v5891_v59  ;;  %4595 = vmatpush1.bf16.msra.mxu1 %v5895_v47 }
 0xb59   :  { %4565 = vmatprep.subr.bf16.mxu0 %v5897_v50  ;;  %4597 = vmatprep.subr.bf16.mxu1 %v5899_v10 }
 0xb5c   :  { %4567 = vmatpush1.bf16.msra.mxu0 %v5902_v26  ;;  %4599 = vmatpush1.bf16.msra.mxu1 %v5906_v29 }
 0xb5d   :  { %4569 = vmatprep.subr.bf16.mxu0 %v5911_v58  ;;  %4601 = vmatprep.subr.bf16.mxu1 %v5913_v49 }
 0xb60   :  { %4571 = vmatpush1.bf16.msra.mxu0 %v5915_v5  ;;  %4603 = vmatpush1.bf16.msra.mxu1 %v5918_v17 }
 0xb61   :  { %4605 = vmatprep.subr.bf16.mxu0 %v5827_v43  ;;  %4637 = vmatprep.subr.bf16.mxu1 %v5829_v25 }
 0xc16   :  { %v2857_v45 = vpop.f32.mrb[22].mxu0  ;;  %v2928_v1 = vpop.f32.mrb[22].mxu1 }
 0xc17   :  { %v4834_v7 = vadd.f32 %v2857_v45, %v5979_v33  ;;  %v2859_v55 = vpop.f32.mrb[23].mxu0  ;;  %v2930_v28 = vpop.f32.mrb[23].mxu1  ;;  %v4850_v63 = vadd.f32 %v2928_v1, %v5988_v21 }
 0xc18   :  { %v4835_v12 = vadd.f32 %v2859_v55, %v5983_v42  ;;  %v4851_v3 = vadd.f32 %v2930_v28, %v5994_v13 }
 0xc19   :  { %v2937_v52 = vmul.f32 0.5, %v4834_v7 }
 0xc1a   :  { %v2941_v53 = vmul.f32 0.5, %v4835_v12  ;;  %v2946_v31 = vmul.f32 0.5, %v4851_v3 }
 0xc1b   :  { %5041 = vtanh.f32 %v2937_v52 }
 0xc1c   :  { %5043 = vtanh.f32 %v2941_v53 }
 0xc1d   :  { %5045 = vtanh.f32 %v4850_v63 }
 0xc1e   :  { %5047 = vtanh.f32 %v2946_v31 }
 0xc25   :  { %v5042_v34 = vpop.eup %5041 }
 0xc26   :  { %v5044_v16 = vpop.eup %5043  ;;  %v2939_v23 = vmul.f32 0.5, %v5042_v34 }
 0xc27   :  { %v2943_v37 = vmul.f32 0.5, %v5044_v16  ;;  %v5046_v35 = vpop.eup %5045 }
 0xc28   :  { %v2940_v40 = vadd.f32 0.5, %v2939_v23  ;;  %v5048_v30 = vpop.eup %5047 }
 0xc29   :  { %v2944_v44 = vadd.f32 0.5, %v2943_v37  ;;  %v2948_v14 = vmul.f32 0.5, %v5048_v30 }
 0xc2a   :  { %v2951_v54 = vmul.f32 %v5046_v35, %v2940_v40 }
 0xc2b   :  { %v2950_v62 = vmul.f32 %v2944_v44, %v6081_v9  ;;  %v2949_v22 = vadd.f32 0.5, %v2948_v14 }
 0xc2d   :  { %v6123_v39 = vadd.f32 %v2951_v54, %v2950_v62 }
 0xc2f   :  { %5049 = vtanh.f32 %v6123_v39 }
 0xc39   :  { %v5050_v20 = vpop.eup %5049 }
 0xc3a   :  { %v2954_v18 = vmul.f32 %v5050_v20, %v2949_v22 }
 0xc3c   :  { %3024 = vmatmul.mubr.f32.vlgmr.msra.gmra.mrb[24].mxu0 %v2954_v18  ;;  %3095 = vmatmul.mubr.f32.vlgmr.msra.gmra.mrb[24].mxu1 %v2954_v18 }
 0xc3d   :  { %4607 = vmatpush1.bf16.msra.mxu0 %v5831_v27  ;;  %4639 = vmatpush1.bf16.msra.mxu1 %v5834_v51 }
 0xc3e   :  { %4609 = vmatprep.subr.bf16.mxu0 %v5839_v24  ;;  %4641 = vmatprep.subr.bf16.mxu1 %v5841_v46 }
 0xc3f   :  { %3191 = vmatprep.mubr.f32.mxu0 %v5191_v0  ;;  %3262 = vmatprep.mubr.f32.mxu1 %v5191_v0 }
 0xc41   :  { %4611 = vmatpush1.bf16.msra.mxu0 %v5843_v61  ;;  %4643 = vmatpush1.bf16.msra.mxu1 %v5846_v8 }
 0xc42   :  { %4613 = vmatprep.subr.bf16.mxu0 %v5851_v11  ;;  %4645 = vmatprep.subr.bf16.mxu1 %v5853_v56 }
 0xc45   :  { %4615 = vmatpush1.bf16.msra.mxu0 %v5855_v60  ;;  %4647 = vmatpush1.bf16.msra.mxu1 %v5858_v6 }
 0xc46   :  { %4617 = vmatprep.subr.bf16.mxu0 %v5863_v19  ;;  %4649 = vmatprep.subr.bf16.mxu1 %v5865_v32 }
 0xc49   :  { %4619 = vmatpush1.bf16.msra.mxu0 %v5867_v36  ;;  %4651 = vmatpush1.bf16.msra.mxu1 %v5870_v48 }
 0xc4a   :  { %4621 = vmatprep.subr.bf16.mxu0 %v5875_v4  ;;  %4653 = vmatprep.subr.bf16.mxu1 %v5877_v2 }
 0xc4d   :  { %4623 = vmatpush1.bf16.msra.mxu0 %v5879_v15  ;;  %4655 = vmatpush1.bf16.msra.mxu1 %v5882_v57 }
 0xc4e   :  { %4625 = vmatprep.subr.bf16.mxu0 %v5886_v38  ;;  %4657 = vmatprep.subr.bf16.mxu1 %v5888_v41 }
 0xc51   :  { %4627 = vmatpush1.bf16.msra.mxu0 %v5891_v59  ;;  %4659 = vmatpush1.bf16.msra.mxu1 %v5895_v47 }
 0xc52   :  { %4629 = vmatprep.subr.bf16.mxu0 %v5897_v50  ;;  %4661 = vmatprep.subr.bf16.mxu1 %v5899_v10 }
 0xc55   :  { %4631 = vmatpush1.bf16.msra.mxu0 %v5902_v26  ;;  %4663 = vmatpush1.bf16.msra.mxu1 %v5906_v29 }
 0xc56   :  { %4633 = vmatprep.subr.bf16.mxu0 %v5911_v58  ;;  %4665 = vmatprep.subr.bf16.mxu1 %v5913_v49 }
 0xc59   :  { %4635 = vmatpush1.bf16.msra.mxu0 %v5915_v5  ;;  %4667 = vmatpush1.bf16.msra.mxu1 %v5918_v17 }
 0xc5a   :  { %4669 = vmatprep.subr.bf16.mxu0 %v5827_v43  ;;  %4701 = vmatprep.subr.bf16.mxu1 %v5829_v25 }
 0xd0f   :  { %v3025_v9 = vpop.f32.mrb[24].mxu0  ;;  %v3096_v45 = vpop.f32.mrb[24].mxu1 }
 0xd10   :  { %v4836_v1 = vadd.f32 %v3025_v9, %v5979_v33  ;;  %v3027_v7 = vpop.f32.mrb[25].mxu0  ;;  %v3098_v55 = vpop.f32.mrb[25].mxu1  ;;  %v4852_v53 = vadd.f32 %v3096_v45, %v5988_v21 }
 0xd11   :  { %v4837_v28 = vadd.f32 %v3027_v7, %v5983_v42  ;;  %v4853_v63 = vadd.f32 %v3098_v55, %v5994_v13 }
 0xd12   :  { %v3105_v12 = vmul.f32 0.5, %v4836_v1 }
 0xd13   :  { %v3109_v52 = vmul.f32 0.5, %v4837_v28  ;;  %v3114_v3 = vmul.f32 0.5, %v4853_v63 }
 0xd14   :  { %5051 = vtanh.f32 %v3105_v12 }
 0xd15   :  { %5053 = vtanh.f32 %v3109_v52 }
 0xd16   :  { %5055 = vtanh.f32 %v4852_v53 }
 0xd17   :  { %5057 = vtanh.f32 %v3114_v3 }
 0xd1e   :  { %v5052_v31 = vpop.eup %5051 }
 0xd1f   :  { %v5054_v34 = vpop.eup %5053  ;;  %v3107_v16 = vmul.f32 0.5, %v5052_v31 }
 0xd20   :  { %v3111_v23 = vmul.f32 0.5, %v5054_v34  ;;  %v5056_v40 = vpop.eup %5055 }
 0xd21   :  { %v3108_v37 = vadd.f32 0.5, %v3107_v16  ;;  %v5058_v30 = vpop.eup %5057 }
 0xd22   :  { %v3112_v35 = vadd.f32 0.5, %v3111_v23  ;;  %v3116_v14 = vmul.f32 0.5, %v5058_v30 }
 0xd23   :  { %v3119_v44 = vmul.f32 %v5056_v40, %v3108_v37 }
 0xd24   :  { %v3118_v54 = vmul.f32 %v3112_v35, %v6123_v39  ;;  %v3117_v22 = vadd.f32 0.5, %v3116_v14 }
 0xd26   :  { %v6165_v62 = vadd.f32 %v3119_v44, %v3118_v54 }
 0xd28   :  { %5059 = vtanh.f32 %v6165_v62 }
 0xd32   :  { %v5060_v20 = vpop.eup %5059 }
 0xd33   :  { %v3122_v18 = vmul.f32 %v5060_v20, %v3117_v22 }
 0xd35   :  { %3192 = vmatmul.mubr.f32.vlgmr.msra.gmra.mrb[26].mxu0 %v3122_v18  ;;  %3263 = vmatmul.mubr.f32.vlgmr.msra.gmra.mrb[26].mxu1 %v3122_v18 }
 0xd36   :  { %4671 = vmatpush1.bf16.msra.mxu0 %v5831_v27  ;;  %4703 = vmatpush1.bf16.msra.mxu1 %v5834_v51 }
 0xd37   :  { %4673 = vmatprep.subr.bf16.mxu0 %v5839_v24  ;;  %4705 = vmatprep.subr.bf16.mxu1 %v5841_v46 }
 0xd38   :  { %3359 = vmatprep.mubr.f32.mxu0 %v5191_v0  ;;  %3430 = vmatprep.mubr.f32.mxu1 %v5191_v0 }
 0xd3a   :  { %4675 = vmatpush1.bf16.msra.mxu0 %v5843_v61  ;;  %4707 = vmatpush1.bf16.msra.mxu1 %v5846_v8 }
 0xd3b   :  { %4677 = vmatprep.subr.bf16.mxu0 %v5851_v11  ;;  %4709 = vmatprep.subr.bf16.mxu1 %v5853_v56 }
 0xd3e   :  { %4679 = vmatpush1.bf16.msra.mxu0 %v5855_v60  ;;  %4711 = vmatpush1.bf16.msra.mxu1 %v5858_v6 }
 0xd3f   :  { %4681 = vmatprep.subr.bf16.mxu0 %v5863_v19  ;;  %4713 = vmatprep.subr.bf16.mxu1 %v5865_v32 }
 0xd42   :  { %4683 = vmatpush1.bf16.msra.mxu0 %v5867_v36  ;;  %4715 = vmatpush1.bf16.msra.mxu1 %v5870_v48 }
 0xd43   :  { %4685 = vmatprep.subr.bf16.mxu0 %v5875_v4  ;;  %4717 = vmatprep.subr.bf16.mxu1 %v5877_v2 }
 0xd46   :  { %4687 = vmatpush1.bf16.msra.mxu0 %v5879_v15  ;;  %4719 = vmatpush1.bf16.msra.mxu1 %v5882_v57 }
 0xd47   :  { %4689 = vmatprep.subr.bf16.mxu0 %v5886_v38  ;;  %4721 = vmatprep.subr.bf16.mxu1 %v5888_v41 }
 0xd4a   :  { %4691 = vmatpush1.bf16.msra.mxu0 %v5891_v59  ;;  %4723 = vmatpush1.bf16.msra.mxu1 %v5895_v47 }
 0xd4b   :  { %4693 = vmatprep.subr.bf16.mxu0 %v5897_v50  ;;  %4725 = vmatprep.subr.bf16.mxu1 %v5899_v10 }
 0xd4e   :  { %4695 = vmatpush1.bf16.msra.mxu0 %v5902_v26  ;;  %4727 = vmatpush1.bf16.msra.mxu1 %v5906_v29 }
 0xd4f   :  { %4697 = vmatprep.subr.bf16.mxu0 %v5911_v58  ;;  %4729 = vmatprep.subr.bf16.mxu1 %v5913_v49 }
 0xd52   :  { %4699 = vmatpush1.bf16.msra.mxu0 %v5915_v5  ;;  %4731 = vmatpush1.bf16.msra.mxu1 %v5918_v17 }
 0xd53   :  { %4733 = vmatprep.subr.bf16.mxu0 %v5827_v43  ;;  %4765 = vmatprep.subr.bf16.mxu1 %v5829_v25 }
 0xe08   :  { %v3193_v39 = vpop.f32.mrb[26].mxu0  ;;  %v3264_v9 = vpop.f32.mrb[26].mxu1 }
 0xe09   :  { %v4838_v45 = vadd.f32 %v3193_v39, %v5979_v33  ;;  %v3195_v1 = vpop.f32.mrb[27].mxu0  ;;  %v3266_v7 = vpop.f32.mrb[27].mxu1  ;;  %v4854_v52 = vadd.f32 %v3264_v9, %v5988_v21 }
 0xe0a   :  { %v4839_v55 = vadd.f32 %v3195_v1, %v5983_v42  ;;  %v4855_v53 = vadd.f32 %v3266_v7, %v5994_v13 }
 0xe0b   :  { %v3273_v28 = vmul.f32 0.5, %v4838_v45 }
 0xe0c   :  { %v3277_v12 = vmul.f32 0.5, %v4839_v55  ;;  %v3282_v43 = vmul.f32 0.5, %v4855_v53 }
 0xe0d   :  { %5061 = vtanh.f32 %v3273_v28 }
 0xe0e   :  { %5063 = vtanh.f32 %v3277_v12 }
 0xe0f   :  { %5065 = vtanh.f32 %v4854_v52 }
 0xe10   :  { %5067 = vtanh.f32 %v3282_v43 }
 0xe17   :  { %v5062_v63 = vpop.eup %5061 }
 0xe18   :  { %v5064_v25 = vpop.eup %5063  ;;  %v3275_v3 = vmul.f32 0.5, %v5062_v63 }
 0xe19   :  { %v3279_v31 = vmul.f32 0.5, %v5064_v25  ;;  %v5066_v16 = vpop.eup %5065 }
 0xe1a   :  { %v3276_v34 = vadd.f32 0.5, %v3275_v3  ;;  %v5068_v44 = vpop.eup %5067 }
 0xe1b   :  { %v3280_v23 = vadd.f32 0.5, %v3279_v31  ;;  %v3284_v54 = vmul.f32 0.5, %v5068_v44 }
 0xe1c   :  { %v3287_v37 = vmul.f32 %v5066_v16, %v3276_v34 }
 0xe1d   :  { %v3286_v40 = vmul.f32 %v3280_v23, %v6165_v62  ;;  %v3285_v30 = vadd.f32 0.5, %v3284_v54 }
 0xe1f   :  { %v6207_v35 = vadd.f32 %v3287_v37, %v3286_v40 }
 0xe21   :  { %5069 = vtanh.f32 %v6207_v35 }
 0xe2b   :  { %v5070_v14 = vpop.eup %5069 }
 0xe2c   :  { %v3290_v22 = vmul.f32 %v5070_v14, %v3285_v30 }
 0xe2e   :  { %3360 = vmatmul.mubr.f32.vlgmr.msra.gmra.mrb[28].mxu0 %v3290_v22  ;;  %3431 = vmatmul.mubr.f32.vlgmr.msra.gmra.mrb[28].mxu1 %v3290_v22 }
 0xe2f   :  { %4735 = vmatpush1.bf16.msra.mxu0 %v5831_v27  ;;  %4767 = vmatpush1.bf16.msra.mxu1 %v5834_v51 }
 0xe30   :  { %4737 = vmatprep.subr.bf16.mxu0 %v5839_v24  ;;  %4769 = vmatprep.subr.bf16.mxu1 %v5841_v46 }
 0xe31   :  { %3527 = vmatprep.mubr.f32.mxu0 %v5191_v0  ;;  %3598 = vmatprep.mubr.f32.mxu1 %v5191_v0 }
 0xe33   :  { %4739 = vmatpush1.bf16.msra.mxu0 %v5843_v61  ;;  %4771 = vmatpush1.bf16.msra.mxu1 %v5846_v8 }
 0xe34   :  { %4741 = vmatprep.subr.bf16.mxu0 %v5851_v11  ;;  %4773 = vmatprep.subr.bf16.mxu1 %v5853_v56 }
 0xe37   :  { %4743 = vmatpush1.bf16.msra.mxu0 %v5855_v60  ;;  %4775 = vmatpush1.bf16.msra.mxu1 %v5858_v6 }
 0xe38   :  { %4745 = vmatprep.subr.bf16.mxu0 %v5863_v19  ;;  %4777 = vmatprep.subr.bf16.mxu1 %v5865_v32 }
 0xe3b   :  { %4747 = vmatpush1.bf16.msra.mxu0 %v5867_v36  ;;  %4779 = vmatpush1.bf16.msra.mxu1 %v5870_v48 }
 0xe3c   :  { %4749 = vmatprep.subr.bf16.mxu0 %v5875_v4  ;;  %4781 = vmatprep.subr.bf16.mxu1 %v5877_v2 }
 0xe3f   :  { %4751 = vmatpush1.bf16.msra.mxu0 %v5879_v15  ;;  %4783 = vmatpush1.bf16.msra.mxu1 %v5882_v57 }
 0xe40   :  { %4753 = vmatprep.subr.bf16.mxu0 %v5886_v38  ;;  %4785 = vmatprep.subr.bf16.mxu1 %v5888_v41 }
 0xe43   :  { %4755 = vmatpush1.bf16.msra.mxu0 %v5891_v59  ;;  %4787 = vmatpush1.bf16.msra.mxu1 %v5895_v47 }
 0xe44   :  { %4757 = vmatprep.subr.bf16.mxu0 %v5897_v50  ;;  %4789 = vmatprep.subr.bf16.mxu1 %v5899_v10 }
 0xe47   :  { %4759 = vmatpush1.bf16.msra.mxu0 %v5902_v26  ;;  %4791 = vmatpush1.bf16.msra.mxu1 %v5906_v29 }
 0xe48   :  { %4761 = vmatprep.subr.bf16.mxu0 %v5911_v58  ;;  %4793 = vmatprep.subr.bf16.mxu1 %v5913_v49 }
 0xe4b   :  { %4763 = vmatpush1.bf16.msra.mxu0 %v5915_v5  ;;  %4795 = vmatpush1.bf16.msra.mxu1 %v5918_v17 }
 0xf01   :  { %v3361_v0 = vpop.f32.mrb[28].mxu0  ;;  %v3432_v27 = vpop.f32.mrb[28].mxu1 }
 0xf02   :  { %v4840_v51 = vadd.f32 %v3361_v0, %v5979_v33  ;;  %v3363_v24 = vpop.f32.mrb[29].mxu0  ;;  %v3434_v46 = vpop.f32.mrb[29].mxu1  ;;  %v4856_v56 = vadd.f32 %v3432_v27, %v5988_v21 }
 0xf03   :  { %v4841_v61 = vadd.f32 %v3363_v24, %v5983_v42  ;;  %v4857_v60 = vadd.f32 %v3434_v46, %v5994_v13 }
 0xf04   :  { %v3441_v8 = vmul.f32 0.5, %v4840_v51 }
 0xf05   :  { %v3445_v11 = vmul.f32 0.5, %v4841_v61  ;;  %v3450_v6 = vmul.f32 0.5, %v4857_v60 }
 0xf06   :  { %5071 = vtanh.f32 %v3441_v8 }
 0xf07   :  { %5073 = vtanh.f32 %v3445_v11 }
 0xf08   :  { %5075 = vtanh.f32 %v4856_v56 }
 0xf09   :  { %5077 = vtanh.f32 %v3450_v6 }
 0xf10   :  { %v5072_v19 = vpop.eup %5071 }
 0xf11   :  { %v5074_v32 = vpop.eup %5073  ;;  %v3443_v36 = vmul.f32 0.5, %v5072_v19 }
 0xf12   :  { %v3447_v48 = vmul.f32 0.5, %v5074_v32  ;;  %v5076_v2 = vpop.eup %5075 }
 0xf13   :  { %v3444_v4 = vadd.f32 0.5, %v3443_v36  ;;  %v5078_v59 = vpop.eup %5077 }
 0xf14   :  { %v3448_v15 = vadd.f32 0.5, %v3447_v48  ;;  %v3452_v47 = vmul.f32 0.5, %v5078_v59 }
 0xf15   :  { %v3455_v57 = vmul.f32 %v5076_v2, %v3444_v4 }
 0xf16   :  { %v3454_v38 = vmul.f32 %v3448_v15, %v6207_v35  ;;  %v3453_v50 = vadd.f32 0.5, %v3452_v47 }
 0xf18   :  { %v3456_v41 = vadd.f32 %v3455_v57, %v3454_v38 }
 0xf1a   :  { %5079 = vtanh.f32 %v3456_v41 }
 0xf24   :  { %v5080_v10 = vpop.eup %5079 }
 0xf25   :  { %v3458_v26 = vmul.f32 %v5080_v10, %v3453_v50 }
 0xf27   :  { %3528 = vmatmul.mubr.f32.vlgmr.msra.gmra.mrb[30].mxu0 %v3458_v26  ;;  %3599 = vmatmul.mubr.f32.vlgmr.msra.gmra.mrb[30].mxu1 %v3458_v26 }
 0xffa   :  { %v3529_v29 = vpop.f32.mrb[30].mxu0  ;;  %v3600_v58 = vpop.f32.mrb[30].mxu1 }
 0xffb   :  { %v4842_v49 = vadd.f32 %v3529_v29, %v5979_v33  ;;  %v3531_v5 = vpop.f32.mrb[31].mxu0  ;;  %v3602_v17 = vpop.f32.mrb[31].mxu1  ;;  %v4858_v39 = vadd.f32 %v3600_v58, %v5988_v21 }
 0xffc   :  { %v4843_v62 = vadd.f32 %v3531_v5, %v5983_v42  ;;  %v4859_v9 = vadd.f32 %v3602_v17, %v5994_v13 }
 0xffd   :  { %v3609_v20 = vmul.f32 0.5, %v4842_v49 }
 0xffe   :  { %v3613_v18 = vmul.f32 0.5, %v4843_v62  ;;  %v3618_v45 = vmul.f32 0.5, %v4859_v9 }
 0xfff   :  { %5081 = vtanh.f32 %v3609_v20 }
0x1000   :  { %5083 = vtanh.f32 %v3613_v18 }
0x1001   :  { %5085 = vtanh.f32 %v4858_v39 }
0x1002   :  { %5087 = vtanh.f32 %v3618_v45 }
0x1009   :  { %v5082_v1 = vpop.eup %5081 }
0x100a   :  { %v5084_v7 = vpop.eup %5083  ;;  %v3611_v55 = vmul.f32 0.5, %v5082_v1 }
0x100b   :  { %v3615_v28 = vmul.f32 0.5, %v5084_v7  ;;  %v5086_v12 = vpop.eup %5085 }
0x100c   :  { %v3612_v33 = vadd.f32 0.5, %v3611_v55  ;;  %v5088_v21 = vpop.eup %5087 }
0x100d   :  { %v3616_v52 = vadd.f32 0.5, %v3615_v28  ;;  %v3620_v63 = vmul.f32 0.5, %v5088_v21 }
0x100e   :  { %v3623_v53 = vmul.f32 %v5086_v12, %v3612_v33 }
0x100f   :  { %v3622_v42 = vmul.f32 %v3616_v52, %v3456_v41  ;;  %v3621_v13 = vadd.f32 0.5, %v3620_v63 }
0x1011   :  { %v3624_v43 = vadd.f32 %v3623_v53, %v3622_v42 }
0x1013   :  { %5089 = vtanh.f32 %v3624_v43  ;;  %3643 = vst [vmem:[%s6265_s8 + $0x8] sm:$0xff] %v3624_v43 }
0x101d   :  { %v5090_v25 = vpop.eup %5089 }
0x101e   :  { %v3626_v3 = vmul.f32 %v5090_v25, %v3621_v13 }
0x1020   :  { %3642 = vst [vmem:[%s6264_s7 + $0x8] sm:$0xff] %v3626_v3 }
0x1021   :  { %3639 = vsyncpa [#allocation5], 1 }
0x1022   :  { %3640 = vsyncpa [#allocation7], 1 }
0x1023   :  { %3641 = vsyncpa [#allocation10], 1 }

</bundles_post_ra>
